<compile_context>
chip_gen: v7x
topology: tpu7x:2x2x1
jax: 0.10.0
libtpu: 0.0.40
codegen_flags: <defaults>
</compile_context>

<pallas_src>
import math

import jax
import jax.numpy as jnp
from jax.experimental import pallas as pl
from jax.experimental.pallas import tpu as pltpu

# ---------------- configuration (small-shape stand-in for ViT-B/16 + MERU) ----------
B = 2            # batch
C_IN = 3         # image channels (NCHW)
IMG = 16         # image spatial size
PATCH = 8        # patch size -> 2x2 = 4 patches
GRID = IMG // PATCH
NUM_PATCHES = GRID * GRID
SEQ = NUM_PATCHES + 1          # +1 CLS token (=5)
SEQ_PAD = 8                    # padded to a full sublane tile; padded keys masked
WIDTH = 64                     # ViT width (stand-in for 768)
HEADS = 4
HEAD_DIM = WIDTH // HEADS
MLP_HIDDEN = 4 * WIDTH
LAYERS = 2                     # stand-in for 12 blocks
EMBED = 32                     # MERU embed_dim (stand-in for 512)
NUM_CLASSES = 1
NC_PAD = 128                   # classifier output padded to a full 128-lane vreg
LN_EPS = 1e-6

# bf16 at the MXU boundary (f32 accumulation); elementwise math stays f32.
MXU_DTYPE = jnp.bfloat16

_VMEM = pl.BlockSpec(memory_space=pltpu.MemorySpace.VMEM)
_SMEM = pl.BlockSpec(memory_space=pltpu.MemorySpace.SMEM)


# ---------------- in-kernel helpers ---------------------------------------------------
def _layernorm(x, g, b, eps=LN_EPS):
    mu = jnp.mean(x, axis=-1, keepdims=True)
    var = jnp.mean((x - mu) ** 2, axis=-1, keepdims=True)
    return (x - mu) * jax.lax.rsqrt(var + eps) * g + b


def _gelu(x):
    # TODO(synk): timm ViT uses exact erf-GELU; tanh approximation used here.
    c = jnp.float32(0.7978845608028654)
    return 0.5 * x * (1.0 + jnp.tanh(c * (x + 0.044715 * x * x * x)))


# ---------------- Pallas kernels -------------------------------------------------------
def embed_kernel(p_ref, pw_ref, pb_ref, clspos_ref, pospatch_ref, o_ref):
    """Fused patch-embed + CLS token + sincos2d pos-embed, padded to SEQ_PAD rows.

    p_ref: [B, NP, C*p*p] f32, pw: [C*p*p, W] bf16, pb: [1, W] f32,
    clspos: [1, W] f32 (cls_token + pos[0]), pospatch: [NP, W] f32.
    o_ref: [B, SEQ_PAD, W] f32 (rows SEQ.. are zero padding).
    """
    bsz, npatch, cpp = p_ref.shape
    width = pw_ref.shape[1]
    # single batched matmul over all patches of all images
    pf = p_ref[...].reshape(bsz * npatch, cpp).astype(MXU_DTYPE)
    emb = jnp.dot(pf, pw_ref[...], preferred_element_type=jnp.float32)
    emb = emb.reshape(bsz, npatch, width) + pb_ref[...] + pospatch_ref[...]
    cls = jnp.broadcast_to(clspos_ref[...][None, :, :], (bsz, 1, width))
    pad = jnp.zeros((bsz, SEQ_PAD - 1 - npatch, width), jnp.float32)
    # one aligned full-block store
    o_ref[...] = jnp.concatenate([cls, emb, pad], axis=1)


def stack_kernel(x_ref, ln1g_ref, ln1b_ref, wq_ref, bq_ref, wk_ref, bk_ref,
                 wv_ref, bv_ref, wo_ref, bo_ref, ln2g_ref, ln2b_ref,
                 w1_ref, b1_ref, w2_ref, b2_ref, o_ref):
    """Whole transformer stack: grid=(B, LAYERS), one fused pre-norm block per step.

    Activations live in o_ref (constant block index over the layer axis -> VMEM
    resident across the layer sweep, written to HBM only once per batch tile).
    Weight refs carry a leading size-1 layer block: wq/wk/wv/wo: [1,W,W] bf16,
    w1: [1,W,4W] bf16, w2: [1,4W,W] bf16, biases/LN params f32.
    """
    layer = pl.program_id(1)

    @pl.when(layer == 0)
    def _():
        o_ref[...] = x_ref[...]

    x = o_ref[0]                                               # [SEQ_PAD, W] f32

    # --- attention: LN1 fused into full-width Q/K/V matmuls (scale folded into wq) ---
    h = _layernorm(x, ln1g_ref[0], ln1b_ref[0]).astype(MXU_DTYPE)
    q = jnp.dot(h, wq_ref[0], preferred_element_type=jnp.float32) + bq_ref[0]
    k = jnp.dot(h, wk_ref[0], preferred_element_type=jnp.float32) + bk_ref[0]
    v = jnp.dot(h, wv_ref[0], preferred_element_type=jnp.float32) + bv_ref[0]

    key_ok = jax.lax.broadcasted_iota(jnp.int32, (1, SEQ_PAD), 1) < SEQ
    heads_out = []
    for hd in range(HEADS):                                    # tiny attention cores only
        sl = slice(hd * HEAD_DIM, (hd + 1) * HEAD_DIM)
        qh = q[:, sl].astype(MXU_DTYPE)
        kh = k[:, sl].astype(MXU_DTYPE)
        vh = v[:, sl].astype(MXU_DTYPE)
        s = jax.lax.dot_general(qh, kh, (((1,), (1,)), ((), ())),
                                preferred_element_type=jnp.float32)   # [S_PAD, S_PAD]
        s = jnp.where(key_ok, s, jnp.float32(-1e30))           # mask padded keys
        s = s - jnp.max(s, axis=-1, keepdims=True)
        p = jnp.exp(s)
        p = p / jnp.sum(p, axis=-1, keepdims=True)
        heads_out.append(jnp.dot(p.astype(MXU_DTYPE), vh,
                                 preferred_element_type=jnp.float32))
    attn = jnp.concatenate(heads_out, axis=-1)                 # [SEQ_PAD, W]
    # full-width output projection (K=W, N=W)
    x1 = x + jnp.dot(attn.astype(MXU_DTYPE), wo_ref[0],
                     preferred_element_type=jnp.float32) + bo_ref[0]

    # --- MLP: LN2 fused into fc1 ---
    h2 = _layernorm(x1, ln2g_ref[0], ln2b_ref[0]).astype(MXU_DTYPE)
    m = jnp.dot(h2, w1_ref[0], preferred_element_type=jnp.float32) + b1_ref[0]
    m = _gelu(m)
    m = jnp.dot(m.astype(MXU_DTYPE), w2_ref[0],
                preferred_element_type=jnp.float32) + b2_ref[0]
    o_ref[0] = x1 + m


def head_kernel(x_ref, ng_ref, nb_ref, wp_ref, scal_ref, wfc_ref, bfc_ref,
                logit_ref, feat_ref):
    """Fused: final LN -> CLS pooling -> visual_proj -> *exp(alpha) -> exp_map0 -> fc.

    Whole batch processed at once (no per-sample loop).
    x: [B, SEQ_PAD, W] f32, wp: [W, EMBED] bf16, scal (SMEM): [log_alpha, log_curv] f32,
    wfc: [EMBED, NC_PAD] bf16 (zero-padded), bfc: [1, NC_PAD] f32.
    logit: [B, NC_PAD] f32 (lane-dense), feat: [B, EMBED] f32 (hyperbolic features).
    """
    ealpha = jnp.exp(scal_ref[0])
    sqrt_c = jnp.sqrt(jnp.exp(scal_ref[1]))
    cls = x_ref[...][:, 0, :]                                  # [B, W] token (CLS) pooling
    h = _layernorm(cls, ng_ref[...], nb_ref[...])
    z = jnp.dot(h.astype(MXU_DTYPE), wp_ref[...],
                preferred_element_type=jnp.float32) * ealpha   # [B, EMBED]
    # exp_map0: sinh(sqrt(c)*||x||) * x / (sqrt(c)*||x||), ||.|| clamped at eps=1e-8.
    rc = sqrt_c * jnp.sqrt(jnp.sum(z * z, axis=-1, keepdims=True))
    rc_safe = jnp.maximum(rc, 1e-8)
    sinh_in = jnp.minimum(rc_safe, 80.0)   # guard f32 exp overflow for huge norms
    feats = (0.5 * (jnp.exp(sinh_in) - jnp.exp(-sinh_in))) * z / rc_safe
    feat_ref[...] = feats
    logit_ref[...] = (jnp.dot(feats.astype(MXU_DTYPE), wfc_ref[...],
                              preferred_element_type=jnp.float32) + bfc_ref[...])


# ---------------- thin wrappers around pallas_call -----------------------------------
def pallas_embed(patches, params):
    Bb = patches.shape[0]
    return pl.pallas_call(
        embed_kernel,
        out_shape=jax.ShapeDtypeStruct((Bb, SEQ_PAD, WIDTH), jnp.float32),
        in_specs=[_VMEM] * 5,
        out_specs=_VMEM,
    )(patches, params["patch_w"], params["patch_b"], params["cls_pos"],
      params["pos_patch"])


def pallas_stack(x_emb, s):
    """One pallas_call for all transformer layers: grid=(B, LAYERS)."""
    Bb = x_emb.shape[0]
    names = ["ln1_g", "ln1_b", "wq", "bq", "wk", "bk", "wv", "bv",
             "wo", "bo", "ln2_g", "ln2_b", "w1", "b1", "w2", "b2"]
    weights = [s[n] for n in names]

    def wspec(arr):
        nd = arr.ndim
        return pl.BlockSpec((1,) + arr.shape[1:],
                            lambda b, l, _nd=nd: (l,) + (0,) * (_nd - 1))

    act_spec = pl.BlockSpec((1, SEQ_PAD, WIDTH), lambda b, l: (b, 0, 0))
    return pl.pallas_call(
        stack_kernel,
        out_shape=jax.ShapeDtypeStruct((Bb, SEQ_PAD, WIDTH), jnp.float32),
        grid=(Bb, LAYERS),
        in_specs=[act_spec] + [wspec(w) for w in weights],
        out_specs=act_spec,
        compiler_params=pltpu.CompilerParams(
            dimension_semantics=("parallel", "arbitrary"),
            vmem_limit_bytes=64 * 1024 * 1024),
    )(x_emb, *weights)


def pallas_head(x, params):
    Bb = x.shape[0]
    return pl.pallas_call(
        head_kernel,
        out_shape=(jax.ShapeDtypeStruct((Bb, NC_PAD), jnp.float32),
                   jax.ShapeDtypeStruct((Bb, EMBED), jnp.float32)),
        in_specs=[_VMEM, _VMEM, _VMEM, _VMEM, _SMEM, _VMEM, _VMEM],
        out_specs=(_VMEM, _VMEM),
    )(x, params["norm_g"], params["norm_b"], params["visual_proj_w"],
      params["scalars"], params["fc_w"], params["fc_b"])


# ---------------- parameter init (deterministic, synthetic) --------------------------
def sincos2d_pos_embed(width, grid_h, grid_w):
    # TODO(synk): verify flatten order (w-major here, as in MoCo-v3/MERU reference)
    #             against the height-major patch unfold; identical for square grids
    #             with synthetic weights.
    gw, gh = jnp.meshgrid(
        jnp.arange(grid_w, dtype=jnp.float32),
        jnp.arange(grid_h, dtype=jnp.float32),
        indexing="ij",
    )
    pos_dim = width // 4
    omega = jnp.arange(pos_dim, dtype=jnp.float32) / pos_dim
    omega = 1.0 / (10000.0 ** omega)
    out_w = gw.flatten()[:, None] * omega[None, :]
    out_h = gh.flatten()[:, None] * omega[None, :]
    pos = jnp.concatenate(
        [jnp.sin(out_w), jnp.cos(out_w), jnp.sin(out_h), jnp.cos(out_h)], axis=1
    )
    # zero positional embedding for the CLS token (as in MERU's build_timm_vit)
    return jnp.concatenate([jnp.zeros((1, width), jnp.float32), pos], axis=0)  # [SEQ, W]


def init_params(key):
    def nrm(k, shape, std=0.02):
        return std * jax.random.normal(k, shape, jnp.float32)

    keys = iter(jax.random.split(key, 16))
    p = {}
    # patch embed: Conv2d(3, WIDTH, PATCH, stride=PATCH) expressed as matmul weight
    # of shape (C*p*p, WIDTH), flattened in (C, kh, kw) order to match PyTorch conv.
    p["patch_w"] = nrm(next(keys), (C_IN * PATCH * PATCH, WIDTH)).astype(MXU_DTYPE)
    p["patch_b"] = jnp.zeros((1, WIDTH), jnp.float32)
    cls_token = nrm(next(keys), (1, WIDTH))
    pos = sincos2d_pos_embed(WIDTH, GRID, GRID)                  # [SEQ, WIDTH]
    p["cls_pos"] = cls_token + pos[0:1]                          # CLS row (pos[0] == 0)
    p["pos_patch"] = pos[1:]                                     # [NP, WIDTH]

    # --- transformer layers: weights stacked on a leading layer axis -------------
    L = LAYERS
    scale = HEAD_DIM ** -0.5     # attention scale folded into wq (+ its zero bias)
    p["stack"] = {
        "ln1_g": jnp.ones((L, 1, WIDTH), jnp.float32),
        "ln1_b": jnp.zeros((L, 1, WIDTH), jnp.float32),
        "wq": (nrm(next(keys), (L, WIDTH, WIDTH)) * scale).astype(MXU_DTYPE),
        "bq": jnp.zeros((L, 1, WIDTH), jnp.float32),
        "wk": nrm(next(keys), (L, WIDTH, WIDTH)).astype(MXU_DTYPE),
        "bk": jnp.zeros((L, 1, WIDTH), jnp.float32),
        "wv": nrm(next(keys), (L, WIDTH, WIDTH)).astype(MXU_DTYPE),
        "bv": jnp.zeros((L, 1, WIDTH), jnp.float32),
        "wo": nrm(next(keys), (L, WIDTH, WIDTH)).astype(MXU_DTYPE),
        "bo": jnp.zeros((L, 1, WIDTH), jnp.float32),
        "ln2_g": jnp.ones((L, 1, WIDTH), jnp.float32),
        "ln2_b": jnp.zeros((L, 1, WIDTH), jnp.float32),
        "w1": nrm(next(keys), (L, WIDTH, MLP_HIDDEN)).astype(MXU_DTYPE),
        "b1": jnp.zeros((L, 1, MLP_HIDDEN), jnp.float32),
        "w2": nrm(next(keys), (L, MLP_HIDDEN, WIDTH)).astype(MXU_DTYPE),
        "b2": jnp.zeros((L, 1, WIDTH), jnp.float32),
    }

    p["norm_g"] = jnp.ones((1, WIDTH), jnp.float32)
    p["norm_b"] = jnp.zeros((1, WIDTH), jnp.float32)

    # MERU projection head (bias=False) + learnable scalars (stored as logs)
    p["visual_proj_w"] = nrm(next(keys), (WIDTH, EMBED)).astype(MXU_DTYPE)
    p["scalars"] = jnp.array(
        [math.log(1.0 / math.sqrt(EMBED)), math.log(1.0)], jnp.float32)  # [alpha, curv]

    # MeruModel.fc : Linear(channels=EMBED, num_classes=1), padded to 128 lanes
    fc_w = nrm(next(keys), (EMBED, NUM_CLASSES))
    fc_b = jnp.zeros((1, NUM_CLASSES), jnp.float32)
    p["fc_w"] = (jnp.zeros((EMBED, NC_PAD), jnp.float32)
                 .at[:, :NUM_CLASSES].set(fc_w)).astype(MXU_DTYPE)
    p["fc_b"] = jnp.zeros((1, NC_PAD), jnp.float32).at[:, :NUM_CLASSES].set(fc_b)
    return p


# ---------------- forward pass --------------------------------------------------------
def meru_forward(images, params, return_feature=False):
    """images: [B, 3, H, W] (NCHW, like PyTorch).  Returns logits [B, 1]."""
    Bb = images.shape[0]
    # --- patch unfold: NCHW -> [B, N, C*p*p] (pure relayout, left to XLA) ---
    x = images.reshape(Bb, C_IN, GRID, PATCH, GRID, PATCH)
    x = x.transpose(0, 2, 4, 1, 3, 5).reshape(Bb, NUM_PATCHES, C_IN * PATCH * PATCH)

    # --- fused patch-embed + CLS + pos-embed (padded to SEQ_PAD rows) ---
    x = pallas_embed(x, params)                       # [B, SEQ_PAD, WIDTH] f32

    # --- whole transformer stack: one pallas_call, grid=(B, LAYERS) ---
    x = pallas_stack(x, params["stack"])

    # --- fused MERU head: LN -> CLS pool -> visual_proj -> exp_map0 -> fc ---
    logits_pad, feats = pallas_head(x, params)
    if return_feature:
        return feats                                  # MERU.encode_image(project=True)
    return logits_pad[:, :NUM_CLASSES]                # MeruModel.fc output


# ---------------- main ----------------------------------------------------------------
if __name__ == "__main__":
    key = jax.random.PRNGKey(0)
    k_img, k_par = jax.random.split(key)
    images = jax.random.normal(k_img, (B, C_IN, IMG, IMG), jnp.float32)  # NCHW
    params = init_params(k_par)

    fwd = jax.jit(meru_forward)
    out = jax.block_until_ready(fwd(images, params))
    assert out.shape == (B, NUM_CLASSES) and out.dtype == jnp.float32
    print("KERNEL_OK")
</pallas_src>

<mosaic_0001>
module attributes {stable_mosaic.version = 11 : i64} {
  func.func @embed_kernel(%arg0: memref<2x4x192xf32, #tpu.memory_space<vmem>>, %arg1: memref<192x64xbf16, #tpu.memory_space<vmem>>, %arg2: memref<1x64xf32, #tpu.memory_space<vmem>>, %arg3: memref<1x64xf32, #tpu.memory_space<vmem>>, %arg4: memref<4x64xf32, #tpu.memory_space<vmem>>, %arg5: memref<2x8x64xf32, #tpu.memory_space<vmem>>) attributes {dimension_semantics = [], scalar_prefetch = 0 : i64, scratch_operands = 0 : i64, tpu.core_type = #tpu.core_type<tc>} {
    %c0 = arith.constant 0 : index
    %c0_0 = arith.constant 0 : index
    %c0_1 = arith.constant 0 : index
    %0 = vector.load %arg0[%c0, %c0_0, %c0_1] : memref<2x4x192xf32, #tpu.memory_space<vmem>>, vector<2x4x192xf32>
    %1 = vector.shape_cast %0 : vector<2x4x192xf32> to vector<8x192xf32>
    %2 = arith.truncf %1 : vector<8x192xf32> to vector<8x192xbf16>
    %c0_2 = arith.constant 0 : index
    %c0_3 = arith.constant 0 : index
    %3 = vector.load %arg1[%c0_2, %c0_3] : memref<192x64xbf16, #tpu.memory_space<vmem>>, vector<192x64xbf16>
    %cst = arith.constant dense<0.000000e+00> : vector<8x64xf32>
    %4 = tpu.matmul %2, %3, %cst {dimension_numbers = #tpu.dot_dimension_numbers<[1], [0], [0], [1], [0, 0, 1, 1], [], []>} : vector<8x192xbf16>, vector<192x64xbf16>, vector<8x64xf32> -> vector<8x64xf32>
    %5 = vector.shape_cast %4 : vector<8x64xf32> to vector<2x4x64xf32>
    %c0_4 = arith.constant 0 : index
    %c0_5 = arith.constant 0 : index
    %6 = vector.load %arg2[%c0_4, %c0_5] : memref<1x64xf32, #tpu.memory_space<vmem>>, vector<1x64xf32>
    %7 = vector.shape_cast %6 : vector<1x64xf32> to vector<1x1x64xf32>
    %8 = vector.broadcast %7 : vector<1x1x64xf32> to vector<2x4x64xf32>
    %9 = arith.addf %5, %8 : vector<2x4x64xf32>
    %c0_6 = arith.constant 0 : index
    %c0_7 = arith.constant 0 : index
    %10 = vector.load %arg4[%c0_6, %c0_7] : memref<4x64xf32, #tpu.memory_space<vmem>>, vector<4x64xf32>
    %11 = vector.shape_cast %10 : vector<4x64xf32> to vector<1x4x64xf32>
    %12 = vector.broadcast %11 : vector<1x4x64xf32> to vector<2x4x64xf32>
    %13 = arith.addf %9, %12 : vector<2x4x64xf32>
    %c0_8 = arith.constant 0 : index
    %c0_9 = arith.constant 0 : index
    %14 = vector.load %arg3[%c0_8, %c0_9] : memref<1x64xf32, #tpu.memory_space<vmem>>, vector<1x64xf32>
    %15 = vector.shape_cast %14 : vector<1x64xf32> to vector<1x1x64xf32>
    %16 = vector.shape_cast %15 : vector<1x1x64xf32> to vector<1x1x64xf32>
    %17 = vector.broadcast %16 : vector<1x1x64xf32> to vector<2x1x64xf32>
    %cst_10 = arith.constant 0.000000e+00 : f32
    %18 = vector.broadcast %cst_10 : f32 to vector<2x3x64xf32>
    %19 = tpu.concatenate %17, %13, %18 in 1 : vector<2x1x64xf32>, vector<2x4x64xf32>, vector<2x3x64xf32> -> vector<2x8x64xf32>
    %c0_11 = arith.constant 0 : index
    %c0_12 = arith.constant 0 : index
    %c0_13 = arith.constant 0 : index
    %20 = vector.load %arg5[%c0_11, %c0_12, %c0_13] : memref<2x8x64xf32, #tpu.memory_space<vmem>>, vector<2x8x64xf32>
    tpu.vector_store %arg5[%c0_11, %c0_12, %c0_13], %19 {strides = array<i32>} : memref<2x8x64xf32, #tpu.memory_space<vmem>>, vector<2x8x64xf32>,
    return
  }
}

module attributes {stable_mosaic.version = 11 : i64} {
  func.func @head_kernel(%arg0: memref<2x8x64xf32, #tpu.memory_space<vmem>>, %arg1: memref<1x64xf32, #tpu.memory_space<vmem>>, %arg2: memref<1x64xf32, #tpu.memory_space<vmem>>, %arg3: memref<64x32xbf16, #tpu.memory_space<vmem>>, %arg4: memref<2xf32, #tpu.memory_space<smem>>, %arg5: memref<32x128xbf16, #tpu.memory_space<vmem>>, %arg6: memref<1x128xf32, #tpu.memory_space<vmem>>, %arg7: memref<2x128xf32, #tpu.memory_space<vmem>>, %arg8: memref<2x32xf32, #tpu.memory_space<vmem>>) attributes {dimension_semantics = [], scalar_prefetch = 0 : i64, scratch_operands = 0 : i64, tpu.core_type = #tpu.core_type<tc>} {
    %c0 = arith.constant 0 : index
    %0 = memref.load %arg4[%c0] : memref<2xf32, #tpu.memory_space<smem>>
    %1 = math.exp %0 : f32
    %c1 = arith.constant 1 : index
    %2 = memref.load %arg4[%c1] : memref<2xf32, #tpu.memory_space<smem>>
    %3 = math.exp %2 : f32
    %4 = math.sqrt %3 : f32
    %c0_0 = arith.constant 0 : index
    %c0_1 = arith.constant 0 : index
    %c0_2 = arith.constant 0 : index
    %5 = vector.load %arg0[%c0_0, %c0_1, %c0_2] : memref<2x8x64xf32, #tpu.memory_space<vmem>>, vector<2x8x64xf32>
    %6 = vector.extract_strided_slice %5 {offsets = [0, 0, 0], sizes = [2, 1, 64], strides = [1, 1, 1]} : vector<2x8x64xf32> to vector<2x1x64xf32>
    %7 = vector.shape_cast %6 : vector<2x1x64xf32> to vector<2x64xf32>
    %c0_3 = arith.constant 0 : index
    %c0_4 = arith.constant 0 : index
    %8 = vector.load %arg1[%c0_3, %c0_4] : memref<1x64xf32, #tpu.memory_space<vmem>>, vector<1x64xf32>
    %c0_5 = arith.constant 0 : index
    %c0_6 = arith.constant 0 : index
    %9 = vector.load %arg2[%c0_5, %c0_6] : memref<1x64xf32, #tpu.memory_space<vmem>>, vector<1x64xf32>
    %cst = arith.constant dense<0.000000e+00> : vector<2xf32>
    %10 = vector.multi_reduction <add>, %7, %cst [1] : vector<2x64xf32> to vector<2xf32>
    %11 = vector.shape_cast %10 : vector<2xf32> to vector<2x1xf32>
    %cst_7 = arith.constant 6.400000e+01 : f32
    %12 = vector.broadcast %cst_7 : f32 to vector<2x1xf32>
    %13 = arith.divf %11, %12 : vector<2x1xf32>
    %14 = vector.broadcast %13 : vector<2x1xf32> to vector<2x64xf32>
    %15 = arith.subf %7, %14 : vector<2x64xf32>
    %16 = arith.mulf %15, %15 : vector<2x64xf32>
    %cst_8 = arith.constant dense<0.000000e+00> : vector<2xf32>
    %17 = vector.multi_reduction <add>, %16, %cst_8 [1] : vector<2x64xf32> to vector<2xf32>
    %18 = vector.shape_cast %17 : vector<2xf32> to vector<2x1xf32>
    %cst_9 = arith.constant 6.400000e+01 : f32
    %19 = vector.broadcast %cst_9 : f32 to vector<2x1xf32>
    %20 = arith.divf %18, %19 : vector<2x1xf32>
    %21 = vector.broadcast %13 : vector<2x1xf32> to vector<2x64xf32>
    %22 = arith.subf %7, %21 : vector<2x64xf32>
    %cst_10 = arith.constant 9.99999997E-7 : f32
    %23 = vector.broadcast %cst_10 : f32 to vector<2x1xf32>
    %24 = arith.addf %20, %23 : vector<2x1xf32>
    %25 = math.rsqrt %24 : vector<2x1xf32>
    %26 = vector.broadcast %25 : vector<2x1xf32> to vector<2x64xf32>
    %27 = arith.mulf %22, %26 : vector<2x64xf32>
    %28 = vector.broadcast %8 : vector<1x64xf32> to vector<2x64xf32>
    %29 = arith.mulf %27, %28 : vector<2x64xf32>
    %30 = vector.broadcast %9 : vector<1x64xf32> to vector<2x64xf32>
    %31 = arith.addf %29, %30 : vector<2x64xf32>
    %32 = arith.truncf %31 : vector<2x64xf32> to vector<2x64xbf16>
    %c0_11 = arith.constant 0 : index
    %c0_12 = arith.constant 0 : index
    %33 = vector.load %arg3[%c0_11, %c0_12] : memref<64x32xbf16, #tpu.memory_space<vmem>>, vector<64x32xbf16>
    %cst_13 = arith.constant dense<0.000000e+00> : vector<2x32xf32>
    %34 = tpu.matmul %32, %33, %cst_13 {dimension_numbers = #tpu.dot_dimension_numbers<[1], [0], [0], [1], [0, 0, 1, 1], [], []>} : vector<2x64xbf16>, vector<64x32xbf16>, vector<2x32xf32> -> vector<2x32xf32>
    %35 = vector.broadcast %1 : f32 to vector<2x32xf32>
    %36 = arith.mulf %34, %35 : vector<2x32xf32>
    %37 = arith.mulf %36, %36 : vector<2x32xf32>
    %cst_14 = arith.constant dense<0.000000e+00> : vector<2xf32>
    %38 = vector.multi_reduction <add>, %37, %cst_14 [1] : vector<2x32xf32> to vector<2xf32>
    %39 = vector.shape_cast %38 : vector<2xf32> to vector<2x1xf32>
    %40 = math.sqrt %39 : vector<2x1xf32>
    %41 = vector.broadcast %4 : f32 to vector<2x1xf32>
    %42 = arith.mulf %41, %40 : vector<2x1xf32>
    %cst_15 = arith.constant 9.99999993E-9 : f32
    %43 = vector.broadcast %cst_15 : f32 to vector<2x1xf32>
    %44 = arith.maximumf %42, %43 : vector<2x1xf32>
    %cst_16 = arith.constant 8.000000e+01 : f32
    %45 = vector.broadcast %cst_16 : f32 to vector<2x1xf32>
    %46 = arith.minimumf %44, %45 : vector<2x1xf32>
    %47 = math.exp %46 : vector<2x1xf32>
    %cst_17 = arith.constant 0.000000e+00 : f32
    %48 = vector.broadcast %cst_17 : f32 to vector<2x1xf32>
    %49 = arith.subf %48, %46 : vector<2x1xf32>
    %50 = math.exp %49 : vector<2x1xf32>
    %51 = arith.subf %47, %50 : vector<2x1xf32>
    %cst_18 = arith.constant 5.000000e-01 : f32
    %52 = vector.broadcast %cst_18 : f32 to vector<2x1xf32>
    %53 = arith.mulf %52, %51 : vector<2x1xf32>
    %54 = vector.broadcast %53 : vector<2x1xf32> to vector<2x32xf32>
    %55 = arith.mulf %54, %36 : vector<2x32xf32>
    %56 = vector.broadcast %44 : vector<2x1xf32> to vector<2x32xf32>
    %57 = arith.divf %55, %56 : vector<2x32xf32>
    %c0_19 = arith.constant 0 : index
    %c0_20 = arith.constant 0 : index
    %58 = vector.load %arg8[%c0_19, %c0_20] : memref<2x32xf32, #tpu.memory_space<vmem>>, vector<2x32xf32>
    tpu.vector_store %arg8[%c0_19, %c0_20], %57 {strides = array<i32>} : memref<2x32xf32, #tpu.memory_space<vmem>>, vector<2x32xf32>,
    %59 = arith.truncf %57 : vector<2x32xf32> to vector<2x32xbf16>
    %c0_21 = arith.constant 0 : index
    %c0_22 = arith.constant 0 : index
    %60 = vector.load %arg5[%c0_21, %c0_22] : memref<32x128xbf16, #tpu.memory_space<vmem>>, vector<32x128xbf16>
    %cst_23 = arith.constant dense<0.000000e+00> : vector<2x128xf32>
    %61 = tpu.matmul %59, %60, %cst_23 {dimension_numbers = #tpu.dot_dimension_numbers<[1], [0], [0], [1], [0, 0, 1, 1], [], []>} : vector<2x32xbf16>, vector<32x128xbf16>, vector<2x128xf32> -> vector<2x128xf32>
    %c0_24 = arith.constant 0 : index
    %c0_25 = arith.constant 0 : index
    %62 = vector.load %arg6[%c0_24, %c0_25] : memref<1x128xf32, #tpu.memory_space<vmem>>, vector<1x128xf32>
    %63 = vector.broadcast %62 : vector<1x128xf32> to vector<2x128xf32>
    %64 = arith.addf %61, %63 : vector<2x128xf32>
    %c0_26 = arith.constant 0 : index
    %c0_27 = arith.constant 0 : index
    %65 = vector.load %arg7[%c0_26, %c0_27] : memref<2x128xf32, #tpu.memory_space<vmem>>, vector<2x128xf32>
    tpu.vector_store %arg7[%c0_26, %c0_27], %64 {strides = array<i32>} : memref<2x128xf32, #tpu.memory_space<vmem>>, vector<2x128xf32>,
    return
  }
}

module attributes {stable_mosaic.version = 11 : i64} {
  func.func @stack_kernel(%arg0: i32, %arg1: i32, %arg2: memref<1x8x64xf32, #tpu.memory_space<vmem>>, %arg3: memref<1x1x64xf32, #tpu.memory_space<vmem>>, %arg4: memref<1x1x64xf32, #tpu.memory_space<vmem>>, %arg5: memref<1x64x64xbf16, #tpu.memory_space<vmem>>, %arg6: memref<1x1x64xf32, #tpu.memory_space<vmem>>, %arg7: memref<1x64x64xbf16, #tpu.memory_space<vmem>>, %arg8: memref<1x1x64xf32, #tpu.memory_space<vmem>>, %arg9: memref<1x64x64xbf16, #tpu.memory_space<vmem>>, %arg10: memref<1x1x64xf32, #tpu.memory_space<vmem>>, %arg11: memref<1x64x64xbf16, #tpu.memory_space<vmem>>, %arg12: memref<1x1x64xf32, #tpu.memory_space<vmem>>, %arg13: memref<1x1x64xf32, #tpu.memory_space<vmem>>, %arg14: memref<1x1x64xf32, #tpu.memory_space<vmem>>, %arg15: memref<1x64x256xbf16, #tpu.memory_space<vmem>>, %arg16: memref<1x1x256xf32, #tpu.memory_space<vmem>>, %arg17: memref<1x256x64xbf16, #tpu.memory_space<vmem>>, %arg18: memref<1x1x64xf32, #tpu.memory_space<vmem>>, %arg19: memref<1x8x64xf32, #tpu.memory_space<vmem>>) attributes {dimension_semantics = [#tpu.dimension_semantics<parallel>, #tpu.dimension_semantics<arbitrary>], iteration_bounds = array<i64: 2, 2>, scalar_prefetch = 0 : i64, scratch_operands = 0 : i64, tpu.core_type = #tpu.core_type<tc>, window_params = [{transform_indices = @transform_0, window_bounds = array<i64: 1, 8, 64>}, {transform_indices = @transform_1, window_bounds = array<i64: 1, 1, 64>}, {transform_indices = @transform_2, window_bounds = array<i64: 1, 1, 64>}, {transform_indices = @transform_3, window_bounds = array<i64: 1, 64, 64>}, {transform_indices = @transform_4, window_bounds = array<i64: 1, 1, 64>}, {transform_indices = @transform_5, window_bounds = array<i64: 1, 64, 64>}, {transform_indices = @transform_6, window_bounds = array<i64: 1, 1, 64>}, {transform_indices = @transform_7, window_bounds = array<i64: 1, 64, 64>}, {transform_indices = @transform_8, window_bounds = array<i64: 1, 1, 64>}, {transform_indices = @transform_9, window_bounds = array<i64: 1, 64, 64>}, {transform_indices = @transform_10, window_bounds = array<i64: 1, 1, 64>}, {transform_indices = @transform_11, window_bounds = array<i64: 1, 1, 64>}, {transform_indices = @transform_12, window_bounds = array<i64: 1, 1, 64>}, {transform_indices = @transform_13, window_bounds = array<i64: 1, 64, 256>}, {transform_indices = @transform_14, window_bounds = array<i64: 1, 1, 256>}, {transform_indices = @transform_15, window_bounds = array<i64: 1, 256, 64>}, {transform_indices = @transform_16, window_bounds = array<i64: 1, 1, 64>}, {transform_indices = @transform_17, window_bounds = array<i64: 1, 8, 64>}]} {
    %c0_i32 = arith.constant 0 : i32
    %0 = arith.cmpi eq, %arg1, %c0_i32 : i32
    %1 = arith.extui %0 : i1 to i32
    %c0_i32_0 = arith.constant 0 : i32
    %2 = arith.cmpi ne, %1, %c0_i32_0 : i32
    scf.if %2 {
      %c0_93 = arith.constant 0 : index
      %c0_94 = arith.constant 0 : index
      %c0_95 = arith.constant 0 : index
      %213 = vector.load %arg2[%c0_93, %c0_94, %c0_95] : memref<1x8x64xf32, #tpu.memory_space<vmem>>, vector<1x8x64xf32>
      %c0_96 = arith.constant 0 : index
      %c0_97 = arith.constant 0 : index
      %c0_98 = arith.constant 0 : index
      %214 = vector.load %arg19[%c0_96, %c0_97, %c0_98] : memref<1x8x64xf32, #tpu.memory_space<vmem>>, vector<1x8x64xf32>
      tpu.vector_store %arg19[%c0_96, %c0_97, %c0_98], %213 {strides = array<i32>} : memref<1x8x64xf32, #tpu.memory_space<vmem>>, vector<1x8x64xf32>,
    } else {
    }
    %c0 = arith.constant 0 : index
    %c0_1 = arith.constant 0 : index
    %c0_2 = arith.constant 0 : index
    %3 = vector.load %arg19[%c0, %c0_1, %c0_2] : memref<1x8x64xf32, #tpu.memory_space<vmem>>, vector<1x8x64xf32>
    %4 = vector.shape_cast %3 : vector<1x8x64xf32> to vector<8x64xf32>
    %c0_3 = arith.constant 0 : index
    %c0_4 = arith.constant 0 : index
    %c0_5 = arith.constant 0 : index
    %5 = vector.load %arg3[%c0_3, %c0_4, %c0_5] : memref<1x1x64xf32, #tpu.memory_space<vmem>>, vector<1x1x64xf32>
    %6 = vector.shape_cast %5 : vector<1x1x64xf32> to vector<1x64xf32>
    %c0_6 = arith.constant 0 : index
    %c0_7 = arith.constant 0 : index
    %c0_8 = arith.constant 0 : index
    %7 = vector.load %arg4[%c0_6, %c0_7, %c0_8] : memref<1x1x64xf32, #tpu.memory_space<vmem>>, vector<1x1x64xf32>
    %8 = vector.shape_cast %7 : vector<1x1x64xf32> to vector<1x64xf32>
    %cst = arith.constant dense<0.000000e+00> : vector<8xf32>
    %9 = vector.multi_reduction <add>, %4, %cst [1] : vector<8x64xf32> to vector<8xf32>
    %10 = vector.shape_cast %9 : vector<8xf32> to vector<8x1xf32>
    %cst_9 = arith.constant 6.400000e+01 : f32
    %11 = vector.broadcast %cst_9 : f32 to vector<8x1xf32>
    %12 = arith.divf %10, %11 : vector<8x1xf32>
    %13 = vector.broadcast %12 : vector<8x1xf32> to vector<8x64xf32>
    %14 = arith.subf %4, %13 : vector<8x64xf32>
    %15 = arith.mulf %14, %14 : vector<8x64xf32>
    %cst_10 = arith.constant dense<0.000000e+00> : vector<8xf32>
    %16 = vector.multi_reduction <add>, %15, %cst_10 [1] : vector<8x64xf32> to vector<8xf32>
    %17 = vector.shape_cast %16 : vector<8xf32> to vector<8x1xf32>
    %cst_11 = arith.constant 6.400000e+01 : f32
    %18 = vector.broadcast %cst_11 : f32 to vector<8x1xf32>
    %19 = arith.divf %17, %18 : vector<8x1xf32>
    %20 = vector.broadcast %12 : vector<8x1xf32> to vector<8x64xf32>
    %21 = arith.subf %4, %20 : vector<8x64xf32>
    %cst_12 = arith.constant 9.99999997E-7 : f32
    %22 = vector.broadcast %cst_12 : f32 to vector<8x1xf32>
    %23 = arith.addf %19, %22 : vector<8x1xf32>
    %24 = math.rsqrt %23 : vector<8x1xf32>
    %25 = vector.broadcast %24 : vector<8x1xf32> to vector<8x64xf32>
    %26 = arith.mulf %21, %25 : vector<8x64xf32>
    %27 = vector.broadcast %6 : vector<1x64xf32> to vector<8x64xf32>
    %28 = arith.mulf %26, %27 : vector<8x64xf32>
    %29 = vector.broadcast %8 : vector<1x64xf32> to vector<8x64xf32>
    %30 = arith.addf %28, %29 : vector<8x64xf32>
    %31 = arith.truncf %30 : vector<8x64xf32> to vector<8x64xbf16>
    %c0_13 = arith.constant 0 : index
    %c0_14 = arith.constant 0 : index
    %c0_15 = arith.constant 0 : index
    %32 = vector.load %arg5[%c0_13, %c0_14, %c0_15] : memref<1x64x64xbf16, #tpu.memory_space<vmem>>, vector<1x64x64xbf16>
    %33 = vector.shape_cast %32 : vector<1x64x64xbf16> to vector<64x64xbf16>
    %cst_16 = arith.constant dense<0.000000e+00> : vector<8x64xf32>
    %34 = tpu.matmul %31, %33, %cst_16 {dimension_numbers = #tpu.dot_dimension_numbers<[1], [0], [0], [1], [0, 0, 1, 1], [], []>} : vector<8x64xbf16>, vector<64x64xbf16>, vector<8x64xf32> -> vector<8x64xf32>
    %c0_17 = arith.constant 0 : index
    %c0_18 = arith.constant 0 : index
    %c0_19 = arith.constant 0 : index
    %35 = vector.load %arg6[%c0_17, %c0_18, %c0_19] : memref<1x1x64xf32, #tpu.memory_space<vmem>>, vector<1x1x64xf32>
    %36 = vector.shape_cast %35 : vector<1x1x64xf32> to vector<1x64xf32>
    %37 = vector.broadcast %36 : vector<1x64xf32> to vector<8x64xf32>
    %38 = arith.addf %34, %37 : vector<8x64xf32>
    %c0_20 = arith.constant 0 : index
    %c0_21 = arith.constant 0 : index
    %c0_22 = arith.constant 0 : index
    %39 = vector.load %arg7[%c0_20, %c0_21, %c0_22] : memref<1x64x64xbf16, #tpu.memory_space<vmem>>, vector<1x64x64xbf16>
    %40 = vector.shape_cast %39 : vector<1x64x64xbf16> to vector<64x64xbf16>
    %cst_23 = arith.constant dense<0.000000e+00> : vector<8x64xf32>
    %41 = tpu.matmul %31, %40, %cst_23 {dimension_numbers = #tpu.dot_dimension_numbers<[1], [0], [0], [1], [0, 0, 1, 1], [], []>} : vector<8x64xbf16>, vector<64x64xbf16>, vector<8x64xf32> -> vector<8x64xf32>
    %c0_24 = arith.constant 0 : index
    %c0_25 = arith.constant 0 : index
    %c0_26 = arith.constant 0 : index
    %42 = vector.load %arg8[%c0_24, %c0_25, %c0_26] : memref<1x1x64xf32, #tpu.memory_space<vmem>>, vector<1x1x64xf32>
    %43 = vector.shape_cast %42 : vector<1x1x64xf32> to vector<1x64xf32>
    %44 = vector.broadcast %43 : vector<1x64xf32> to vector<8x64xf32>
    %45 = arith.addf %41, %44 : vector<8x64xf32>
    %c0_27 = arith.constant 0 : index
    %c0_28 = arith.constant 0 : index
    %c0_29 = arith.constant 0 : index
    %46 = vector.load %arg9[%c0_27, %c0_28, %c0_29] : memref<1x64x64xbf16, #tpu.memory_space<vmem>>, vector<1x64x64xbf16>
    %47 = vector.shape_cast %46 : vector<1x64x64xbf16> to vector<64x64xbf16>
    %cst_30 = arith.constant dense<0.000000e+00> : vector<8x64xf32>
    %48 = tpu.matmul %31, %47, %cst_30 {dimension_numbers = #tpu.dot_dimension_numbers<[1], [0], [0], [1], [0, 0, 1, 1], [], []>} : vector<8x64xbf16>, vector<64x64xbf16>, vector<8x64xf32> -> vector<8x64xf32>
    %c0_31 = arith.constant 0 : index
    %c0_32 = arith.constant 0 : index
    %c0_33 = arith.constant 0 : index
    %49 = vector.load %arg10[%c0_31, %c0_32, %c0_33] : memref<1x1x64xf32, #tpu.memory_space<vmem>>, vector<1x1x64xf32>
    %50 = vector.shape_cast %49 : vector<1x1x64xf32> to vector<1x64xf32>
    %51 = vector.broadcast %50 : vector<1x64xf32> to vector<8x64xf32>
    %52 = arith.addf %48, %51 : vector<8x64xf32>
    %53 = tpu.iota {dimensions = array<i32: 1>} : vector<1x8xi32>
    %c5_i32 = arith.constant 5 : i32
    %54 = vector.broadcast %c5_i32 : i32 to vector<1x8xi32>
    %55 = arith.cmpi slt, %53, %54 : vector<1x8xi32>
    %56 = vector.extract_strided_slice %38 {offsets = [0, 0], sizes = [8, 16], strides = [1, 1]} : vector<8x64xf32> to vector<8x16xf32>
    %57 = arith.truncf %56 : vector<8x16xf32> to vector<8x16xbf16>
    %58 = vector.extract_strided_slice %45 {offsets = [0, 0], sizes = [8, 16], strides = [1, 1]} : vector<8x64xf32> to vector<8x16xf32>
    %59 = arith.truncf %58 : vector<8x16xf32> to vector<8x16xbf16>
    %60 = vector.extract_strided_slice %52 {offsets = [0, 0], sizes = [8, 16], strides = [1, 1]} : vector<8x64xf32> to vector<8x16xf32>
    %61 = arith.truncf %60 : vector<8x16xf32> to vector<8x16xbf16>
    %cst_34 = arith.constant dense<0.000000e+00> : vector<8x8xf32>
    %62 = tpu.matmul %57, %59, %cst_34 {dimension_numbers = #tpu.dot_dimension_numbers<[1], [1], [0], [0], [0, 0, 1, 0], [], []>} : vector<8x16xbf16>, vector<8x16xbf16>, vector<8x8xf32> -> vector<8x8xf32>
    %cst_35 = arith.constant -1.000000e+30 : f32
    %63 = vector.shape_cast %55 : vector<1x8xi1> to vector<1x8xi1>
    %64 = vector.broadcast %63 : vector<1x8xi1> to vector<8x8xi1>
    %65 = vector.broadcast %cst_35 : f32 to vector<8x8xf32>
    %66 = arith.select %64, %62, %65 : vector<8x8xi1>, vector<8x8xf32>
    %cst_36 = arith.constant dense<0xFF800000> : vector<8xf32>
    %67 = vector.multi_reduction <maximumf>, %66, %cst_36 [1] : vector<8x8xf32> to vector<8xf32>
    %68 = vector.shape_cast %67 : vector<8xf32> to vector<8x1xf32>
    %69 = vector.broadcast %68 : vector<8x1xf32> to vector<8x8xf32>
    %70 = arith.subf %66, %69 : vector<8x8xf32>
    %71 = math.exp %70 : vector<8x8xf32>
    %cst_37 = arith.constant dense<0.000000e+00> : vector<8xf32>
    %72 = vector.multi_reduction <add>, %71, %cst_37 [1] : vector<8x8xf32> to vector<8xf32>
    %73 = vector.shape_cast %72 : vector<8xf32> to vector<8x1xf32>
    %74 = vector.broadcast %73 : vector<8x1xf32> to vector<8x8xf32>
    %75 = arith.divf %71, %74 : vector<8x8xf32>
    %76 = arith.truncf %75 : vector<8x8xf32> to vector<8x8xbf16>
    %cst_38 = arith.constant dense<0.000000e+00> : vector<8x16xf32>
    %77 = tpu.matmul %76, %61, %cst_38 {dimension_numbers = #tpu.dot_dimension_numbers<[1], [0], [0], [1], [0, 0, 1, 1], [], []>} : vector<8x8xbf16>, vector<8x16xbf16>, vector<8x16xf32> -> vector<8x16xf32>
    %78 = vector.extract_strided_slice %38 {offsets = [0, 16], sizes = [8, 16], strides = [1, 1]} : vector<8x64xf32> to vector<8x16xf32>
    %79 = arith.truncf %78 : vector<8x16xf32> to vector<8x16xbf16>
    %80 = vector.extract_strided_slice %45 {offsets = [0, 16], sizes = [8, 16], strides = [1, 1]} : vector<8x64xf32> to vector<8x16xf32>
    %81 = arith.truncf %80 : vector<8x16xf32> to vector<8x16xbf16>
    %82 = vector.extract_strided_slice %52 {offsets = [0, 16], sizes = [8, 16], strides = [1, 1]} : vector<8x64xf32> to vector<8x16xf32>
    %83 = arith.truncf %82 : vector<8x16xf32> to vector<8x16xbf16>
    %cst_39 = arith.constant dense<0.000000e+00> : vector<8x8xf32>
    %84 = tpu.matmul %79, %81, %cst_39 {dimension_numbers = #tpu.dot_dimension_numbers<[1], [1], [0], [0], [0, 0, 1, 0], [], []>} : vector<8x16xbf16>, vector<8x16xbf16>, vector<8x8xf32> -> vector<8x8xf32>
    %cst_40 = arith.constant -1.000000e+30 : f32
    %85 = vector.shape_cast %55 : vector<1x8xi1> to vector<1x8xi1>
    %86 = vector.broadcast %85 : vector<1x8xi1> to vector<8x8xi1>
    %87 = vector.broadcast %cst_40 : f32 to vector<8x8xf32>
    %88 = arith.select %86, %84, %87 : vector<8x8xi1>, vector<8x8xf32>
    %cst_41 = arith.constant dense<0xFF800000> : vector<8xf32>
    %89 = vector.multi_reduction <maximumf>, %88, %cst_41 [1] : vector<8x8xf32> to vector<8xf32>
    %90 = vector.shape_cast %89 : vector<8xf32> to vector<8x1xf32>
    %91 = vector.broadcast %90 : vector<8x1xf32> to vector<8x8xf32>
    %92 = arith.subf %88, %91 : vector<8x8xf32>
    %93 = math.exp %92 : vector<8x8xf32>
    %cst_42 = arith.constant dense<0.000000e+00> : vector<8xf32>
    %94 = vector.multi_reduction <add>, %93, %cst_42 [1] : vector<8x8xf32> to vector<8xf32>
    %95 = vector.shape_cast %94 : vector<8xf32> to vector<8x1xf32>
    %96 = vector.broadcast %95 : vector<8x1xf32> to vector<8x8xf32>
    %97 = arith.divf %93, %96 : vector<8x8xf32>
    %98 = arith.truncf %97 : vector<8x8xf32> to vector<8x8xbf16>
    %cst_43 = arith.constant dense<0.000000e+00> : vector<8x16xf32>
    %99 = tpu.matmul %98, %83, %cst_43 {dimension_numbers = #tpu.dot_dimension_numbers<[1], [0], [0], [1], [0, 0, 1, 1], [], []>} : vector<8x8xbf16>, vector<8x16xbf16>, vector<8x16xf32> -> vector<8x16xf32>
    %100 = vector.extract_strided_slice %38 {offsets = [0, 32], sizes = [8, 16], strides = [1, 1]} : vector<8x64xf32> to vector<8x16xf32>
    %101 = arith.truncf %100 : vector<8x16xf32> to vector<8x16xbf16>
    %102 = vector.extract_strided_slice %45 {offsets = [0, 32], sizes = [8, 16], strides = [1, 1]} : vector<8x64xf32> to vector<8x16xf32>
    %103 = arith.truncf %102 : vector<8x16xf32> to vector<8x16xbf16>
    %104 = vector.extract_strided_slice %52 {offsets = [0, 32], sizes = [8, 16], strides = [1, 1]} : vector<8x64xf32> to vector<8x16xf32>
    %105 = arith.truncf %104 : vector<8x16xf32> to vector<8x16xbf16>
    %cst_44 = arith.constant dense<0.000000e+00> : vector<8x8xf32>
    %106 = tpu.matmul %101, %103, %cst_44 {dimension_numbers = #tpu.dot_dimension_numbers<[1], [1], [0], [0], [0, 0, 1, 0], [], []>} : vector<8x16xbf16>, vector<8x16xbf16>, vector<8x8xf32> -> vector<8x8xf32>
    %cst_45 = arith.constant -1.000000e+30 : f32
    %107 = vector.shape_cast %55 : vector<1x8xi1> to vector<1x8xi1>
    %108 = vector.broadcast %107 : vector<1x8xi1> to vector<8x8xi1>
    %109 = vector.broadcast %cst_45 : f32 to vector<8x8xf32>
    %110 = arith.select %108, %106, %109 : vector<8x8xi1>, vector<8x8xf32>
    %cst_46 = arith.constant dense<0xFF800000> : vector<8xf32>
    %111 = vector.multi_reduction <maximumf>, %110, %cst_46 [1] : vector<8x8xf32> to vector<8xf32>
    %112 = vector.shape_cast %111 : vector<8xf32> to vector<8x1xf32>
    %113 = vector.broadcast %112 : vector<8x1xf32> to vector<8x8xf32>
    %114 = arith.subf %110, %113 : vector<8x8xf32>
    %115 = math.exp %114 : vector<8x8xf32>
    %cst_47 = arith.constant dense<0.000000e+00> : vector<8xf32>
    %116 = vector.multi_reduction <add>, %115, %cst_47 [1] : vector<8x8xf32> to vector<8xf32>
    %117 = vector.shape_cast %116 : vector<8xf32> to vector<8x1xf32>
    %118 = vector.broadcast %117 : vector<8x1xf32> to vector<8x8xf32>
    %119 = arith.divf %115, %118 : vector<8x8xf32>
    %120 = arith.truncf %119 : vector<8x8xf32> to vector<8x8xbf16>
    %cst_48 = arith.constant dense<0.000000e+00> : vector<8x16xf32>
    %121 = tpu.matmul %120, %105, %cst_48 {dimension_numbers = #tpu.dot_dimension_numbers<[1], [0], [0], [1], [0, 0, 1, 1], [], []>} : vector<8x8xbf16>, vector<8x16xbf16>, vector<8x16xf32> -> vector<8x16xf32>
    %122 = vector.extract_strided_slice %38 {offsets = [0, 48], sizes = [8, 16], strides = [1, 1]} : vector<8x64xf32> to vector<8x16xf32>
    %123 = arith.truncf %122 : vector<8x16xf32> to vector<8x16xbf16>
    %124 = vector.extract_strided_slice %45 {offsets = [0, 48], sizes = [8, 16], strides = [1, 1]} : vector<8x64xf32> to vector<8x16xf32>
    %125 = arith.truncf %124 : vector<8x16xf32> to vector<8x16xbf16>
    %126 = vector.extract_strided_slice %52 {offsets = [0, 48], sizes = [8, 16], strides = [1, 1]} : vector<8x64xf32> to vector<8x16xf32>
    %127 = arith.truncf %126 : vector<8x16xf32> to vector<8x16xbf16>
    %cst_49 = arith.constant dense<0.000000e+00> : vector<8x8xf32>
    %128 = tpu.matmul %123, %125, %cst_49 {dimension_numbers = #tpu.dot_dimension_numbers<[1], [1], [0], [0], [0, 0, 1, 0], [], []>} : vector<8x16xbf16>, vector<8x16xbf16>, vector<8x8xf32> -> vector<8x8xf32>
    %cst_50 = arith.constant -1.000000e+30 : f32
    %129 = vector.shape_cast %55 : vector<1x8xi1> to vector<1x8xi1>
    %130 = vector.broadcast %129 : vector<1x8xi1> to vector<8x8xi1>
    %131 = vector.broadcast %cst_50 : f32 to vector<8x8xf32>
    %132 = arith.select %130, %128, %131 : vector<8x8xi1>, vector<8x8xf32>
    %cst_51 = arith.constant dense<0xFF800000> : vector<8xf32>
    %133 = vector.multi_reduction <maximumf>, %132, %cst_51 [1] : vector<8x8xf32> to vector<8xf32>
    %134 = vector.shape_cast %133 : vector<8xf32> to vector<8x1xf32>
    %135 = vector.broadcast %134 : vector<8x1xf32> to vector<8x8xf32>
    %136 = arith.subf %132, %135 : vector<8x8xf32>
    %137 = math.exp %136 : vector<8x8xf32>
    %cst_52 = arith.constant dense<0.000000e+00> : vector<8xf32>
    %138 = vector.multi_reduction <add>, %137, %cst_52 [1] : vector<8x8xf32> to vector<8xf32>
    %139 = vector.shape_cast %138 : vector<8xf32> to vector<8x1xf32>
    %140 = vector.broadcast %139 : vector<8x1xf32> to vector<8x8xf32>
    %141 = arith.divf %137, %140 : vector<8x8xf32>
    %142 = arith.truncf %141 : vector<8x8xf32> to vector<8x8xbf16>
    %cst_53 = arith.constant dense<0.000000e+00> : vector<8x16xf32>
    %143 = tpu.matmul %142, %127, %cst_53 {dimension_numbers = #tpu.dot_dimension_numbers<[1], [0], [0], [1], [0, 0, 1, 1], [], []>} : vector<8x8xbf16>, vector<8x16xbf16>, vector<8x16xf32> -> vector<8x16xf32>
    %144 = tpu.concatenate %77, %99, %121, %143 in 1 : vector<8x16xf32>, vector<8x16xf32>, vector<8x16xf32>, vector<8x16xf32> -> vector<8x64xf32>
    %145 = arith.truncf %144 : vector<8x64xf32> to vector<8x64xbf16>
    %c0_54 = arith.constant 0 : index
    %c0_55 = arith.constant 0 : index
    %c0_56 = arith.constant 0 : index
    %146 = vector.load %arg11[%c0_54, %c0_55, %c0_56] : memref<1x64x64xbf16, #tpu.memory_space<vmem>>, vector<1x64x64xbf16>
    %147 = vector.shape_cast %146 : vector<1x64x64xbf16> to vector<64x64xbf16>
    %cst_57 = arith.constant dense<0.000000e+00> : vector<8x64xf32>
    %148 = tpu.matmul %145, %147, %cst_57 {dimension_numbers = #tpu.dot_dimension_numbers<[1], [0], [0], [1], [0, 0, 1, 1], [], []>} : vector<8x64xbf16>, vector<64x64xbf16>, vector<8x64xf32> -> vector<8x64xf32>
    %149 = arith.addf %4, %148 : vector<8x64xf32>
    %c0_58 = arith.constant 0 : index
    %c0_59 = arith.constant 0 : index
    %c0_60 = arith.constant 0 : index
    %150 = vector.load %arg12[%c0_58, %c0_59, %c0_60] : memref<1x1x64xf32, #tpu.memory_space<vmem>>, vector<1x1x64xf32>
    %151 = vector.shape_cast %150 : vector<1x1x64xf32> to vector<1x64xf32>
    %152 = vector.broadcast %151 : vector<1x64xf32> to vector<8x64xf32>
    %153 = arith.addf %149, %152 : vector<8x64xf32>
    %c0_61 = arith.constant 0 : index
    %c0_62 = arith.constant 0 : index
    %c0_63 = arith.constant 0 : index
    %154 = vector.load %arg13[%c0_61, %c0_62, %c0_63] : memref<1x1x64xf32, #tpu.memory_space<vmem>>, vector<1x1x64xf32>
    %155 = vector.shape_cast %154 : vector<1x1x64xf32> to vector<1x64xf32>
    %c0_64 = arith.constant 0 : index
    %c0_65 = arith.constant 0 : index
    %c0_66 = arith.constant 0 : index
    %156 = vector.load %arg14[%c0_64, %c0_65, %c0_66] : memref<1x1x64xf32, #tpu.memory_space<vmem>>, vector<1x1x64xf32>
    %157 = vector.shape_cast %156 : vector<1x1x64xf32> to vector<1x64xf32>
    %cst_67 = arith.constant dense<0.000000e+00> : vector<8xf32>
    %158 = vector.multi_reduction <add>, %153, %cst_67 [1] : vector<8x64xf32> to vector<8xf32>
    %159 = vector.shape_cast %158 : vector<8xf32> to vector<8x1xf32>
    %cst_68 = arith.constant 6.400000e+01 : f32
    %160 = vector.broadcast %cst_68 : f32 to vector<8x1xf32>
    %161 = arith.divf %159, %160 : vector<8x1xf32>
    %162 = vector.broadcast %161 : vector<8x1xf32> to vector<8x64xf32>
    %163 = arith.subf %153, %162 : vector<8x64xf32>
    %164 = arith.mulf %163, %163 : vector<8x64xf32>
    %cst_69 = arith.constant dense<0.000000e+00> : vector<8xf32>
    %165 = vector.multi_reduction <add>, %164, %cst_69 [1] : vector<8x64xf32> to vector<8xf32>
    %166 = vector.shape_cast %165 : vector<8xf32> to vector<8x1xf32>
    %cst_70 = arith.constant 6.400000e+01 : f32
    %167 = vector.broadcast %cst_70 : f32 to vector<8x1xf32>
    %168 = arith.divf %166, %167 : vector<8x1xf32>
    %169 = vector.broadcast %161 : vector<8x1xf32> to vector<8x64xf32>
    %170 = arith.subf %153, %169 : vector<8x64xf32>
    %cst_71 = arith.constant 9.99999997E-7 : f32
    %171 = vector.broadcast %cst_71 : f32 to vector<8x1xf32>
    %172 = arith.addf %168, %171 : vector<8x1xf32>
    %173 = math.rsqrt %172 : vector<8x1xf32>
    %174 = vector.broadcast %173 : vector<8x1xf32> to vector<8x64xf32>
    %175 = arith.mulf %170, %174 : vector<8x64xf32>
    %176 = vector.broadcast %155 : vector<1x64xf32> to vector<8x64xf32>
    %177 = arith.mulf %175, %176 : vector<8x64xf32>
    %178 = vector.broadcast %157 : vector<1x64xf32> to vector<8x64xf32>
    %179 = arith.addf %177, %178 : vector<8x64xf32>
    %180 = arith.truncf %179 : vector<8x64xf32> to vector<8x64xbf16>
    %c0_72 = arith.constant 0 : index
    %c0_73 = arith.constant 0 : index
    %c0_74 = arith.constant 0 : index
    %181 = vector.load %arg15[%c0_72, %c0_73, %c0_74] : memref<1x64x256xbf16, #tpu.memory_space<vmem>>, vector<1x64x256xbf16>
    %182 = vector.shape_cast %181 : vector<1x64x256xbf16> to vector<64x256xbf16>
    %cst_75 = arith.constant dense<0.000000e+00> : vector<8x256xf32>
    %183 = tpu.matmul %180, %182, %cst_75 {dimension_numbers = #tpu.dot_dimension_numbers<[1], [0], [0], [1], [0, 0, 1, 1], [], []>} : vector<8x64xbf16>, vector<64x256xbf16>, vector<8x256xf32> -> vector<8x256xf32>
    %c0_76 = arith.constant 0 : index
    %c0_77 = arith.constant 0 : index
    %c0_78 = arith.constant 0 : index
    %184 = vector.load %arg16[%c0_76, %c0_77, %c0_78] : memref<1x1x256xf32, #tpu.memory_space<vmem>>, vector<1x1x256xf32>
    %185 = vector.shape_cast %184 : vector<1x1x256xf32> to vector<1x256xf32>
    %186 = vector.broadcast %185 : vector<1x256xf32> to vector<8x256xf32>
    %187 = arith.addf %183, %186 : vector<8x256xf32>
    %cst_79 = arith.constant 5.000000e-01 : f32
    %188 = vector.broadcast %cst_79 : f32 to vector<8x256xf32>
    %189 = arith.mulf %188, %187 : vector<8x256xf32>
    %cst_80 = arith.constant 4.471500e-02 : f32
    %190 = vector.broadcast %cst_80 : f32 to vector<8x256xf32>
    %191 = arith.mulf %190, %187 : vector<8x256xf32>
    %192 = arith.mulf %191, %187 : vector<8x256xf32>
    %193 = arith.mulf %192, %187 : vector<8x256xf32>
    %194 = arith.addf %187, %193 : vector<8x256xf32>
    %cst_81 = arith.constant 0.797884583 : f32
    %195 = vector.broadcast %cst_81 : f32 to vector<8x256xf32>
    %196 = arith.mulf %195, %194 : vector<8x256xf32>
    %197 = math.tanh %196 : vector<8x256xf32>
    %cst_82 = arith.constant 1.000000e+00 : f32
    %198 = vector.broadcast %cst_82 : f32 to vector<8x256xf32>
    %199 = arith.addf %198, %197 : vector<8x256xf32>
    %200 = arith.mulf %189, %199 : vector<8x256xf32>
    %201 = arith.truncf %200 : vector<8x256xf32> to vector<8x256xbf16>
    %c0_83 = arith.constant 0 : index
    %c0_84 = arith.constant 0 : index
    %c0_85 = arith.constant 0 : index
    %202 = vector.load %arg17[%c0_83, %c0_84, %c0_85] : memref<1x256x64xbf16, #tpu.memory_space<vmem>>, vector<1x256x64xbf16>
    %203 = vector.shape_cast %202 : vector<1x256x64xbf16> to vector<256x64xbf16>
    %cst_86 = arith.constant dense<0.000000e+00> : vector<8x64xf32>
    %204 = tpu.matmul %201, %203, %cst_86 {dimension_numbers = #tpu.dot_dimension_numbers<[1], [0], [0], [1], [0, 0, 1, 1], [], []>} : vector<8x256xbf16>, vector<256x64xbf16>, vector<8x64xf32> -> vector<8x64xf32>
    %c0_87 = arith.constant 0 : index
    %c0_88 = arith.constant 0 : index
    %c0_89 = arith.constant 0 : index
    %205 = vector.load %arg18[%c0_87, %c0_88, %c0_89] : memref<1x1x64xf32, #tpu.memory_space<vmem>>, vector<1x1x64xf32>
    %206 = vector.shape_cast %205 : vector<1x1x64xf32> to vector<1x64xf32>
    %207 = vector.broadcast %206 : vector<1x64xf32> to vector<8x64xf32>
    %208 = arith.addf %204, %207 : vector<8x64xf32>
    %209 = arith.addf %153, %208 : vector<8x64xf32>
    %c0_90 = arith.constant 0 : index
    %c0_91 = arith.constant 0 : index
    %c0_92 = arith.constant 0 : index
    %210 = vector.load %arg19[%c0_90, %c0_91, %c0_92] : memref<1x8x64xf32, #tpu.memory_space<vmem>>, vector<1x8x64xf32>
    %211 = vector.shape_cast %210 : vector<1x8x64xf32> to vector<8x64xf32>
    %212 = vector.shape_cast %209 : vector<8x64xf32> to vector<1x8x64xf32>
    tpu.vector_store %arg19[%c0_90, %c0_91, %c0_92], %212 {strides = array<i32>} : memref<1x8x64xf32, #tpu.memory_space<vmem>>, vector<1x8x64xf32>,
    return
  }
  func.func @transform_0(%arg0: i32, %arg1: i32) -> (i32, i32, i32) {
    %c0_i32 = arith.constant 0 : i32
    %c0_i32_0 = arith.constant 0 : i32
    %c0_i32_1 = arith.constant 0 : i32
    return %arg0, %c0_i32, %c0_i32_0 : i32, i32, i32
  }
  func.func @transform_1(%arg0: i32, %arg1: i32) -> (i32, i32, i32) {
    %c0_i32 = arith.constant 0 : i32
    %c0_i32_0 = arith.constant 0 : i32
    %c0_i32_1 = arith.constant 0 : i32
    return %arg1, %c0_i32, %c0_i32_0 : i32, i32, i32
  }
  func.func @transform_2(%arg0: i32, %arg1: i32) -> (i32, i32, i32) {
    %c0_i32 = arith.constant 0 : i32
    %c0_i32_0 = arith.constant 0 : i32
    %c0_i32_1 = arith.constant 0 : i32
    return %arg1, %c0_i32, %c0_i32_0 : i32, i32, i32
  }
  func.func @transform_3(%arg0: i32, %arg1: i32) -> (i32, i32, i32) {
    %c0_i32 = arith.constant 0 : i32
    %c0_i32_0 = arith.constant 0 : i32
    %c0_i32_1 = arith.constant 0 : i32
    return %arg1, %c0_i32, %c0_i32_0 : i32, i32, i32
  }
  func.func @transform_4(%arg0: i32, %arg1: i32) -> (i32, i32, i32) {
    %c0_i32 = arith.constant 0 : i32
    %c0_i32_0 = arith.constant 0 : i32
    %c0_i32_1 = arith.constant 0 : i32
    return %arg1, %c0_i32, %c0_i32_0 : i32, i32, i32
  }
  func.func @transform_5(%arg0: i32, %arg1: i32) -> (i32, i32, i32) {
    %c0_i32 = arith.constant 0 : i32
    %c0_i32_0 = arith.constant 0 : i32
    %c0_i32_1 = arith.constant 0 : i32
    return %arg1, %c0_i32, %c0_i32_0 : i32, i32, i32
  }
  func.func @transform_6(%arg0: i32, %arg1: i32) -> (i32, i32, i32) {
    %c0_i32 = arith.constant 0 : i32
    %c0_i32_0 = arith.constant 0 : i32
    %c0_i32_1 = arith.constant 0 : i32
    return %arg1, %c0_i32, %c0_i32_0 : i32, i32, i32
  }
  func.func @transform_7(%arg0: i32, %arg1: i32) -> (i32, i32, i32) {
    %c0_i32 = arith.constant 0 : i32
    %c0_i32_0 = arith.constant 0 : i32
    %c0_i32_1 = arith.constant 0 : i32
    return %arg1, %c0_i32, %c0_i32_0 : i32, i32, i32
  }
  func.func @transform_8(%arg0: i32, %arg1: i32) -> (i32, i32, i32) {
    %c0_i32 = arith.constant 0 : i32
    %c0_i32_0 = arith.constant 0 : i32
    %c0_i32_1 = arith.constant 0 : i32
    return %arg1, %c0_i32, %c0_i32_0 : i32, i32, i32
  }
  func.func @transform_9(%arg0: i32, %arg1: i32) -> (i32, i32, i32) {
    %c0_i32 = arith.constant 0 : i32
    %c0_i32_0 = arith.constant 0 : i32
    %c0_i32_1 = arith.constant 0 : i32
    return %arg1, %c0_i32, %c0_i32_0 : i32, i32, i32
  }
  func.func @transform_10(%arg0: i32, %arg1: i32) -> (i32, i32, i32) {
    %c0_i32 = arith.constant 0 : i32
    %c0_i32_0 = arith.constant 0 : i32
    %c0_i32_1 = arith.constant 0 : i32
    return %arg1, %c0_i32, %c0_i32_0 : i32, i32, i32
  }
  func.func @transform_11(%arg0: i32, %arg1: i32) -> (i32, i32, i32) {
    %c0_i32 = arith.constant 0 : i32
    %c0_i32_0 = arith.constant 0 : i32
    %c0_i32_1 = arith.constant 0 : i32
    return %arg1, %c0_i32, %c0_i32_0 : i32, i32, i32
  }
  func.func @transform_12(%arg0: i32, %arg1: i32) -> (i32, i32, i32) {
    %c0_i32 = arith.constant 0 : i32
    %c0_i32_0 = arith.constant 0 : i32
    %c0_i32_1 = arith.constant 0 : i32
    return %arg1, %c0_i32, %c0_i32_0 : i32, i32, i32
  }
  func.func @transform_13(%arg0: i32, %arg1: i32) -> (i32, i32, i32) {
    %c0_i32 = arith.constant 0 : i32
    %c0_i32_0 = arith.constant 0 : i32
    %c0_i32_1 = arith.constant 0 : i32
    return %arg1, %c0_i32, %c0_i32_0 : i32, i32, i32
  }
  func.func @transform_14(%arg0: i32, %arg1: i32) -> (i32, i32, i32) {
    %c0_i32 = arith.constant 0 : i32
    %c0_i32_0 = arith.constant 0 : i32
    %c0_i32_1 = arith.constant 0 : i32
    return %arg1, %c0_i32, %c0_i32_0 : i32, i32, i32
  }
  func.func @transform_15(%arg0: i32, %arg1: i32) -> (i32, i32, i32) {
    %c0_i32 = arith.constant 0 : i32
    %c0_i32_0 = arith.constant 0 : i32
    %c0_i32_1 = arith.constant 0 : i32
    return %arg1, %c0_i32, %c0_i32_0 : i32, i32, i32
  }
  func.func @transform_16(%arg0: i32, %arg1: i32) -> (i32, i32, i32) {
    %c0_i32 = arith.constant 0 : i32
    %c0_i32_0 = arith.constant 0 : i32
    %c0_i32_1 = arith.constant 0 : i32
    return %arg1, %c0_i32, %c0_i32_0 : i32, i32, i32
  }
  func.func @transform_17(%arg0: i32, %arg1: i32) -> (i32, i32, i32) {
    %c0_i32 = arith.constant 0 : i32
    %c0_i32_0 = arith.constant 0 : i32
    %c0_i32_1 = arith.constant 0 : i32
    return %arg0, %c0_i32, %c0_i32_0 : i32, i32, i32
  }
}

</mosaic_0001>

<bundles_post_ra>
// kernel: meru_forward.3
= control target key start
LH: loop header
LB: loop body
LE: loop exit
PB: predicated region body
PF: predicated region fallthrough
CT: control target
= control target key end

     0   :  { %v275_v1 = vmov 0   ;;  %s375_s0 = inlined_call_operand.vmem [shape: f32[2,4,192], index: 0, kind: input, shape index: {}]   ;;  %s376_s1 = inlined_call_operand.vmem [shape: bf16[192,64], index: 1, kind: input, shape index: {}]   ;;  %s377_s2 = inlined_call_operand.vmem [shape: f32[1,64], index: 2, kind: input, shape index: {}]   ;;  %s378_s3 = inlined_call_operand.vmem [shape: f32[1,64], index: 3, kind: input, shape index: {}]   ;;  %s379_s4 = inlined_call_operand.vmem [shape: f32[4,64], index: 4, kind: input, shape index: {}]   ;;  %s380_s5 = inlined_call_operand.hbm [shape: f32[2,8,64], index: 5, kind: output, shape index: {}]  }
   0x1   :  { %v236_v0 = vld [vmem:[%s376_s1] sm:$0xff]   ;;  %132 = vmatprep.subr.bf16.mxu0 %v275_v1  ;;  %v237_v2 = vld [vmem:[%s376_s1 + $0x8] sm:$0xff]   ;;  %v238_v3 = vld [vmem:[%s376_s1 + $0x10] sm:$0xff]  }
   0x2   :  { %133 = vmatpush1.bf16.msra.mxu0 %v236_v0  ;;  %v239_v4 = vld [vmem:[%s376_s1 + $0x18] sm:$0xff]   ;;  %v250_v5 = vld [vmem:[%s375_s0 + $0x4] ss:$8 sps:$4 sm:$0xff]  }
   0x3   :  { %134 = vmatprep.subr.bf16.mxu0 %v275_v1 }
   0x6   :  { %135 = vmatpush1.bf16.msra.mxu0 %v237_v2 }
   0x7   :  { %136 = vmatprep.subr.bf16.mxu0 %v275_v1 }
   0xa   :  { %137 = vmatpush1.bf16.msra.mxu0 %v238_v3 }
   0xb   :  { %138 = vmatprep.subr.bf16.mxu0 %v275_v1 }
   0xc   :  { %10 = vsyncpa [#allocation3], 0  ;;  %v240_v6 = vld [vmem:[%s376_s1 + $0x20] sm:$0xff]   ;;  %vm128_vm0 = vcmask 523264   ;;  %v31_v7 = vpack.c.bf16 %v250_v5, %v250_v5  ;;  %v241_v8 = vld [vmem:[%s376_s1 + $0x28] sm:$0xff]   ;;  %vm194_vm1 = vcmask 1040384  }
   0xd   :  { %v242_v9 = vld [vmem:[%s376_s1 + $0x30] sm:$0xff]   ;;  %v243_v10 = vld [vmem:[%s376_s1 + $0x38] sm:$0xff]   ;;  %v244_v11 = vld [vmem:[%s376_s1 + $0x40] sm:$0xff]   ;;  %vm197_vm2 = vcmask 1044480  }
   0xe   :  { %139 = vmatpush1.bf16.msra.mxu0 %v239_v4  ;;  %230 = vmatprep.mubr.msk.bf16.mxu0 %vm128_vm0, %v31_v7  ;;  %v245_v12 = vld [vmem:[%s376_s1 + $0x48] sm:$0xff]   ;;  %v246_v13 = vld [vmem:[%s376_s1 + $0x50] sm:$0xff]   ;;  %v247_v15 = vld [vmem:[%s376_s1 + $0x58] sm:$0xff]  }
   0xf   :  { %140 = vmatprep.subr.bf16.mxu0 %v275_v1  ;;  %v248_v14 = vld [vmem:[%s375_s0] ss:$8 sps:$4 sm:$0xff]  }
  0x10   :  { %v30_v16 = vpack.c.bf16 %v248_v14, %v248_v14  ;;  %v231_v17 = vld [vmem:[%s377_s2] ss:$0 sm:$0xff]  ;;  %s276_s2 = smov [#allocation2]  }
  0x11   :  { %v184_v19 = vld [vmem:[%s379_s4] sm:$0xf]  ;;  %s207_s25 = sshll.u32 %s276_s2, 4  ;;  %s208_s25 = int_to_ptr.vmem [resolvable:$true] %s207_s25 }
  0x12   :  { %141 = vmatpush1.bf16.msra.mxu0 %v240_v6  ;;  %v187_v27 = vld [vmem:[%s378_s3] sm:$0x1]  ;;  %s251_s4 = scalar_lea.vmem %s208_s25, 256  ;;  %p256_p1 = scmp.lt.s32.totalorder %s208_s25, %s208_s25 }
  0x13   :  { %142 = vmatprep.subr.bf16.mxu0 %v275_v1  ;;  %p252_p0 = scmp.ne.s32.totalorder %s208_s25, %s251_s4  ;;  %p257_p2 = scmp.lt.s32.totalorder %s251_s4, %s251_s4 }
  0x15   :  { %p258_p3 = por %p257_p2, %p256_p1 }
  0x16   :  { %143 = vmatpush1.bf16.msra.mxu0 %v241_v8 }
  0x17   :  { %144 = vmatprep.subr.bf16.mxu0 %v275_v1  ;;  %p259_p4 = pnand %p258_p3, %p252_p0 }
  0x1a   :  { %145 = vmatpush1.bf16.msra.mxu0 %v242_v9 }
  0x1b   :  { %146 = vmatprep.subr.bf16.mxu0 %v275_v1 }
  0x1e   :  { %147 = vmatpush1.bf16.msra.mxu0 %v243_v10 }
  0x1f   :  { %148 = vmatprep.subr.bf16.mxu0 %v275_v1 }
  0x22   :  { %149 = vmatpush1.bf16.msra.mxu0 %v244_v11 }
  0x23   :  { %150 = vmatprep.subr.bf16.mxu0 %v275_v1 }
  0x26   :  { %151 = vmatpush1.bf16.msra.mxu0 %v245_v12 }
  0x27   :  { %152 = vmatprep.subr.bf16.mxu0 %v275_v1 }
  0x2a   :  { %153 = vmatpush1.bf16.msra.mxu0 %v246_v13 }
  0x2b   :  { %154 = vmatprep.subr.bf16.mxu0 %v275_v1 }
  0x2e   :  { %155 = vmatpush1.bf16.msra.mxu0 %v247_v15 }
  0x31   :  { %165 = vmatmul.mubr.bf16.vlgmr.msra.gmra.mrb[0].mxu0 %v30_v16 }
 0x104   :  { %v166_v18 = vpop.f32.mrb[0].mxu0 }
 0x105   :  { %v173_v20 = vcombine.high %v166_v18, %v166_v18  ;;  %v182_v21 = vadd.f32 %v231_v17, %v166_v18  ;;  %v168_v22 = vpop.f32.mrb[1].mxu0 }
 0x106   :  { %v169_v23 = vpop.f32.mrb[2].mxu0 }
 0x107   :  { %v183_v24 = vadd.f32 %v231_v17, %v173_v20  ;;  %v185_v25 = vadd.f32 %v184_v19, %v182_v21  ;;  %v170_v26 = vpop.f32.mrb[3].mxu0 }
 0x109   :  { %v186_v28 = vadd.f32 %v184_v19, %v183_v24  ;;  %v190_v29 = vrot.slane %v185_v25, 7 }
 0x10b   :  { %v191_v30 = vrot.slane %v186_v28, 7  ;;  %v195_v31 = vsel %vm194_vm1, %v187_v27, %v190_v29 }
 0x10c   :  { %v198_v32 = vsel %vm197_vm2, %v195_v31, 0.0 }
 0x10d   :  { %v196_v33 = vsel %vm194_vm1, %v187_v27, %v191_v30  ;;  %200 = vst.msk [vmem:[#allocation2] sm:$0xff] %vm128_vm0, %v198_v32 }
 0x10e   :  { %v199_v34 = vsel %vm197_vm2, %v196_v33, 0.0 }
 0x10f   :  { %201 = vst.msk [vmem:[#allocation2 + $0x8] sm:$0xff] %vm128_vm0, %v199_v34 }
 0x110   :  { %262 = shalt.err (!%p259_p4)
}
 0x111   :  { %s263_s27 = scalar_lea.hbm %s380_s5, 256 }
 0x112   :  { %p264_p5 = scmp.ne.s32.totalorder %s380_s5, %s263_s27  ;;  %p267_p6 = scmp.lt.u32.totalorder %s263_s27, %s380_s5 }
 0x114   :  { %p269_p7 = pnand %p267_p6, %p264_p5 }
 0x116   :  { %272 = shalt.err (!%p269_p7)
}
 0x117   :  { %s277_s7 = smov 128   ;;  %s278_s8 = smov 8  }
 0x118   :  { %213 = dma.vmem_to_hbm [thread:$0]  %s208_s25, 256, %s380_s5, [#allocation3], %s277_s7, %s277_s7, %s278_s8  }
 0x119   :  { %273 = dma.done.wait [#allocation3], 256  }
 0x11a   :  { %274 = vsyncadd [#allocation3], 4294967040 }
 0x11b   :  { %217 = vsyncpa [#allocation3], 1 }

// kernel: meru_forward.5
= control target key start
LH: loop header
LB: loop body
LE: loop exit
PB: predicated region body
PF: predicated region fallthrough
CT: control target
= control target key end

     0   :  { %14 = vsyncpa [#allocation4], 0  ;;  %s544_s0 = inlined_call_operand.vmem [shape: f32[2,8,64], index: 0, kind: input, shape index: {}]   ;;  %s545_s1 = inlined_call_operand.vmem [shape: f32[1,64], index: 1, kind: input, shape index: {}]   ;;  %s546_s2 = inlined_call_operand.vmem [shape: f32[1,64], index: 2, kind: input, shape index: {}]   ;;  %s547_s3 = inlined_call_operand.vmem [shape: bf16[64,32], index: 3, kind: input, shape index: {}]   ;;  %s548_s4 = inlined_call_operand.vmem [shape: f32[2], index: 4, kind: input, shape index: {}]   ;;  %s549_s5 = inlined_call_operand.vmem [shape: bf16[32,128], index: 5, kind: input, shape index: {}]   ;;  %s550_s6 = inlined_call_operand.vmem [shape: f32[1,128], index: 6, kind: input, shape index: {}]   ;;  %s551_s7 = inlined_call_operand.vmem [shape: f32[2,128], index: 7, kind: output, shape index: {0}]   ;;  %s552_s8 = inlined_call_operand.hbm [shape: f32[2,32], index: 8, kind: output, shape index: {1}]  }
   0x1   :  { %15 = vsyncpa [#allocation3], 0  ;;  %s30_s29 = sshll.u32 %s548_s4, 4  ;;  %s31_s29 = int_to_ptr.vmem [resolvable:$true] %s30_s29 }
   0x2   :  { %s393_s30 = scalar_lea.vmem %s31_s29, 16  ;;  %p398_p1 = scmp.lt.s32.totalorder %s31_s29, %s31_s29 }
   0x3   :  { %p394_p0 = scmp.ne.s32.totalorder %s31_s29, %s393_s30  ;;  %p399_p2 = scmp.lt.s32.totalorder %s393_s30, %s393_s30 }
   0x5   :  { %p400_p3 = por %p399_p2, %p398_p1 }
   0x7   :  { %p401_p4 = pnand %p400_p3, %p394_p0 }
   0x9   :  { %404 = shalt.err (!%p401_p4)
}
   0xa   :  { %s431_s9 = smov [#allocation2]  }
   0xb   :  { %33 = dma.vmem_to_smem %s31_s29, 16, %s431_s9, [#allocation4]  }
   0xc   :  { %427 = dma.done.wait [#allocation4], 16  }
   0xd   :  { %428 = vsyncadd [#allocation4], 4294967280 }
   0xe   :  { %41 = sfence }
   0xf   :  { %v62_v0 = vld [vmem:[%s544_s0] sm:$0xff]  ;;  %v63_v1 = vld [vmem:[%s544_s0 + $0x8] sm:$0xff]  ;;  %vm69_vm0 = vcmask 1041409   ;;  %vm72_vm1 = vcmask 517120   ;;  %v432_v16 = vmov 0.0   ;;  %vm433_vm2 = vmmov 0  }
  0x10   :  { %v68_v2 = vrot.slane %v63_v1, 7  ;;  %v371_v15 = vld [vmem:[%s547_s3] sm:$0xff]   ;;  %341 = vmatprep.subr.bf16.mxu0 %v432_v16  ;;  %353 = vmatprep.subr.bf16.mxu1 %v432_v16  ;;  %v372_v17 = vld [vmem:[%s547_s3 + $0x8] sm:$0xff]   ;;  %v373_v18 = vld [vmem:[%s547_s3 + $0x10] sm:$0xff]   ;;  %s43_s20 = sld [smem:[#allocation2]]  ;;  %vm160_vm3 = vcmask 523264  }
  0x11   :  { %342 = vmatpush3.bf16.msra.mxu0 %v371_v15  ;;  %349 = vmatprep.mubr.msk.bf16.mxu0 %vm433_vm2, %v432_v16  ;;  %v374_v19 = vld [vmem:[%s547_s3 + $0x18] sm:$0xff]   ;;  %v322_v27 = vld [vmem:[%s545_s1] ss:$0 sm:$0xff]  ;;  %s321_s1 = sld [smem:[#allocation2 + $0x1]]  ;;  %vm207_vm6 = vcmask 254976   ;;  %v376_v61 = vld [vmem:[%s549_s5 + $0x8] sm:$0xff]  }
  0x12   :  { %v70_v3 = vsel %vm69_vm0, %v68_v2, %v62_v0  ;;  %343 = vmatprep.subr.bf16.mxu0 %v432_v16  ;;  %357 = vmatprep.mubr.msk.bf16.mxu1 %vm433_vm2, %v432_v16  ;;  %v323_v30 = vld [vmem:[%s546_s2] ss:$0 sm:$0xff]  ;;  %vm257_vm9 = vcmask 261120  }
  0x13   :  { %v73_v4 = vsel %vm72_vm1, %v70_v3, 0.0  ;;  %v375_v60 = vld [vmem:[%s549_s5] sm:$0xff]   ;;  %s434_s5 = smov [#allocation5]  }
  0x14   :  { %74 = vadd.xlane.f32.xlu0 %v73_v4  ;;  %354 = vmatpush3.bf16.msra.mxu1 %v375_v60  ;;  %s310_s30 = sshll.u32 %s434_s5, 4  ;;  %s311_s30 = int_to_ptr.vmem [resolvable:$true] %s310_s30 }
  0x15   :  { %344 = vmatpush3.bf16.msra.mxu0 %v372_v17  ;;  %355 = vmatprep.subr.bf16.mxu1 %v432_v16  ;;  %s405_s9 = scalar_lea.vmem %s311_s30, 32  ;;  %p410_p6 = scmp.lt.s32.totalorder %s311_s30, %s311_s30 }
  0x16   :  { %345 = vmatprep.subr.bf16.mxu0 %v432_v16  ;;  %v44_v20 = vstv %s43_s20  ;;  %p406_p5 = scmp.ne.s32.totalorder %s311_s30, %s405_s9  ;;  %p411_p7 = scmp.lt.s32.totalorder %s405_s9, %s405_s9 }
  0x17   :  { %v45_v21 = vmul.f32 1.442695, %v44_v20  ;;  %v49_v43 = vstv %s321_s1 }
  0x18   :  { %v50_v44 = vmul.f32 1.442695, %v49_v43  ;;  %356 = vmatpush3.bf16.msra.mxu1 %v376_v61  ;;  %p412_p8 = por %p411_p7, %p410_p6 }
  0x19   :  { %346 = vmatpush3.bf16.msra.mxu0 %v373_v18  ;;  %377 = vpow2.f32 %v45_v21 }
  0x1a   :  { %347 = vmatprep.subr.bf16.mxu0 %v432_v16  ;;  %p413_p9 = pnand %p412_p8, %p406_p5 }
  0x1d   :  { %348 = vmatpush3.bf16.msra.mxu0 %v374_v19 }
  0x23   :  { %v378_v22 = vpop.eup %377 }
  0x24   :  { %361 = vpush %v378_v22 }
  0x55   :  { %s362_s2 = spop %361 }
  0x56   :  { %v204_v52 = vstv %s362_s2 }
  0xa1   :  { %v75_v5 = vpop.xlane.xlu0 %74 }
  0xa2   :  { %v77_v6 = vmul.f32 0.015625, %v75_v5 }
  0xa4   :  { %v79_v7 = vrot.slane %v77_v6, 1  ;;  %v82_v8 = vsub.f32 %v62_v0, %v77_v6 }
  0xa6   :  { %v83_v9 = vsub.f32 %v63_v1, %v79_v7  ;;  %v84_v11 = vmul.f32 %v82_v8, %v82_v8 }
  0xa8   :  { %v85_v10 = vmul.f32 %v83_v9, %v83_v9 }
  0xaa   :  { %v88_v12 = vrot.slane %v85_v10, 7 }
  0xac   :  { %v89_v13 = vsel %vm69_vm0, %v88_v12, %v84_v11 }
  0xad   :  { %v91_v14 = vsel %vm72_vm1, %v89_v13, 0.0 }
  0xae   :  { %92 = vadd.xlane.f32.xlu0 %v91_v14 }
 0x13b   :  { %v93_v23 = vpop.xlane.xlu0 %92 }
 0x13c   :  { %v94_v24 = vmul.f32 0.015625, %v93_v23 }
 0x13e   :  { %v95_v25 = vadd.f32 1e-06, %v94_v24 }
 0x140   :  { %379 = vrsqrt.f32 %v95_v25 }
 0x141   :  { %381 = vpow2.f32 %v50_v44 }
 0x14a   :  { %v380_v26 = vpop.eup %379 }
 0x14b   :  { %v98_v28 = vrot.slane %v380_v26, 1  ;;  %v101_v29 = vmul.f32 %v380_v26, %v82_v8  ;;  %v382_v45 = vpop.eup %381 }
 0x14c   :  { %363 = vpush %v382_v45 }
 0x14d   :  { %v102_v31 = vmul.f32 %v98_v28, %v83_v9  ;;  %v109_v32 = vmul.f32 %v322_v27, %v101_v29 }
 0x14f   :  { %v110_v33 = vmul.f32 %v322_v27, %v102_v31  ;;  %v117_v34 = vadd.f32 %v323_v30, %v109_v32 }
 0x151   :  { %v118_v35 = vadd.f32 %v323_v30, %v110_v33  ;;  %v119_v36 = vpack.c.bf16 %v117_v34, %v117_v34 }
 0x153   :  { %v120_v37 = vpack.c.bf16 %v118_v35, %v118_v35  ;;  %v131_v39 = vunpack.c.l.b16 %v119_v36 }
 0x155   :  { %v132_v38 = vunpack.c.l.b16 %v120_v37 }
 0x157   :  { %v133_v40 = vrot.slane %v132_v38, 7 }
 0x159   :  { %v134_v41 = vsel %vm69_vm0, %v133_v40, %v131_v39 }
 0x15a   :  { %v135_v42 = vpack.c.b16 %v134_v41, %v134_v41 }
 0x15c   :  { %350 = vmatmul.mubr.msk.bf16.vlgmr.msra.gmra.mrb[0].mxu0 %vm160_vm3, %v135_v42 }
 0x17d   :  { %s364_s24 = spop %363 }
 0x17e   :  { %v53_v46 = vstv %s364_s24 }
 0x17f   :  { %383 = vrsqrt.f32 %v53_v46  ;;  %vm56_vm4 = vcmp.eq.f32.partialorder %v53_v46, inf  ;;  %v59_v48 = vand.u32 2147483648, %v53_v46  ;;  %vm58_vm5 = vcmp.eq.f32.partialorder %v53_v46, 0.0 }
 0x189   :  { %v384_v47 = vpop.eup %383 }
 0x18a   :  { %v55_v49 = vmul.f32 %v384_v47, %v53_v46 }
 0x18c   :  { %v57_v50 = vsel %vm56_vm4, %v53_v46, %v55_v49 }
 0x18d   :  { %v60_v51 = vsel %vm58_vm5, %v59_v48, %v57_v50 }
 0x18e   :  { %365 = vpush %v60_v51 }
 0x1bf   :  { %s366_s29 = spop %365 }
 0x1c0   :  { %v218_v4 = vstv %s366_s29 }
 0x22f   :  { %v198_v53 = vpop.f32.mrb[0].mxu0 }
 0x230   :  { %v205_v54 = vmul.f32 %v204_v52, %v198_v53  ;;  %v351_v55 = vpop.f32.mrb[1].mxu0 }
 0x231   :  { %v201_v56 = vpop.f32.mrb[2].mxu0 }
 0x232   :  { %v352_v57 = vpop.f32.mrb[3].mxu0  ;;  %v206_v58 = vmul.f32 %v205_v54, %v205_v54 }
 0x234   :  { %v208_v59 = vsel %vm207_vm6, %v206_v58, 0.0 }
 0x235   :  { %209 = vadd.xlane.f32.xlu1 %v208_v59 }
 0x2c2   :  { %v210_v62 = vpop.xlane.xlu1 %209 }
 0x2c3   :  { %385 = vrsqrt.f32 %v210_v62  ;;  %vm213_vm7 = vcmp.eq.f32.partialorder %v210_v62, inf  ;;  %v216_v1 = vand.u32 2147483648, %v210_v62  ;;  %vm215_vm8 = vcmp.eq.f32.partialorder %v210_v62, 0.0 }
 0x2cd   :  { %v386_v63 = vpop.eup %385 }
 0x2ce   :  { %v212_v0 = vmul.f32 %v386_v63, %v210_v62 }
 0x2d0   :  { %v214_v2 = vsel %vm213_vm7, %v210_v62, %v212_v0 }
 0x2d1   :  { %v217_v3 = vsel %vm215_vm8, %v216_v1, %v214_v2 }
 0x2d2   :  { %v219_v5 = vmul.f32 %v218_v4, %v217_v3 }
 0x2d4   :  { %v220_v6 = vmax.f32 %v219_v5, 1e-08 }
 0x2d6   :  { %v221_v7 = vmin.f32 %v220_v6, 80.0 }
 0x2d8   :  { %v222_v8 = vmul.f32 1.442695, %v221_v7  ;;  %v224_v9 = vsub.f32 0.0, %v221_v7 }
 0x2da   :  { %v225_v10 = vmul.f32 1.442695, %v224_v9  ;;  %387 = vpow2.f32 %v222_v8 }
 0x2dc   :  { %389 = vpow2.f32 %v225_v10 }
 0x2dd   :  { %391 = vrcp.f32 %v220_v6 }
 0x2e4   :  { %v388_v11 = vpop.eup %387 }
 0x2e6   :  { %v390_v12 = vpop.eup %389 }
 0x2e7   :  { %v227_v13 = vsub.f32 %v388_v11, %v390_v12  ;;  %v392_v16 = vpop.eup %391 }
 0x2e9   :  { %v228_v14 = vmul.f32 0.5, %v227_v13 }
 0x2eb   :  { %v229_v15 = vmul.f32 %v228_v14, %v205_v54 }
 0x2ed   :  { %v231_v17 = vmul.f32 %v392_v16, %v229_v15 }
 0x2ef   :  { %v233_v18 = vpack.c.bf16 %v231_v17, %v231_v17  ;;  %232 = vst.msk [vmem:[#allocation5] sm:$0x3] %vm207_vm6, %v231_v17 }
 0x2f1   :  { %358 = vmatmul.mubr.msk.bf16.vlgmr.msra.gmra.mrb[0].mxu1 %vm257_vm9, %v233_v18 }
 0x2f2   :  { %416 = shalt.err (!%p413_p9)
}
 0x2f3   :  { %s417_s12 = scalar_lea.hbm %s552_s8, 32 }
 0x2f4   :  { %p418_p10 = scmp.ne.s32.totalorder %s552_s8, %s417_s12  ;;  %p421_p11 = scmp.lt.u32.totalorder %s417_s12, %s552_s8 }
 0x2f6   :  { %p423_p12 = pnand %p421_p11, %p418_p10 }
 0x2f8   :  { %426 = shalt.err (!%p423_p12)
}
 0x2f9   :  { %313 = dma.vmem_to_hbm [thread:$0]  %s311_s30, 32, %s552_s8, [#allocation3]   ;;  %v329_v19 = vld [vmem:[%s550_s6] ss:$0 sm:$0xff] }
 0x3c4   :  { %v295_v20 = vpop.f32.mrb[0].mxu1 }
 0x3c5   :  { %v296_v21 = vadd.f32 %v329_v19, %v295_v20  ;;  %v359_v22 = vpop.f32.mrb[1].mxu1 }
 0x3c6   :  { %v298_v23 = vpop.f32.mrb[2].mxu1 }
 0x3c7   :  { %301 = vst [vmem:[%s551_s7] sm:$0x3] %v296_v21  ;;  %v360_v24 = vpop.f32.mrb[3].mxu1 }
 0x3c8   :  { %429 = dma.done.wait [#allocation3], 32  }
 0x3c9   :  { %430 = vsyncadd [#allocation3], 4294967264 }
 0x3ca   :  { %319 = vsyncpa [#allocation3], 1 }
 0x3cb   :  { %320 = vsyncpa [#allocation4], 1 }

// kernel: meru_forward.4
= control target key start
LH: loop header
LB: loop body
LE: loop exit
PB: predicated region body
PF: predicated region fallthrough
CT: control target
= control target key end

     0   :  { %s4943_s0 = inlined_call_operand.hbm [shape: f32[2,8,64], index: 0, kind: input, shape index: {}]   ;;  %s4944_s1 = inlined_call_operand.hbm [shape: f32[2,1,64], index: 1, kind: input, shape index: {}]   ;;  %s4945_s2 = inlined_call_operand.hbm [shape: f32[2,1,64], index: 2, kind: input, shape index: {}]   ;;  %s4946_s3 = inlined_call_operand.hbm [shape: bf16[2,64,64], index: 3, kind: input, shape index: {}]   ;;  %s4947_s4 = inlined_call_operand.hbm [shape: f32[2,1,64], index: 4, kind: input, shape index: {}]   ;;  %s4948_s5 = inlined_call_operand.hbm [shape: bf16[2,64,64], index: 5, kind: input, shape index: {}]   ;;  %s4949_s6 = inlined_call_operand.hbm [shape: f32[2,1,64], index: 6, kind: input, shape index: {}]   ;;  %s4950_s7 = inlined_call_operand.hbm [shape: bf16[2,64,64], index: 7, kind: input, shape index: {}]   ;;  %s4951_s8 = inlined_call_operand.hbm [shape: f32[2,1,64], index: 8, kind: input, shape index: {}]   ;;  %s4952_s9 = inlined_call_operand.hbm [shape: bf16[2,64,64], index: 9, kind: input, shape index: {}]   ;;  %s4953_s10 = inlined_call_operand.hbm [shape: f32[2,1,64], index: 10, kind: input, shape index: {}]   ;;  %s4954_s11 = inlined_call_operand.hbm [shape: f32[2,1,64], index: 11, kind: input, shape index: {}]   ;;  %s4955_s12 = inlined_call_operand.hbm [shape: f32[2,1,64], index: 12, kind: input, shape index: {}]   ;;  %s4956_s13 = inlined_call_operand.hbm [shape: bf16[2,64,256], index: 13, kind: input, shape index: {}]   ;;  %s4957_s14 = inlined_call_operand.hbm [shape: f32[2,1,256], index: 14, kind: input, shape index: {}]   ;;  %s4958_s15 = inlined_call_operand.hbm [shape: bf16[2,256,64], index: 15, kind: input, shape index: {}]   ;;  %s4959_s16 = inlined_call_operand.hbm [shape: f32[2,1,64], index: 16, kind: input, shape index: {}]   ;;  %s4960_s17 = inlined_call_operand.hbm [shape: f32[2,8,64], index: 17, kind: output, shape index: {}]  }
   0x1   :  { %5004 = sst [smem:[#allocation55_spill]] %s4943_s0 }
   0x2   :  { %5005 = sst [smem:[#allocation56_spill]] %s4944_s1 }
   0x3   :  { %5006 = sst [smem:[#allocation57_spill]] %s4945_s2 }
   0x4   :  { %5007 = sst [smem:[#allocation58_spill]] %s4946_s3 }
   0x5   :  { %5008 = sst [smem:[#allocation59_spill]] %s4947_s4 }
   0x6   :  { %5009 = sst [smem:[#allocation60_spill]] %s4948_s5 }
   0x7   :  { %5010 = sst [smem:[#allocation61_spill]] %s4949_s6 }
   0x8   :  { %5011 = sst [smem:[#allocation62_spill]] %s4950_s7 }
   0x9   :  { %5012 = sst [smem:[#allocation63_spill]] %s4951_s8 }
   0xa   :  { %5013 = sst [smem:[#allocation64_spill]] %s4952_s9 }
   0xb   :  { %5014 = sst [smem:[#allocation65_spill]] %s4953_s10 }
   0xc   :  { %5015 = sst [smem:[#allocation66_spill]] %s4955_s12 }
   0xd   :  { %5016 = sst [smem:[#allocation67_spill]] %s4957_s14 }
   0xe   :  { %5017 = sst [smem:[#allocation68_spill]] %s4959_s16 }
   0xf   :  { %5018 = sst [smem:[#allocation69_spill]] %s4960_s17 }
  0x10   :  { %22 = vsyncpa [#allocation3], 0 }
  0x11   :  { %24 = vsyncpa [#allocation3 + $0x1], 0 }
  0x12   :  { %25 = vsyncpa [#allocation6], 0 }
  0x13   :  { %27 = vsyncpa [#allocation6 + $0x1], 0 }
  0x14   :  { %28 = vsyncpa [#allocation9], 0 }
  0x15   :  { %30 = vsyncpa [#allocation9 + $0x1], 0 }
  0x16   :  { %31 = vsyncpa [#allocation12], 0 }
  0x17   :  { %33 = vsyncpa [#allocation12 + $0x1], 0 }
  0x18   :  { %34 = vsyncpa [#allocation15], 0 }
  0x19   :  { %36 = vsyncpa [#allocation15 + $0x1], 0 }
  0x1a   :  { %37 = vsyncpa [#allocation18], 0 }
  0x1b   :  { %39 = vsyncpa [#allocation18 + $0x1], 0 }
  0x1c   :  { %40 = vsyncpa [#allocation21], 0 }
  0x1d   :  { %42 = vsyncpa [#allocation21 + $0x1], 0 }
  0x1e   :  { %43 = vsyncpa [#allocation24], 0 }
  0x1f   :  { %45 = vsyncpa [#allocation24 + $0x1], 0 }
  0x20   :  { %46 = vsyncpa [#allocation27], 0 }
  0x21   :  { %48 = vsyncpa [#allocation27 + $0x1], 0 }
  0x22   :  { %49 = vsyncpa [#allocation4], 0 }
  0x23   :  { %51 = vsyncpa [#allocation4 + $0x1], 0  ;;  %s3951_s24 = smov 0   ;;  %s3953_s25 = smov 0  }
  0x24   :  { %s3955_s26 = smov 0   ;;  %s3957_s27 = smov 0  }
  0x25   :  { %s3959_s28 = smov 0   ;;  %s3961_s29 = smov 0  }
  0x26   :  { %s3963_s0 = smov 0   ;;  %s3965_s30 = smov 0  }
  0x27   :  { %s3967_s18 = smov 0   ;;  %s3969_s19 = smov 0  }
  0x28   :  { %s3971_s1 = smov 0  }
  0x29 LB: > { %5019 = sst [smem:[#allocation40_spill]] %s3792_s25  ;;  %s4007_s20 = sadd.s32 4294967295, %s3828_s1   ;;  %s3828_s1 = sphi %s3971_s1, %s57_s1   ;;  %s3824_s19 = sphi %s3969_s19, %s5109_s19   ;;  %s3820_s18 = sphi %s3967_s18, %s5108_s18   ;;  %s3816_s30 = sphi %s3965_s30, %s5107_s30   ;;  %s3812_s0 = sphi %s3963_s0, %s5106_s0   ;;  %s3808_s29 = sphi %s3961_s29, %s5105_s29   ;;  %s3804_s28 = sphi %s3959_s28, %s5104_s28   ;;  %s3800_s27 = sphi %s3957_s27, %s5100_s27   ;;  %s3796_s26 = sphi %s3955_s26, %s5099_s26   ;;  %s3792_s25 = sphi %s3953_s25, %s5098_s25   ;;  %s3788_s24 = sphi %s3951_s24, %s5097_s24  }
  0x2a   : > { %5020 = sst [smem:[#allocation41_spill]] %s3796_s26  ;;  %s2715_s21 = sadd.s32 4294967294, %s3828_s1  }
  0x2b   : > { %5021 = sst [smem:[#allocation42_spill]] %s3800_s27  ;;  %s66_s22 = sadd.s32 1, %s3820_s18 }
  0x2c   : > { %5022 = sst [smem:[#allocation43_spill]] %s3804_s28  ;;  %s69_s23 = sadd.s32 1, %s3824_s19 }
  0x2d   : > { %5023 = sst [smem:[#allocation44_spill]] %s3812_s0  ;;  %p67_p0 = scmp.ge.s32.totalorder %s66_s22, 2 }
  0x2e   : > { %5024 = sst [smem:[#allocation45_spill]] %s3816_s30  ;;  %s76_s17 = sadd.s32 1, %s3808_s29 }
  0x2f   : > { %5025 = sst [smem:[#allocation46_spill]] %s4007_s20  ;;  %p83_p1 = scmp.ne.s32.totalorder %s3808_s29, %s3804_s28 }
  0x30   : > { %p84_p2 = scmp.eq.s32.totalorder %s3828_s1, 0  ;;  %s5111_s22 = smov (%p67_p0, %s66_s22), 0 }
  0x31   : > { %5026 = sst [smem:[#allocation47_spill]] %s5111_s22  ;;  %s5113_s23 = smov (!%p67_p0, %s69_s23), %s3824_s19 }
  0x32   : > { %p4024_p3 = por %p84_p2, %p83_p1  ;;  %p4971_p4 = scmp.ne.s32.totalorder %s3804_s28, %s3800_s27 }
  0x33   : > { %p71_p5 = scmp.ge.s32.totalorder %s5113_s23, 2  ;;  %p90_p6 = scmp.eq.s32.totalorder %s4007_s20, 0 }
  0x34   : > { %s5027_s30 = scalar_select %p4024_p3, 1, 0 }
  0x35   : > { %s99_s0 = ssub.s32 %s3820_s18, %s5111_s22  ;;  %s102_s16 = sadd.s32 1, %s3796_s26 }
  0x36   : > { %s5115_s23 = smov (%p71_p5, %s5113_s23), 0  ;;  %p4041_p7 = por %p90_p6, %p4971_p4 }
  0x37   : > { %5028 = sst [smem:[#allocation48_spill]] %s5115_s23  ;;  %p100_p8 = scmp.eq.s32.totalorder %s99_s0, 0 }
  0x38   : > { %s5029_s14 = scalar_select %p4041_p7, 1, 0 }
  0x39   : > { %s73_s12 = ssub.s32 %s3824_s19, %s5115_s23  ;;  %p109_p9 = scmp.ne.s32.totalorder %s3796_s26, %s3792_s25 }
  0x3a   : > { %5030 = sst [smem:[#allocation49_spill]] %s5029_s14  ;;  %p74_p10 = scmp.eq.s32.totalorder %s73_s12, 0 }
  0x3b   : > { %p115_p11 = scmp.ne.s32.totalorder %s3792_s25, %s3788_s24  ;;  %p4059_p12 = por %p109_p9, %p84_p2 }
  0x3c   : > { %s4052_s10 = scalar_select %p100_p8, %s3796_s26, %s102_s16  }
  0x3d   : > { %s4055_s22 = scalar_select %p74_p10, %s3808_s29, %s76_s17  }
  0x3e   : > { %5031 = sst [smem:[#allocation50_spill]] %s4052_s10  ;;  %p4065_p13 = por %p115_p11, %p90_p6 }
  0x3f   : > { %5032 = sst [smem:[#allocation51_spill]] %s4055_s22  ;;  %p529_p0 = scmp.eq.s32.totalorder %s4007_s20, 3 }
  0x40   : > { %s5033_s8 = scalar_select %p4059_p12, 1, 0 }
  0x41   : > { %s5034_s6 = scalar_select %p4065_p13, 1, 0 }
  0x42   : > { %p535_p5 = scmp.eq.s32.totalorder %s2715_s21, 3  ;;  %p4073_p4 = por %p529_p0, %p83_p1 }
  0x43   : > { %5035 = sst [smem:[#allocation52_spill]] %s5034_s6  ;;  %p5038_p8 = scmp.ne.s32.totalorder %s3804_s28, %s3800_s27 }
  0x44   : > { %s5036_s12 = scalar_select %p4073_p4, 1, 0 }
  0x45   : > { %p4080_p10 = por %p535_p5, %p5038_p8  ;;  %p2717_p2 = scmp.ge.s32.totalorder %s3828_s1, 4 }
  0x46   : > { %5037 = sst [smem:[#allocation53_spill]] %s5036_s12  ;;  %s4086_s17 = sand.u32 (!%p2717_p2), 1, %s3828_s1  }
  0x47   : > { %s5039_s16 = scalar_select %p4080_p10, 1, 0 }
  0x48   : > { %551 = sbr.rel (%p2717_p2) target bundleno = 545 (0x221), region = 16  ;;  %s4089_s24 = sand.u32 (!%p2717_p2), 1, %s3796_s26  }
  0x49   : > { %5040 = sst [smem:[#allocation54_spill]] %s5039_s16  ;;  %s4092_s0 = sshll.u32 (!%p2717_p2), %s3820_s18, 4 }
  0x4a   : > { %s576_s21 = scalar_lea.vmem (!%p2717_p2), [#allocation5], %s4089_s24  ;;  %s5041_s16 = sld [smem:[#allocation56_spill]] (!%p2717_p2) }
  0x4b   : > { %s583_s23 = sshll.u32 (!%p2717_p2), %s576_s21, 4  ;;  %s584_s23 = int_to_ptr.vmem [resolvable:$true] %s583_s23 }
  0x50   : > { %s4099_s27 = scalar_lea.hbm %s5041_s16, %s4092_s0  ;;  %s3202_s21 = scalar_lea.hbm %s5041_s16, 32 }
  0x51   : > { %s3198_s6 = scalar_lea.hbm %s4099_s27, 16  ;;  %p3203_p11 = scmp.lt.u32.totalorder %s4099_s27, %s5041_s16 }
  0x52   : > { %p3199_p1 = scmp.ne.s32.totalorder %s4099_s27, %s3198_s6  ;;  %p3204_p0 = scmp.lt.u32.totalorder %s3202_s21, %s3198_s6 }
  0x53   : > { %p3206_p8 = scmp.lt.u32.totalorder %s3198_s6, %s4099_s27 }
  0x54   : > { %p3200_p6 = pnand %p3199_p1, %p4059_p12  ;;  %p3205_p5 = por %p3204_p0, %p3203_p11 }
  0x56   : > { %p3201_p9 = pneg %p3200_p6  ;;  %p3207_p2 = por %p3206_p8, %p3205_p5 }
  0x58   : > { %p3208_p10 = pnand %p3207_p2, %p3201_p9 }
  0x5a   : > { %3211 = shalt.err (!%p3208_p10)
}
  0x5b   : > { %s3212_s10 = scalar_lea.vmem %s584_s23, 16  ;;  %s3830_s22 = smov [#allocation5]  }
  0x5c   : > { %p3213_p4 = scmp.ne.s32.totalorder %s584_s23, %s3212_s10  ;;  %s3216_s12 = sshll.u32 %s3830_s22, 4  ;;  %s3217_s12 = int_to_ptr.vmem [resolvable:$false] %s3216_s12 }
  0x5d   : > { %s3218_s25 = scalar_lea.vmem %s3217_s12, 32  ;;  %p3219_p13 = scmp.lt.s32.totalorder %s584_s23, %s3217_s12 }
  0x5e   : > { %p3214_p1 = pnand %p3213_p4, %p4059_p12  ;;  %p3220_p7 = scmp.lt.s32.totalorder %s3218_s25, %s3212_s10 }
  0x60   : > { %p3215_p6 = pneg %p3214_p1  ;;  %p3221_p3 = por %p3220_p7, %p3219_p13 }
  0x62   : > { %p3222_p0 = pnand %p3221_p3, %p3215_p6 }
  0x64   : > { %3225 = shalt.err (!%p3222_p0)
}
  0x65   : > { %s5042_s6 = scalar_lea.sflag [#allocation6], %s4086_s17  ;;  %s4122_s14 = sshll.u32 %s4089_s24, 5 }
  0x66   : > { %2989 = dma.hbm_to_vmem [thread:$0]  (%p4059_p12), %s4099_s27, 16, %s584_s23, %s5042_s6  }
  0x67   : > { %s4125_s26 = sshll.u32 %s3820_s18, 9  ;;  %s5043_s3 = sld [smem:[#allocation58_spill]] }
  0x68   : > { %s611_s10 = scalar_lea.vmem [#allocation8], %s4122_s14  ;;  %s4990_s27 = scalar_lea.sflag [#allocation9], %s4086_s17 }
  0x69   : > { %s618_s22 = sshll.u32 %s611_s10, 4  ;;  %s4134_s22 = int_to_ptr.vmem [resolvable:$true] %s618_s22 }
  0x6d   : > { %s4131_s21 = scalar_lea.hbm %s5043_s3, %s4125_s26  ;;  %s3230_s20 = scalar_lea.hbm %s5043_s3, 1024 }
  0x6e   : > { %s3226_s23 = scalar_lea.hbm %s4131_s21, 512  ;;  %p3231_p13 = scmp.lt.u32.totalorder %s4131_s21, %s5043_s3 }
  0x6f   : > { %p3227_p3 = scmp.ne.s32.totalorder %s4131_s21, %s3226_s23  ;;  %p3232_p10 = scmp.lt.u32.totalorder %s3230_s20, %s3226_s23 }
  0x70   : > { %p3234_p11 = scmp.lt.u32.totalorder %s3226_s23, %s4131_s21 }
  0x71   : > { %p3228_p4 = pnand %p3227_p3, %p4059_p12  ;;  %p3233_p9 = por %p3232_p10, %p3231_p13 }
  0x73   : > { %p3229_p7 = pneg %p3228_p4  ;;  %p3235_p5 = por %p3234_p11, %p3233_p9 }
  0x75   : > { %p3236_p8 = pnand %p3235_p5, %p3229_p7 }
  0x77   : > { %3239 = shalt.err (!%p3236_p8)
}
  0x78   : > { %s3240_s10 = scalar_lea.vmem %s4134_s22, 512  ;;  %s3831_s25 = smov [#allocation8]  }
  0x79   : > { %p3241_p2 = scmp.ne.s32.totalorder %s4134_s22, %s3240_s10  ;;  %s3244_s6 = sshll.u32 %s3831_s25, 4  ;;  %s3245_s6 = int_to_ptr.vmem [resolvable:$false] %s3244_s6 }
  0x7a   : > { %s3246_s16 = scalar_lea.vmem %s3245_s6, 1024  ;;  %p3247_p0 = scmp.lt.s32.totalorder %s4134_s22, %s3245_s6 }
  0x7b   : > { %p3242_p1 = pnand %p3241_p2, %p4059_p12  ;;  %p3248_p3 = scmp.lt.s32.totalorder %s3246_s16, %s3240_s10 }
  0x7d   : > { %p3243_p6 = pneg %p3242_p1  ;;  %p3249_p4 = por %p3248_p3, %p3247_p0 }
  0x7f   : > { %p3250_p13 = pnand %p3249_p4, %p3243_p6 }
  0x81   : > { %3253 = shalt.err (!%p3250_p13)
}
  0x82   : > { %s4995_s23 = smov 64   ;;  %s4996_s20 = smov 4  }
  0x83   : > { %2991 = dma.hbm_to_vmem [thread:$0]  (%p4059_p12), %s4131_s21, 512, %s4134_s22, %s4990_s27, %s4995_s23, %s4995_s23, %s4996_s20  }
  0x84   : > { %s5044_s5 = sld [smem:[#allocation60_spill]]  ;;  %s649_s6 = scalar_lea.vmem [#allocation11], %s4122_s14 }
  0x85   : > { %s656_s16 = sshll.u32 %s649_s6, 4  ;;  %s4991_s3 = scalar_lea.sflag [#allocation12], %s4086_s17  ;;  %s4170_s16 = int_to_ptr.vmem [resolvable:$true] %s656_s16 }
  0x8a   : > { %s4167_s25 = scalar_lea.hbm %s5044_s5, %s4125_s26  ;;  %s3258_s12 = scalar_lea.hbm %s5044_s5, 1024 }
  0x8b   : > { %s3254_s28 = scalar_lea.hbm %s4167_s25, 512  ;;  %p3259_p11 = scmp.lt.u32.totalorder %s4167_s25, %s5044_s5 }
  0x8c   : > { %p3255_p7 = scmp.ne.s32.totalorder %s4167_s25, %s3254_s28  ;;  %p3260_p5 = scmp.lt.u32.totalorder %s3258_s12, %s3254_s28 }
  0x8d   : > { %p3262_p2 = scmp.lt.u32.totalorder %s3254_s28, %s4167_s25 }
  0x8e   : > { %p3256_p10 = pnand %p3255_p7, %p4059_p12  ;;  %p3261_p8 = por %p3260_p5, %p3259_p11 }
  0x90   : > { %p3257_p9 = pneg %p3256_p10  ;;  %p3263_p1 = por %p3262_p2, %p3261_p8 }
  0x92   : > { %p3264_p6 = pnand %p3263_p1, %p3257_p9 }
  0x94   : > { %3267 = shalt.err (!%p3264_p6)
}
  0x95   : > { %s3268_s6 = scalar_lea.vmem %s4170_s16, 512  ;;  %s3834_s21 = smov [#allocation11]  }
  0x96   : > { %p3269_p0 = scmp.ne.s32.totalorder %s4170_s16, %s3268_s6  ;;  %s3272_s22 = sshll.u32 %s3834_s21, 4  ;;  %s3273_s22 = int_to_ptr.vmem [resolvable:$false] %s3272_s22 }
  0x97   : > { %s3274_s27 = scalar_lea.vmem %s3273_s22, 1024  ;;  %p3275_p13 = scmp.lt.s32.totalorder %s4170_s16, %s3273_s22 }
  0x98   : > { %p3270_p3 = pnand %p3269_p0, %p4059_p12  ;;  %p3276_p7 = scmp.lt.s32.totalorder %s3274_s27, %s3268_s6 }
  0x9a   : > { %p3271_p4 = pneg %p3270_p3  ;;  %p3277_p10 = por %p3276_p7, %p3275_p13 }
  0x9c   : > { %p3278_p11 = pnand %p3277_p10, %p3271_p4 }
  0x9e   : > { %3281 = shalt.err (!%p3278_p11)
}
  0x9f   : > { %2993 = dma.hbm_to_vmem [thread:$0]  (%p4059_p12), %s4167_s25, 512, %s4170_s16, %s4991_s3, %s4995_s23, %s4995_s23, %s4996_s20  }
  0xa0   : > { %s5045_s7 = sld [smem:[#allocation62_spill]]  ;;  %s687_s6 = scalar_lea.vmem [#allocation14], %s4122_s14 }
  0xa1   : > { %s694_s21 = sshll.u32 %s687_s6, 4  ;;  %s4993_s22 = scalar_lea.sflag [#allocation15], %s4086_s17  ;;  %s4206_s21 = int_to_ptr.vmem [resolvable:$true] %s694_s21 }
  0xa6   : > { %s4203_s10 = scalar_lea.hbm %s5045_s7, %s4125_s26  ;;  %s3286_s28 = scalar_lea.hbm %s5045_s7, 1024 }
  0xa7   : > { %s3282_s27 = scalar_lea.hbm %s4203_s10, 512  ;;  %p3287_p2 = scmp.lt.u32.totalorder %s4203_s10, %s5045_s7 }
  0xa8   : > { %p3283_p9 = scmp.ne.s32.totalorder %s4203_s10, %s3282_s27  ;;  %p3288_p1 = scmp.lt.u32.totalorder %s3286_s28, %s3282_s27 }
  0xa9   : > { %p3290_p0 = scmp.lt.u32.totalorder %s3282_s27, %s4203_s10 }
  0xaa   : > { %p3284_p5 = pnand %p3283_p9, %p4059_p12  ;;  %p3289_p6 = por %p3288_p1, %p3287_p2 }
  0xac   : > { %p3285_p8 = pneg %p3284_p5  ;;  %p3291_p3 = por %p3290_p0, %p3289_p6 }
  0xae   : > { %p3292_p4 = pnand %p3291_p3, %p3285_p8 }
  0xb0   : > { %3295 = shalt.err (!%p3292_p4)
}
  0xb1   : > { %s3296_s6 = scalar_lea.vmem %s4206_s21, 512  ;;  %s3835_s25 = smov [#allocation14]  }
  0xb2   : > { %p3297_p13 = scmp.ne.s32.totalorder %s4206_s21, %s3296_s6  ;;  %s3300_s16 = sshll.u32 %s3835_s25, 4  ;;  %s3301_s16 = int_to_ptr.vmem [resolvable:$false] %s3300_s16 }
  0xb3   : > { %s3302_s3 = scalar_lea.vmem %s3301_s16, 1024  ;;  %p3303_p11 = scmp.lt.s32.totalorder %s4206_s21, %s3301_s16 }
  0xb4   : > { %p3298_p7 = pnand %p3297_p13, %p4059_p12  ;;  %p3304_p9 = scmp.lt.s32.totalorder %s3302_s3, %s3296_s6 }
  0xb6   : > { %p3299_p10 = pneg %p3298_p7  ;;  %p3305_p5 = por %p3304_p9, %p3303_p11 }
  0xb8   : > { %p3306_p2 = pnand %p3305_p5, %p3299_p10 }
  0xba   : > { %3309 = shalt.err (!%p3306_p2)
}
  0xbb   : > { %2995 = dma.hbm_to_vmem [thread:$0]  (%p4059_p12), %s4203_s10, 512, %s4206_s21, %s4993_s22, %s4995_s23, %s4995_s23, %s4996_s20  }
  0xbc   : > { %s5046_s9 = sld [smem:[#allocation64_spill]]  ;;  %s725_s6 = scalar_lea.vmem [#allocation17], %s4122_s14 }
  0xbd   : > { %s732_s25 = sshll.u32 %s725_s6, 4  ;;  %s4992_s16 = scalar_lea.sflag [#allocation18], %s4086_s17  ;;  %s4242_s25 = int_to_ptr.vmem [resolvable:$true] %s732_s25 }
  0xc2   : > { %s4239_s12 = scalar_lea.hbm %s5046_s9, %s4125_s26  ;;  %s3314_s27 = scalar_lea.hbm %s5046_s9, 1024 }
  0xc3   : > { %s3310_s3 = scalar_lea.hbm %s4239_s12, 512  ;;  %p3315_p0 = scmp.lt.u32.totalorder %s4239_s12, %s5046_s9 }
  0xc4   : > { %p3311_p8 = scmp.ne.s32.totalorder %s4239_s12, %s3310_s3  ;;  %p3316_p3 = scmp.lt.u32.totalorder %s3314_s27, %s3310_s3 }
  0xc5   : > { %p3318_p13 = scmp.lt.u32.totalorder %s3310_s3, %s4239_s12 }
  0xc6   : > { %p3312_p1 = pnand %p3311_p8, %p4059_p12  ;;  %p3317_p4 = por %p3316_p3, %p3315_p0 }
  0xc8   : > { %p3313_p6 = pneg %p3312_p1  ;;  %p3319_p7 = por %p3318_p13, %p3317_p4 }
  0xca   : > { %p3320_p10 = pnand %p3319_p7, %p3313_p6 }
  0xcc   : > { %3323 = shalt.err (!%p3320_p10)
}
  0xcd   : > { %s3324_s14 = scalar_lea.vmem %s4242_s25, 512  ;;  %s3836_s6 = smov [#allocation17]  }
  0xce   : > { %p3325_p11 = scmp.ne.s32.totalorder %s4242_s25, %s3324_s14  ;;  %s3328_s10 = sshll.u32 %s3836_s6, 4  ;;  %s3329_s10 = int_to_ptr.vmem [resolvable:$false] %s3328_s10 }
  0xcf   : > { %s3330_s21 = scalar_lea.vmem %s3329_s10, 1024  ;;  %p3331_p2 = scmp.lt.s32.totalorder %s4242_s25, %s3329_s10 }
  0xd0   : > { %p3326_p9 = pnand %p3325_p11, %p4059_p12  ;;  %p3332_p8 = scmp.lt.s32.totalorder %s3330_s21, %s3324_s14 }
  0xd2   : > { %p3327_p5 = pneg %p3326_p9  ;;  %p3333_p1 = por %p3332_p8, %p3331_p2 }
  0xd4   : > { %p3334_p0 = pnand %p3333_p1, %p3327_p5 }
  0xd6   : > { %3337 = shalt.err (!%p3334_p0)
}
  0xd7   : > { %2997 = dma.hbm_to_vmem [thread:$0]  (%p4059_p12), %s4239_s12, 512, %s4242_s25, %s4992_s16, %s4995_s23, %s4995_s23, %s4996_s20  }
  0xd8   : > { %s4275_s26 = scalar_lea.hbm %s4954_s11, %s4092_s0  ;;  %s762_s28 = scalar_lea.vmem [#allocation20], %s4089_s24 }
  0xd9   : > { %s769_s14 = sshll.u32 %s762_s28, 4  ;;  %s4994_s6 = scalar_lea.sflag [#allocation21], %s4086_s17  ;;  %s770_s14 = int_to_ptr.vmem [resolvable:$true] %s769_s14 }
  0xda   : > { %s3338_s10 = scalar_lea.hbm %s4275_s26, 16  ;;  %s3342_s25 = scalar_lea.hbm %s4954_s11, 32 }
  0xdb   : > { %p3339_p6 = scmp.ne.s32.totalorder %s4275_s26, %s3338_s10  ;;  %p3343_p13 = scmp.lt.u32.totalorder %s4275_s26, %s4954_s11 }
  0xdc   : > { %p3344_p7 = scmp.lt.u32.totalorder %s3342_s25, %s3338_s10  ;;  %p3346_p11 = scmp.lt.u32.totalorder %s3338_s10, %s4275_s26 }
  0xdd   : > { %p3340_p3 = pnand %p3339_p6, %p4059_p12 }
  0xde   : > { %p3345_p10 = por %p3344_p7, %p3343_p13 }
  0xdf   : > { %p3341_p4 = pneg %p3340_p3 }
  0xe0   : > { %p3347_p9 = por %p3346_p11, %p3345_p10 }
  0xe2   : > { %p3348_p5 = pnand %p3347_p9, %p3341_p4 }
  0xe4   : > { %3351 = shalt.err (!%p3348_p5)
}
  0xe5   : > { %s3352_s28 = scalar_lea.vmem %s770_s14, 16  ;;  %s3837_s16 = smov [#allocation20]  }
  0xe6   : > { %p3353_p2 = scmp.ne.s32.totalorder %s770_s14, %s3352_s28  ;;  %s3356_s22 = sshll.u32 %s3837_s16, 4  ;;  %s3357_s22 = int_to_ptr.vmem [resolvable:$false] %s3356_s22 }
  0xe7   : > { %s3358_s21 = scalar_lea.vmem %s3357_s22, 32  ;;  %p3359_p0 = scmp.lt.s32.totalorder %s770_s14, %s3357_s22 }
  0xe8   : > { %p3354_p8 = pnand %p3353_p2, %p4059_p12  ;;  %p3360_p6 = scmp.lt.s32.totalorder %s3358_s21, %s3352_s28 }
  0xea   : > { %p3355_p1 = pneg %p3354_p8  ;;  %p3361_p3 = por %p3360_p6, %p3359_p0 }
  0xec   : > { %p3362_p7 = pnand %p3361_p3, %p3355_p1 }
  0xee   : > { %3365 = shalt.err (!%p3362_p7)
}
  0xef   : > { %2999 = dma.hbm_to_vmem [thread:$0]  (%p4059_p12), %s4275_s26, 16, %s770_s14, %s4994_s6  }
  0xf0   : > { %s2740_s10 = sshll.u32 %s4089_s24, 6  ;;  %s2831_s12 = sshll.u32 %s3820_s18, 10 }
  0xf1   : > { %s4303_s22 = scalar_lea.hbm %s4956_s13, %s2831_s12  ;;  %s797_s3 = scalar_lea.vmem [#allocation23], %s2740_s10 }
  0xf2   : > { %s804_s27 = sshll.u32 %s797_s3, 4  ;;  %s4997_s28 = scalar_lea.sflag [#allocation24], %s4086_s17  ;;  %s4305_s27 = int_to_ptr.vmem [resolvable:$true] %s804_s27 }
  0xf3   : > { %s3366_s21 = scalar_lea.hbm %s4303_s22, 1024  ;;  %s3370_s16 = scalar_lea.hbm %s4956_s13, 2048 }
  0xf4   : > { %p3367_p4 = scmp.ne.s32.totalorder %s4303_s22, %s3366_s21  ;;  %p3371_p11 = scmp.lt.u32.totalorder %s4303_s22, %s4956_s13 }
  0xf5   : > { %p3372_p9 = scmp.lt.u32.totalorder %s3370_s16, %s3366_s21  ;;  %p3374_p2 = scmp.lt.u32.totalorder %s3366_s21, %s4303_s22 }
  0xf6   : > { %p3368_p13 = pnand %p3367_p4, %p4059_p12 }
  0xf7   : > { %p3373_p5 = por %p3372_p9, %p3371_p11 }
  0xf8   : > { %p3369_p10 = pneg %p3368_p13 }
  0xf9   : > { %p3375_p8 = por %p3374_p2, %p3373_p5 }
  0xfb   : > { %p3376_p1 = pnand %p3375_p8, %p3369_p10 }
  0xfd   : > { %3379 = shalt.err (!%p3376_p1)
}
  0xfe   : > { %s3380_s10 = scalar_lea.vmem %s4305_s27, 1024  ;;  %s3838_s3 = smov [#allocation23]  }
  0xff   : > { %p3381_p0 = scmp.ne.s32.totalorder %s4305_s27, %s3380_s10  ;;  %s3384_s26 = sshll.u32 %s3838_s3, 4  ;;  %s3385_s26 = int_to_ptr.vmem [resolvable:$false] %s3384_s26 }
 0x100   : > { %s3386_s14 = scalar_lea.vmem %s3385_s26, 2048  ;;  %p3387_p7 = scmp.lt.s32.totalorder %s4305_s27, %s3385_s26 }
 0x101   : > { %p3382_p6 = pnand %p3381_p0, %p4059_p12  ;;  %p3388_p4 = scmp.lt.s32.totalorder %s3386_s14, %s3380_s10 }
 0x103   : > { %p3383_p3 = pneg %p3382_p6  ;;  %p3389_p13 = por %p3388_p4, %p3387_p7 }
 0x105   : > { %p3390_p11 = pnand %p3389_p13, %p3383_p3 }
 0x107   : > { %3393 = shalt.err (!%p3390_p11)
}
 0x108   : > { %s3839_s21 = smov 128   ;;  %s3840_s16 = smov 8  }
 0x109   : > { %3001 = dma.hbm_to_vmem [thread:$0]  (%p4059_p12), %s4303_s22, 1024, %s4305_s27, %s4997_s28, %s3839_s21, %s3839_s21, %s3840_s16  }
 0x10a   : > { %s2746_s12 = sshll.u32 %s4089_s24, 7  ;;  %s2833_s25 = sshll.u32 %s3820_s18, 11 }
 0x10b   : > { %s4336_s26 = scalar_lea.hbm %s4958_s15, %s2833_s25  ;;  %s837_s14 = scalar_lea.vmem [#allocation26], %s2746_s12 }
 0x10c   : > { %s844_s6 = sshll.u32 %s837_s14, 4  ;;  %s555_s23 = sand.u32 1, %s3808_s29   ;;  %s4338_s6 = int_to_ptr.vmem [resolvable:$true] %s844_s6 }
 0x10d   : > { %s5000_s20 = scalar_lea.sflag [#allocation27], %s4086_s17  ;;  %s3394_s5 = scalar_lea.hbm %s4336_s26, 2048 }
 0x10e   : > { %p3395_p10 = scmp.ne.s32.totalorder %s4336_s26, %s3394_s5  ;;  %s3398_s21 = scalar_lea.hbm %s4958_s15, 4096 }
 0x10f   : > { %p3399_p2 = scmp.lt.u32.totalorder %s4336_s26, %s4958_s15  ;;  %p3400_p8 = scmp.lt.u32.totalorder %s3398_s21, %s3394_s5 }
 0x110   : > { %p3396_p9 = pnand %p3395_p10, %p4059_p12  ;;  %p3402_p0 = scmp.lt.u32.totalorder %s3394_s5, %s4336_s26 }
 0x111   : > { %p3401_p1 = por %p3400_p8, %p3399_p2 }
 0x112   : > { %p3397_p5 = pneg %p3396_p9 }
 0x113   : > { %p3403_p6 = por %p3402_p0, %p3401_p1 }
 0x115   : > { %p3404_p3 = pnand %p3403_p6, %p3397_p5 }
 0x117   : > { %3407 = shalt.err (!%p3404_p3)
}
 0x118   : > { %s3408_s12 = scalar_lea.vmem %s4338_s6, 2048  ;;  %s3841_s10 = smov [#allocation26]  }
 0x119   : > { %p3409_p7 = scmp.ne.s32.totalorder %s4338_s6, %s3408_s12  ;;  %s3412_s3 = sshll.u32 %s3841_s10, 4  ;;  %s3413_s3 = int_to_ptr.vmem [resolvable:$false] %s3412_s3 }
 0x11a   : > { %s3414_s14 = scalar_lea.vmem %s3413_s3, 4096  ;;  %p3415_p11 = scmp.lt.s32.totalorder %s4338_s6, %s3413_s3 }
 0x11b   : > { %p3410_p4 = pnand %p3409_p7, %p4059_p12  ;;  %p3416_p10 = scmp.lt.s32.totalorder %s3414_s14, %s3408_s12 }
 0x11d   : > { %p3411_p13 = pneg %p3410_p4  ;;  %p3417_p9 = por %p3416_p10, %p3415_p11 }
 0x11f   : > { %p3418_p2 = pnand %p3417_p9, %p3411_p13 }
 0x121   : > { %3421 = shalt.err (!%p3418_p2)
}
 0x122   : > { %s5047_s5 = smov 4   ;;  %s5048_s22 = smov 64  }
 0x123   : > { %3003 = dma.hbm_to_vmem [thread:$0]  (%p4059_p12), %s4336_s26, 2048, %s4338_s6, %s5000_s20, %s5048_s22, %s5048_s22, %s5047_s5  }
 0x124   : > { %s2718_s27 = sshll.u32 %s555_s23, 3  ;;  %s2719_s21 = sshll.u32 %s3824_s19, 7 }
 0x125   : > { %s5049_s12 = sld [smem:[#allocation55_spill]]  ;;  %s559_s3 = scalar_lea.vmem [#allocation2], %s2718_s27 }
 0x126   : > { %s566_s14 = sshll.u32 %s559_s3, 4  ;;  %s556_s28 = scalar_lea.sflag [#allocation3], %s555_s23  ;;  %s567_s14 = int_to_ptr.vmem [resolvable:$true] %s566_s14 }
 0x127   : > { %p5050_p8 = scmp.ne.s32.totalorder %s5027_s30, 0 }
 0x12b   : > { %s4374_s10 = scalar_lea.hbm %s5049_s12, %s2719_s21  ;;  %s3426_s5 = scalar_lea.hbm %s5049_s12, 256 }
 0x12c   : > { %s3422_s7 = scalar_lea.hbm %s4374_s10, 128  ;;  %p3427_p6 = scmp.lt.u32.totalorder %s4374_s10, %s5049_s12 }
 0x12d   : > { %p3423_p5 = scmp.ne.s32.totalorder %s4374_s10, %s3422_s7  ;;  %p3428_p3 = scmp.lt.u32.totalorder %s3426_s5, %s3422_s7 }
 0x12e   : > { %p3430_p4 = scmp.lt.u32.totalorder %s3422_s7, %s4374_s10 }
 0x12f   : > { %p3424_p1 = pnand %p3423_p5, %p5050_p8  ;;  %p3429_p7 = por %p3428_p3, %p3427_p6 }
 0x131   : > { %p3425_p0 = pneg %p3424_p1  ;;  %p3431_p13 = por %p3430_p4, %p3429_p7 }
 0x133   : > { %p3432_p11 = pnand %p3431_p13, %p3425_p0 }
 0x135   : > { %3435 = shalt.err (!%p3432_p11)
}
 0x136   : > { %s3436_s23 = scalar_lea.vmem %s567_s14, 128  ;;  %s3842_s27 = smov [#allocation2]  }
 0x137   : > { %p3437_p10 = scmp.ne.s32.totalorder %s567_s14, %s3436_s23  ;;  %s3440_s16 = sshll.u32 %s3842_s27, 4  ;;  %s3441_s16 = int_to_ptr.vmem [resolvable:$false] %s3440_s16 }
 0x138   : > { %s3442_s25 = scalar_lea.vmem %s3441_s16, 256  ;;  %p3443_p5 = scmp.lt.s32.totalorder %s567_s14, %s3441_s16 }
 0x139   : > { %p3438_p9 = pnand %p3437_p10, %p5050_p8  ;;  %p3444_p1 = scmp.lt.s32.totalorder %s3442_s25, %s3436_s23 }
 0x13b   : > { %p3439_p2 = pneg %p3438_p9  ;;  %p3445_p12 = por %p3444_p1, %p3443_p5 }
 0x13d   : > { %p3446_p3 = pnand %p3445_p12, %p3439_p2 }
 0x13f   : > { %3449 = shalt.err (!%p3446_p3)
}
 0x140   : > { %2988 = dma.hbm_to_vmem [thread:$0]  (%p5050_p8), %s4374_s10, 128, %s567_s14, %s556_s28  }
 0x141   : > { %s5051_s2 = sld [smem:[#allocation57_spill]]  ;;  %s593_s26 = scalar_lea.vmem [#allocation7], %s4089_s24 }
 0x142   : > { %s600_s5 = sshll.u32 %s593_s26, 4  ;;  %p5052_p0 = scmp.ne.s32.totalorder %s5033_s8, 0  ;;  %s601_s5 = int_to_ptr.vmem [resolvable:$true] %s600_s5 }
 0x147   : > { %s4399_s6 = scalar_lea.hbm %s5051_s2, %s4092_s0  ;;  %s3454_s28 = scalar_lea.hbm %s5051_s2, 32 }
 0x148   : > { %s3450_s22 = scalar_lea.hbm %s4399_s6, 16  ;;  %p3455_p8 = scmp.lt.u32.totalorder %s4399_s6, %s5051_s2 }
 0x149   : > { %p3451_p12 = scmp.ne.s32.totalorder %s4399_s6, %s3450_s22  ;;  %p3456_p4 = scmp.lt.u32.totalorder %s3454_s28, %s3450_s22 }
 0x14a   : > { %p3458_p11 = scmp.lt.u32.totalorder %s3450_s22, %s4399_s6 }
 0x14b   : > { %p3452_p6 = pnand %p3451_p12, %p5052_p0  ;;  %p3457_p13 = por %p3456_p4, %p3455_p8 }
 0x14d   : > { %p3453_p7 = pneg %p3452_p6  ;;  %p3459_p10 = por %p3458_p11, %p3457_p13 }
 0x14f   : > { %p3460_p9 = pnand %p3459_p10, %p3453_p7 }
 0x151   : > { %3463 = shalt.err (!%p3460_p9)
}
 0x152   : > { %s3464_s23 = scalar_lea.vmem %s601_s5, 16  ;;  %s3843_s27 = smov [#allocation7]  }
 0x153   : > { %p3465_p2 = scmp.ne.s32.totalorder %s601_s5, %s3464_s23  ;;  %s3468_s16 = sshll.u32 %s3843_s27, 4  ;;  %s3469_s16 = int_to_ptr.vmem [resolvable:$false] %s3468_s16 }
 0x154   : > { %s3470_s25 = scalar_lea.vmem %s3469_s16, 32  ;;  %p3471_p3 = scmp.lt.s32.totalorder %s601_s5, %s3469_s16 }
 0x155   : > { %p3466_p5 = pnand %p3465_p2, %p5052_p0  ;;  %p3472_p12 = scmp.lt.s32.totalorder %s3470_s25, %s3464_s23 }
 0x157   : > { %p3467_p1 = pneg %p3466_p5  ;;  %p3473_p6 = por %p3472_p12, %p3471_p3 }
 0x159   : > { %p3474_p4 = pnand %p3473_p6, %p3467_p1 }
 0x15b   : > { %3477 = shalt.err (!%p3474_p4)
}
 0x15c   : > { %s5053_s7 = scalar_lea.sflag [#allocation6], %s4086_s17  ;;  %s5054_s4 = sld [smem:[#allocation59_spill]] }
 0x15d   : > { %2990 = dma.hbm_to_vmem [thread:$0]  (%p5052_p0), %s4399_s6, 16, %s601_s5, %s5053_s7  }
 0x15e   : > { %s631_s30 = scalar_lea.vmem [#allocation10], %s4089_s24 }
 0x15f   : > { %s638_s21 = sshll.u32 %s631_s30, 4  ;;  %s639_s21 = int_to_ptr.vmem [resolvable:$true] %s638_s21 }
 0x162   : > { %s4425_s22 = scalar_lea.hbm %s5054_s4, %s4092_s0  ;;  %s3482_s6 = scalar_lea.hbm %s5054_s4, 32 }
 0x163   : > { %s3478_s28 = scalar_lea.hbm %s4425_s22, 16  ;;  %p3483_p11 = scmp.lt.u32.totalorder %s4425_s22, %s5054_s4 }
 0x164   : > { %p3479_p7 = scmp.ne.s32.totalorder %s4425_s22, %s3478_s28  ;;  %p3484_p10 = scmp.lt.u32.totalorder %s3482_s6, %s3478_s28 }
 0x165   : > { %p3486_p2 = scmp.lt.u32.totalorder %s3478_s28, %s4425_s22 }
 0x166   : > { %p3480_p8 = pnand %p3479_p7, %p5052_p0  ;;  %p3485_p9 = por %p3484_p10, %p3483_p11 }
 0x168   : > { %p3481_p13 = pneg %p3480_p8  ;;  %p3487_p5 = por %p3486_p2, %p3485_p9 }
 0x16a   : > { %p3488_p1 = pnand %p3487_p5, %p3481_p13 }
 0x16c   : > { %3491 = shalt.err (!%p3488_p1)
}
 0x16d   : > { %s3492_s27 = scalar_lea.vmem %s639_s21, 16  ;;  %s3844_s16 = smov [#allocation10]  }
 0x16e   : > { %p3493_p3 = scmp.ne.s32.totalorder %s639_s21, %s3492_s27  ;;  %s3496_s25 = sshll.u32 %s3844_s16, 4  ;;  %s3497_s25 = int_to_ptr.vmem [resolvable:$false] %s3496_s25 }
 0x16f   : > { %s3498_s7 = scalar_lea.vmem %s3497_s25, 32  ;;  %p3499_p4 = scmp.lt.s32.totalorder %s639_s21, %s3497_s25 }
 0x170   : > { %p3494_p12 = pnand %p3493_p3, %p5052_p0  ;;  %p3500_p7 = scmp.lt.s32.totalorder %s3498_s7, %s3492_s27 }
 0x172   : > { %p3495_p6 = pneg %p3494_p12  ;;  %p3501_p8 = por %p3500_p7, %p3499_p4 }
 0x174   : > { %p3502_p10 = pnand %p3501_p8, %p3495_p6 }
 0x176   : > { %3505 = shalt.err (!%p3502_p10)
}
 0x177   : > { %s5055_s3 = scalar_lea.sflag [#allocation9], %s4086_s17  ;;  %s5056_s28 = sld [smem:[#allocation61_spill]] }
 0x178   : > { %2992 = dma.hbm_to_vmem [thread:$0]  (%p5052_p0), %s4425_s22, 16, %s639_s21, %s5055_s3  }
 0x179   : > { %s669_s6 = scalar_lea.vmem [#allocation13], %s4089_s24 }
 0x17a   : > { %s676_s5 = sshll.u32 %s669_s6, 4  ;;  %s677_s5 = int_to_ptr.vmem [resolvable:$true] %s676_s5 }
 0x17d   : > { %s5057_s10 = smov %s5056_s28  ;;  %s4451_s14 = scalar_lea.hbm %s5056_s28, %s4092_s0 }
 0x17e   : > { %s3506_s23 = scalar_lea.hbm %s4451_s14, 16  ;;  %s3510_s22 = scalar_lea.hbm %s5057_s10, 32 }
 0x17f   : > { %p3507_p13 = scmp.ne.s32.totalorder %s4451_s14, %s3506_s23  ;;  %p3511_p2 = scmp.lt.u32.totalorder %s4451_s14, %s5057_s10 }
 0x180   : > { %p3512_p5 = scmp.lt.u32.totalorder %s3510_s22, %s3506_s23  ;;  %p3514_p3 = scmp.lt.u32.totalorder %s3506_s23, %s4451_s14 }
 0x181   : > { %p3508_p11 = pnand %p3507_p13, %p5052_p0 }
 0x182   : > { %p3513_p1 = por %p3512_p5, %p3511_p2 }
 0x183   : > { %p3509_p9 = pneg %p3508_p11 }
 0x184   : > { %p3515_p12 = por %p3514_p3, %p3513_p1 }
 0x186   : > { %p3516_p6 = pnand %p3515_p12, %p3509_p9 }
 0x188   : > { %3519 = shalt.err (!%p3516_p6)
}
 0x189   : > { %s3520_s7 = scalar_lea.vmem %s677_s5, 16  ;;  %s3845_s3 = smov [#allocation13]  }
 0x18a   : > { %p3521_p4 = scmp.ne.s32.totalorder %s677_s5, %s3520_s7  ;;  %s3524_s26 = sshll.u32 %s3845_s3, 4  ;;  %s3525_s26 = int_to_ptr.vmem [resolvable:$false] %s3524_s26 }
 0x18b   : > { %s3526_s30 = scalar_lea.vmem %s3525_s26, 32  ;;  %p3527_p10 = scmp.lt.s32.totalorder %s677_s5, %s3525_s26 }
 0x18c   : > { %p3522_p7 = pnand %p3521_p4, %p5052_p0  ;;  %p3528_p13 = scmp.lt.s32.totalorder %s3526_s30, %s3520_s7 }
 0x18e   : > { %p3523_p8 = pneg %p3522_p7  ;;  %p3529_p11 = por %p3528_p13, %p3527_p10 }
 0x190   : > { %p3530_p2 = pnand %p3529_p11, %p3523_p8 }
 0x192   : > { %3533 = shalt.err (!%p3530_p2)
}
 0x193   : > { %s5058_s28 = scalar_lea.sflag [#allocation12], %s4086_s17  ;;  %s5059_s27 = sld [smem:[#allocation63_spill]] }
 0x194   : > { %2994 = dma.hbm_to_vmem [thread:$0]  (%p5052_p0), %s4451_s14, 16, %s677_s5, %s5058_s28  }
 0x195   : > { %s707_s21 = scalar_lea.vmem [#allocation16], %s4089_s24 }
 0x196   : > { %s714_s25 = sshll.u32 %s707_s21, 4  ;;  %s715_s25 = int_to_ptr.vmem [resolvable:$true] %s714_s25 }
 0x199   : > { %s5060_s16 = smov %s5059_s27  ;;  %s4477_s22 = scalar_lea.hbm %s5059_s27, %s4092_s0 }
 0x19a   : > { %s3534_s7 = scalar_lea.hbm %s4477_s22, 16  ;;  %s3538_s14 = scalar_lea.hbm %s5060_s16, 32 }
 0x19b   : > { %p3535_p9 = scmp.ne.s32.totalorder %s4477_s22, %s3534_s7  ;;  %p3539_p3 = scmp.lt.u32.totalorder %s4477_s22, %s5060_s16 }
 0x19c   : > { %p3540_p12 = scmp.lt.u32.totalorder %s3538_s14, %s3534_s7  ;;  %p3542_p4 = scmp.lt.u32.totalorder %s3534_s7, %s4477_s22 }
 0x19d   : > { %p3536_p5 = pnand %p3535_p9, %p5052_p0 }
 0x19e   : > { %p3541_p6 = por %p3540_p12, %p3539_p3 }
 0x19f   : > { %p3537_p1 = pneg %p3536_p5 }
 0x1a0   : > { %p3543_p7 = por %p3542_p4, %p3541_p6 }
 0x1a2   : > { %p3544_p8 = pnand %p3543_p7, %p3537_p1 }
 0x1a4   : > { %3547 = shalt.err (!%p3544_p8)
}
 0x1a5   : > { %s3548_s28 = scalar_lea.vmem %s715_s25, 16  ;;  %s3846_s6 = smov [#allocation16]  }
 0x1a6   : > { %p3549_p10 = scmp.ne.s32.totalorder %s715_s25, %s3548_s28  ;;  %s3552_s23 = sshll.u32 %s3846_s6, 4  ;;  %s3553_s23 = int_to_ptr.vmem [resolvable:$false] %s3552_s23 }
 0x1a7   : > { %s3554_s27 = scalar_lea.vmem %s3553_s23, 32  ;;  %p3555_p2 = scmp.lt.s32.totalorder %s715_s25, %s3553_s23 }
 0x1a8   : > { %p3550_p13 = pnand %p3549_p10, %p5052_p0  ;;  %p3556_p9 = scmp.lt.s32.totalorder %s3554_s27, %s3548_s28 }
 0x1aa   : > { %p3551_p11 = pneg %p3550_p13  ;;  %p3557_p5 = por %p3556_p9, %p3555_p2 }
 0x1ac   : > { %p3558_p3 = pnand %p3557_p5, %p3551_p11 }
 0x1ae   : > { %3561 = shalt.err (!%p3558_p3)
}
 0x1af   : > { %s5061_s21 = scalar_lea.sflag [#allocation15], %s4086_s17  ;;  %s5062_s26 = sld [smem:[#allocation65_spill]] }
 0x1b0   : > { %2996 = dma.hbm_to_vmem [thread:$0]  (%p5052_p0), %s4477_s22, 16, %s715_s25, %s5061_s21  }
 0x1b1   : > { %s745_s30 = scalar_lea.vmem [#allocation19], %s4089_s24 }
 0x1b2   : > { %s752_s28 = sshll.u32 %s745_s30, 4  ;;  %s753_s28 = int_to_ptr.vmem [resolvable:$true] %s752_s28 }
 0x1b5   : > { %s5063_s14 = smov %s5062_s26  ;;  %s4503_s5 = scalar_lea.hbm %s5062_s26, %s4092_s0 }
 0x1b6   : > { %s3562_s6 = scalar_lea.hbm %s4503_s5, 16  ;;  %s3566_s22 = scalar_lea.hbm %s5063_s14, 32 }
 0x1b7   : > { %p3563_p1 = scmp.ne.s32.totalorder %s4503_s5, %s3562_s6  ;;  %p3567_p4 = scmp.lt.u32.totalorder %s4503_s5, %s5063_s14 }
 0x1b8   : > { %p3568_p7 = scmp.lt.u32.totalorder %s3566_s22, %s3562_s6  ;;  %p3570_p10 = scmp.lt.u32.totalorder %s3562_s6, %s4503_s5 }
 0x1b9   : > { %p3564_p12 = pnand %p3563_p1, %p5052_p0 }
 0x1ba   : > { %p3569_p8 = por %p3568_p7, %p3567_p4 }
 0x1bb   : > { %p3565_p6 = pneg %p3564_p12 }
 0x1bc   : > { %p3571_p13 = por %p3570_p10, %p3569_p8 }
 0x1be   : > { %p3572_p11 = pnand %p3571_p13, %p3565_p6 }
 0x1c0   : > { %3575 = shalt.err (!%p3572_p11)
}
 0x1c1   : > { %s3576_s7 = scalar_lea.vmem %s753_s28, 16  ;;  %s3847_s3 = smov [#allocation19]  }
 0x1c2   : > { %p3577_p2 = scmp.ne.s32.totalorder %s753_s28, %s3576_s7  ;;  %s3580_s26 = sshll.u32 %s3847_s3, 4  ;;  %s3581_s26 = int_to_ptr.vmem [resolvable:$false] %s3580_s26 }
 0x1c3   : > { %s3582_s30 = scalar_lea.vmem %s3581_s26, 32  ;;  %p3583_p3 = scmp.lt.s32.totalorder %s753_s28, %s3581_s26 }
 0x1c4   : > { %p3578_p9 = pnand %p3577_p2, %p5052_p0  ;;  %p3584_p1 = scmp.lt.s32.totalorder %s3582_s30, %s3576_s7 }
 0x1c6   : > { %p3579_p5 = pneg %p3578_p9  ;;  %p3585_p12 = por %p3584_p1, %p3583_p3 }
 0x1c8   : > { %p3586_p4 = pnand %p3585_p12, %p3579_p5 }
 0x1ca   : > { %3589 = shalt.err (!%p3586_p4)
}
 0x1cb   : > { %s5064_s6 = scalar_lea.sflag [#allocation18], %s4086_s17  ;;  %s5065_s22 = sld [smem:[#allocation66_spill]] }
 0x1cc   : > { %2998 = dma.hbm_to_vmem [thread:$0]  (%p5052_p0), %s4503_s5, 16, %s753_s28, %s5064_s6  }
 0x1cd   : > { %s779_s21 = scalar_lea.vmem [#allocation22], %s4089_s24  ;;  %s2743_s3 = sshll.u32 %s4089_s24, 1 }
 0x1ce   : > { %s786_s7 = sshll.u32 %s779_s21, 4  ;;  %s787_s7 = int_to_ptr.vmem [resolvable:$true] %s786_s7 }
 0x1d1   : > { %s4529_s25 = scalar_lea.hbm %s5065_s22, %s4092_s0  ;;  %s3594_s28 = scalar_lea.hbm %s5065_s22, 32 }
 0x1d2   : > { %s3590_s26 = scalar_lea.hbm %s4529_s25, 16  ;;  %p3595_p10 = scmp.lt.u32.totalorder %s4529_s25, %s5065_s22 }
 0x1d3   : > { %p3591_p6 = scmp.ne.s32.totalorder %s4529_s25, %s3590_s26  ;;  %p3596_p13 = scmp.lt.u32.totalorder %s3594_s28, %s3590_s26 }
 0x1d4   : > { %p3598_p2 = scmp.lt.u32.totalorder %s3590_s26, %s4529_s25 }
 0x1d5   : > { %p3592_p7 = pnand %p3591_p6, %p5052_p0  ;;  %p3597_p11 = por %p3596_p13, %p3595_p10 }
 0x1d7   : > { %p3593_p8 = pneg %p3592_p7  ;;  %p3599_p9 = por %p3598_p2, %p3597_p11 }
 0x1d9   : > { %p3600_p5 = pnand %p3599_p9, %p3593_p8 }
 0x1db   : > { %3603 = shalt.err (!%p3600_p5)
}
 0x1dc   : > { %s3604_s27 = scalar_lea.vmem %s787_s7, 16  ;;  %s3848_s21 = smov [#allocation22]  }
 0x1dd   : > { %p3605_p3 = scmp.ne.s32.totalorder %s787_s7, %s3604_s27  ;;  %s3608_s20 = sshll.u32 %s3848_s21, 4  ;;  %s3609_s20 = int_to_ptr.vmem [resolvable:$false] %s3608_s20 }
 0x1de   : > { %s3610_s30 = scalar_lea.vmem %s3609_s20, 32  ;;  %p3611_p4 = scmp.lt.s32.totalorder %s787_s7, %s3609_s20 }
 0x1df   : > { %p3606_p1 = pnand %p3605_p3, %p5052_p0  ;;  %p3612_p6 = scmp.lt.s32.totalorder %s3610_s30, %s3604_s27 }
 0x1e1   : > { %p3607_p12 = pneg %p3606_p1  ;;  %p3613_p7 = por %p3612_p6, %p3611_p4 }
 0x1e3   : > { %p3614_p10 = pnand %p3613_p7, %p3607_p12 }
 0x1e5   : > { %3617 = shalt.err (!%p3614_p10)
}
 0x1e6   : > { %s5066_s26 = scalar_lea.sflag [#allocation21], %s4086_s17  ;;  %s2832_s5 = sshll.u32 %s3820_s18, 5 }
 0x1e7   : > { %3000 = dma.hbm_to_vmem [thread:$0]  (%p5052_p0), %s4529_s25, 16, %s787_s7, %s5066_s26  }
 0x1e8   : > { %s5067_s23 = sld [smem:[#allocation67_spill]]  ;;  %s818_s20 = scalar_lea.vmem [#allocation25], %s2743_s3 }
 0x1e9   : > { %s826_s27 = sshll.u32 %s818_s20, 4  ;;  %s827_s27 = int_to_ptr.vmem [resolvable:$true] %s826_s27 }
 0x1ee   : > { %s4556_s21 = scalar_lea.hbm %s5067_s23, %s2832_s5  ;;  %s3622_s26 = scalar_lea.hbm %s5067_s23, 64 }
 0x1ef   : > { %s3618_s30 = scalar_lea.hbm %s4556_s21, 32  ;;  %p3623_p2 = scmp.lt.u32.totalorder %s4556_s21, %s5067_s23 }
 0x1f0   : > { %p3619_p8 = scmp.ne.s32.totalorder %s4556_s21, %s3618_s30  ;;  %p3624_p9 = scmp.lt.u32.totalorder %s3622_s26, %s3618_s30 }
 0x1f1   : > { %p3626_p3 = scmp.lt.u32.totalorder %s3618_s30, %s4556_s21 }
 0x1f2   : > { %p3620_p13 = pnand %p3619_p8, %p5052_p0  ;;  %p3625_p5 = por %p3624_p9, %p3623_p2 }
 0x1f4   : > { %p3621_p11 = pneg %p3620_p13  ;;  %p3627_p1 = por %p3626_p3, %p3625_p5 }
 0x1f6   : > { %p3628_p12 = pnand %p3627_p1, %p3621_p11 }
 0x1f8   : > { %3631 = shalt.err (!%p3628_p12)
}
 0x1f9   : > { %s3632_s3 = scalar_lea.vmem %s827_s27, 32  ;;  %s3849_s6 = smov [#allocation25]  }
 0x1fa   : > { %p3633_p4 = scmp.ne.s32.totalorder %s827_s27, %s3632_s3  ;;  %s3636_s20 = sshll.u32 %s3849_s6, 4  ;;  %s3637_s20 = int_to_ptr.vmem [resolvable:$false] %s3636_s20 }
 0x1fb   : > { %s3638_s25 = scalar_lea.vmem %s3637_s20, 64  ;;  %p3639_p10 = scmp.lt.s32.totalorder %s827_s27, %s3637_s20 }
 0x1fc   : > { %p3634_p6 = pnand %p3633_p4, %p5052_p0  ;;  %p3640_p8 = scmp.lt.s32.totalorder %s3638_s25, %s3632_s3 }
 0x1fe   : > { %p3635_p7 = pneg %p3634_p6  ;;  %p3641_p13 = por %p3640_p8, %p3639_p10 }
 0x200   : > { %p3642_p2 = pnand %p3641_p13, %p3635_p7 }
 0x202   : > { %3645 = shalt.err (!%p3642_p2)
}
 0x203   : > { %s5068_s30 = scalar_lea.sflag [#allocation24], %s4086_s17  ;;  %s5069_s28 = sld [smem:[#allocation68_spill]] }
 0x204   : > { %3002 = dma.hbm_to_vmem [thread:$0]  (%p5052_p0), %s4556_s21, 32, %s827_s27, %s5068_s30  }
 0x205   : > { %s857_s3 = scalar_lea.vmem [#allocation28], %s4089_s24 }
 0x206   : > { %s864_s20 = sshll.u32 %s857_s3, 4  ;;  %s865_s20 = int_to_ptr.vmem [resolvable:$true] %s864_s20 }
 0x209   : > { %s5070_s5 = smov %s5069_s28  ;;  %s4583_s6 = scalar_lea.hbm %s5069_s28, %s4092_s0 }
 0x20a   : > { %s3646_s25 = scalar_lea.hbm %s4583_s6, 16  ;;  %s3650_s21 = scalar_lea.hbm %s5070_s5, 32 }
 0x20b   : > { %p3647_p11 = scmp.ne.s32.totalorder %s4583_s6, %s3646_s25  ;;  %p3651_p3 = scmp.lt.u32.totalorder %s4583_s6, %s5070_s5 }
 0x20c   : > { %p3652_p1 = scmp.lt.u32.totalorder %s3650_s21, %s3646_s25  ;;  %p3654_p4 = scmp.lt.u32.totalorder %s3646_s25, %s4583_s6 }
 0x20d   : > { %p3648_p9 = pnand %p3647_p11, %p5052_p0 }
 0x20e   : > { %p3653_p12 = por %p3652_p1, %p3651_p3 }
 0x20f   : > { %p3649_p5 = pneg %p3648_p9 }
 0x210   : > { %p3655_p6 = por %p3654_p4, %p3653_p12 }
 0x212   : > { %p3656_p7 = pnand %p3655_p6, %p3649_p5 }
 0x214   : > { %3659 = shalt.err (!%p3656_p7)
}
 0x215   : > { %s3660_s24 = scalar_lea.vmem %s865_s20, 16  ;;  %s3850_s0 = smov [#allocation28]  }
 0x216   : > { %p3661_p10 = scmp.ne.s32.totalorder %s865_s20, %s3660_s24  ;;  %s3664_s7 = sshll.u32 %s3850_s0, 4  ;;  %s3665_s7 = int_to_ptr.vmem [resolvable:$false] %s3664_s7 }
 0x217   : > { %s3666_s2 = scalar_lea.vmem %s3665_s7, 32  ;;  %p3667_p2 = scmp.lt.s32.totalorder %s865_s20, %s3665_s7 }
 0x218   : > { %p3662_p8 = pnand %p3661_p10, %p5052_p0  ;;  %p3668_p11 = scmp.lt.s32.totalorder %s3666_s2, %s3660_s24 }
 0x21a   : > { %p3663_p13 = pneg %p3662_p8  ;;  %p3669_p9 = por %p3668_p11, %p3667_p2 }
 0x21c   : > { %p3670_p1 = pnand %p3669_p9, %p3663_p13 }
 0x21e   : > { %3673 = shalt.err (!%p3670_p1)
}
 0x21f   : > { %s5071_s4 = scalar_lea.sflag [#allocation27], %s4086_s17 }
 0x220   : > { %3004 = dma.hbm_to_vmem [thread:$0]  (%p5052_p0), %s4583_s6, 16, %s865_s20, %s5071_s4  }
 0x221 PF: > { %p2750_p5 = scmp.ge.s32.totalorder %s3828_s1, 1  ;;  %p869_p3 = scmp.lt.s32.totalorder %s3828_s1, 5 }
 0x223   : > { %p870_p12 = pnand %p2750_p5, %p869_p3 }
 0x224   : > { %s5072_s26 = sld [smem:[#allocation43_spill]] (!%p870_p12)  ;;  %s5073_s28 = sld [smem:[#allocation49_spill]] (!%p870_p12) }
 0x225   : > { %873 = sbr.rel (%p870_p12) target bundleno = 3192 (0xc78), region = 88 }
 0x22a   : > { %s4608_s3 = sand.u32 (!%p870_p12), 1, %s5072_s26   ;;  %p5074_p0 = scmp.ne.s32.totalorder (!%p870_p12), %s5073_s28, 0 }
 0x22b   : > { %s5001_s25 = sshll.u32 (!%p870_p12), %s4608_s3, 3  ;;  %s876_s8 = scalar_lea.sflag (!%p870_p12), [#allocation3], %s4608_s3 }
 0x22c   : > { %s4614_s17 = scalar_lea.vmem [#allocation2], %s5001_s25 }
 0x22d   : > { %3747 = dma.done.wait (%p5074_p0), %s876_s8, 128  }
 0x22e   : > { %3749 = vsyncadd (%p5074_p0), %s876_s8, 4294967168  ;;  %s5075_s6 = sld [smem:[#allocation46_spill]]  ;;  %s5076_s20 = sld [smem:[#allocation40_spill]] }
 0x22f   : > { %s5077_s21 = sld [smem:[#allocation52_spill]] }
 0x234   : > { %s4621_s27 = sand.u32 1, %s5075_s6   ;;  %s4624_s30 = sand.u32 1, %s5076_s20  }
 0x235   : > { %s885_s24 = scalar_lea.sflag [#allocation6], %s4621_s27  ;;  %p5078_p4 = scmp.ne.s32.totalorder %s5077_s21, 0 }
 0x237   : > { %3751 = dma.done.wait (%p5078_p4), %s885_s24, 32  }
 0x238   : > { %3753 = vsyncadd (%p5078_p4), %s885_s24, 4294967264  ;;  %s2752_s7 = sshll.u32 %s4624_s30, 5  ;;  %s901_s4 = scalar_lea.sflag [#allocation9], %s4621_s27 }
 0x239   : > { %s4635_s26 = scalar_lea.vmem [#allocation8], %s2752_s7 }
 0x23a   : > { %3755 = dma.done.wait (%p5078_p4), %s901_s4, 528  }
 0x23b   : > { %3757 = vsyncadd (%p5078_p4), %s901_s4, 4294966768  ;;  %s918_s8 = scalar_lea.sflag [#allocation12], %s4621_s27  ;;  %s4643_s6 = scalar_lea.vmem [#allocation11], %s2752_s7 }
 0x23c   : > { %3759 = dma.done.wait (%p5078_p4), %s918_s8, 528  }
 0x23d   : > { %3761 = vsyncadd (%p5078_p4), %s918_s8, 4294966768  ;;  %s935_s24 = scalar_lea.sflag [#allocation15], %s4621_s27  ;;  %s4651_s2 = scalar_lea.vmem [#allocation14], %s2752_s7 }
 0x23e   : > { %3763 = dma.done.wait (%p5078_p4), %s935_s24, 528  }
 0x23f   : > { %3765 = vsyncadd (%p5078_p4), %s935_s24, 4294966768  ;;  %s952_s28 = scalar_lea.sflag [#allocation18], %s4621_s27  ;;  %s4659_s0 = scalar_lea.vmem [#allocation17], %s2752_s7 }
 0x240   : > { %3767 = dma.done.wait (%p5078_p4), %s952_s28, 528  }
 0x241   : > { %3769 = vsyncadd (%p5078_p4), %s952_s28, 4294966768  ;;  %s969_s20 = scalar_lea.sflag [#allocation21], %s4621_s27 }
 0x242   : > { %3771 = dma.done.wait (%p5078_p4), %s969_s20, 32  }
 0x243   : > { %3773 = vsyncadd (%p5078_p4), %s969_s20, 4294967264  ;;  %s2756_s7 = sshll.u32 %s4624_s30, 6  ;;  %s985_s4 = scalar_lea.sflag [#allocation24], %s4621_s27 }
 0x244   : > { %s4675_s28 = scalar_lea.vmem [#allocation23], %s2756_s7 }
 0x245   : > { %3775 = dma.done.wait (%p5078_p4), %s985_s4, 1056  }
 0x246   : > { %3777 = vsyncadd (%p5078_p4), %s985_s4, 4294966240  ;;  %s2757_s25 = sshll.u32 %s4624_s30, 1  ;;  %s2758_s20 = sshll.u32 %s4624_s30, 7 }
 0x247   : > { %s4683_s8 = scalar_lea.vmem [#allocation25], %s2757_s25  ;;  %s1003_s5 = scalar_lea.sflag [#allocation27], %s4621_s27 }
 0x248   : > { %s4686_s9 = scalar_lea.vmem [#allocation26], %s2758_s20 }
 0x249   : > { %3779 = dma.done.wait (%p5078_p4), %s1003_s5, 2064  }
 0x24a   : > { %3781 = vsyncadd (%p5078_p4), %s1003_s5, 4294965232  ;;  %s1014_s7 = scalar_lea.vmem [#allocation28], %s4624_s30  ;;  %s5079_s4 = sshll.u32 %s4608_s3, 3 }
 0x24b   : > { %s4695_s24 = scalar_lea.vmem [#allocation29], %s5079_s4  ;;  %s5080_s10 = sld [smem:[#allocation44_spill]] }
 0x251   : > { %p2760_p6 = scmp.ne.s32.totalorder %s5080_s10, 0 }
 0x252   : > { %v1141_v0 = vld [vmem:[%s4614_s17] sm:$0xff] (!%p2760_p6)  ;;  %vm1142_vm0 = vcmask (!%p2760_p6), 523264  }
 0x253   : > { %1140 = sbr.rel (%p2760_p6) target bundleno = 602 (0x25a), region = 160  ;;  %1143 = vst.msk [vmem:[%s4695_s24] sm:$0xff] (!%p2760_p6), %vm1142_vm0, %v1141_v0 }
 0x25a PF: > { %v4701_v1 = vld [vmem:[%s4695_s24] sm:$0xff]  ;;  %vm1147_vm1 = vcmask 523264   ;;  %v3131_v9 = vld [vmem:[%s4651_s2] sm:$0xff]   ;;  %v3851_v10 = vmov 0.0   ;;  %vm3852_vm2 = vmmov 0   ;;  %s5081_s10 = scalar_lea.vmem [#allocation5], %s4624_s30  ;;  %v1417_v63 = vlaneseq }
 0x25b   : > { %v1148_v2 = vsel %vm1147_vm1, %v4701_v1, 0.0  ;;  %v3130_v8 = vld [vmem:[%s4635_s26] sm:$0xff]   ;;  %2892 = vmatprep.subr.bf16.mxu1 %v3851_v10  ;;  %2916 = vmatprep.subr.bf16.mxu0 %v3851_v10  ;;  %v3132_v11 = vld [vmem:[%s4635_s26 + $0x8] sm:$0xff]   ;;  %v3134_v13 = vld [vmem:[%s4635_s26 + $0x10] sm:$0xff]   ;;  %s5082_s5 = scalar_lea.vmem [#allocation7], %s4624_s30  ;;  %s5083_s25 = scalar_lea.vmem [#allocation13], %s4624_s30 }
 0x25c   : > { %1149 = vadd.xlane.f32.xlu0 %v1148_v2  ;;  %2893 = vmatpush3.bf16.msra.mxu1 %v3130_v8  ;;  %v3133_v12 = vld [vmem:[%s4651_s2 + $0x8] sm:$0xff]   ;;  %v3135_v14 = vld [vmem:[%s4651_s2 + $0x10] sm:$0xff]   ;;  %v3137_v16 = vld [vmem:[%s4651_s2 + $0x18] sm:$0xff]   ;;  %s5084_s17 = scalar_lea.vmem [#allocation10], %s4624_s30  ;;  %s5085_s21 = scalar_lea.vmem [#allocation16], %s4624_s30  ;;  %vm1423_vm3 = vcmask 130048  }
 0x25d   : > { %2917 = vmatpush3.bf16.msra.mxu0 %v3131_v9  ;;  %2894 = vmatprep.subr.bf16.mxu1 %v3851_v10  ;;  %v3136_v15 = vld [vmem:[%s4635_s26 + $0x18] sm:$0xff]   ;;  %v2761_v21 = vld [vmem:[%s5081_s10] ss:$0 sm:$0xff]  ;;  %v3138_v26 = vld [vmem:[%s4643_s6] sm:$0xff]   ;;  %s3853_s27 = smov 96   ;;  %s3854_s2 = smov 112  }
 0x25e   : > { %2918 = vmatprep.subr.bf16.mxu0 %v3851_v10  ;;  %2900 = vmatprep.mubr.msk.bf16.mxu1 %vm3852_vm2, %v3851_v10  ;;  %v2762_v23 = vld [vmem:[%s5082_s5] ss:$0 sm:$0xff]  ;;  %v3140_v29 = vld [vmem:[%s4643_s6 + $0x10] sm:$0xff]   ;;  %v3141_v30 = vld [vmem:[%s4643_s6 + $0x18] sm:$0xff]   ;;  %vm1489_vm4 = vcmask 1043456   ;;  %s3855_s26 = smov 80  }
 0x25f   : > { %2924 = vmatprep.mubr.msk.bf16.mxu0 %vm3852_vm2, %v3851_v10  ;;  %v3139_v28 = vld [vmem:[%s4643_s6 + $0x8] sm:$0xff]   ;;  %v1418_v0 = vand.u32 127, %v1417_v63  ;;  %vm1473_vm6 = vcmask 64512   ;;  %s3856_s6 = smov 16   ;;  %s3857_s20 = smov 32   ;;  %vm1882_vm7 = vcmask 261120  }
 0x260   : > { %2895 = vmatpush3.bf16.msra.mxu1 %v3132_v11  ;;  %v2769_v39 = vld [vmem:[%s5083_s25] ss:$0 sm:$0xff]  ;;  %s3858_s4 = smov 48   ;;  %vm1884_vm8 = vcmask 392192   ;;  %s5087_s10 = scalar_lea.vmem [#allocation20], %s4624_s30 }
 0x261   : > { %2919 = vmatpush3.bf16.msra.mxu0 %v3133_v12  ;;  %2896 = vmatprep.subr.bf16.mxu1 %v3851_v10  ;;  %v2763_v40 = vld [vmem:[%s5084_s17] ss:$0 sm:$0xff]  ;;  %vm1419_vm5 = vcmp.lt.s32.totalorder %v1418_v0, 5  ;;  %s5088_s5 = scalar_lea.vmem [#allocation22], %s4624_s30  ;;  %s2316_s25 = sshll.u32 %s4695_s24, 4  ;;  %s4880_s25 = int_to_ptr.vmem [resolvable:$true] %s2316_s25 }
 0x262   : > { %2920 = vmatprep.subr.bf16.mxu0 %v3851_v10  ;;  %v2775_v44 = vld [vmem:[%s5085_s21] ss:$0 sm:$0xff] }
 0x264   : > { %2897 = vmatpush3.bf16.msra.mxu1 %v3134_v13 }
 0x265   : > { %2921 = vmatpush3.bf16.msra.mxu0 %v3135_v14  ;;  %2898 = vmatprep.subr.bf16.mxu1 %v3851_v10 }
 0x266   : > { %2922 = vmatprep.subr.bf16.mxu0 %v3851_v10 }
 0x268   : > { %2899 = vmatpush3.bf16.msra.mxu1 %v3136_v15 }
 0x269   : > { %2923 = vmatpush3.bf16.msra.mxu0 %v3137_v16  ;;  %2904 = vmatprep.subr.bf16.mxu1 %v3851_v10 }
 0x26a   : > { %2940 = vmatprep.subr.bf16.mxu0 %v3851_v10 }
 0x2e9   : > { %v1150_v3 = vpop.xlane.xlu0 %1149 }
 0x2ea   : > { %v1152_v4 = vmul.f32 0.015625, %v1150_v3 }
 0x2ec   : > { %v1153_v5 = vsub.f32 %v4701_v1, %v1152_v4 }
 0x2ee   : > { %v1154_v6 = vmul.f32 %v1153_v5, %v1153_v5 }
 0x2f0   : > { %v1155_v7 = vsel %vm1147_vm1, %v1154_v6, 0.0 }
 0x2f1   : > { %1156 = vadd.xlane.f32.xlu0 %v1155_v7 }
 0x37e   : > { %v1157_v17 = vpop.xlane.xlu0 %1156 }
 0x37f   : > { %v1158_v18 = vmul.f32 0.015625, %v1157_v17 }
 0x381   : > { %v1159_v19 = vadd.f32 1e-06, %v1158_v18 }
 0x383   : > { %3174 = vrsqrt.f32 %v1159_v19 }
 0x38d   : > { %v3175_v20 = vpop.eup %3174 }
 0x38e   : > { %v1161_v22 = vmul.f32 %v3175_v20, %v1153_v5 }
 0x390   : > { %v1168_v24 = vmul.f32 %v2761_v21, %v1161_v22 }
 0x392   : > { %v1175_v25 = vadd.f32 %v2762_v23, %v1168_v24 }
 0x394   : > { %v1176_v27 = vpack.c.bf16 %v1175_v25, %v1175_v25 }
 0x396   : > { %2901 = vmatmul.mubr.msk.bf16.vlgmr.msra.gmra.mrb[0].mxu1 %vm1147_vm1, %v1176_v27  ;;  %2925 = vmatmul.mubr.msk.bf16.vlgmr.msra.gmra.mrb[0].mxu0 %vm1147_vm1, %v1176_v27 }
 0x397   : > { %2905 = vmatpush3.bf16.msra.mxu1 %v3138_v26  ;;  %2912 = vmatprep.mubr.msk.bf16.mxu1 %vm3852_vm2, %v3851_v10 }
 0x398   : > { %2906 = vmatprep.subr.bf16.mxu1 %v3851_v10  ;;  %2942 = vmatprep.mubr.msk.bf16.mxu0 %vm3852_vm2, %v3851_v10 }
 0x39b   : > { %2907 = vmatpush3.bf16.msra.mxu1 %v3139_v28 }
 0x39c   : > { %2908 = vmatprep.subr.bf16.mxu1 %v3851_v10 }
 0x39f   : > { %2909 = vmatpush3.bf16.msra.mxu1 %v3140_v29 }
 0x3a0   : > { %2910 = vmatprep.subr.bf16.mxu1 %v3851_v10 }
 0x3a3   : > { %2911 = vmatpush3.bf16.msra.mxu1 %v3141_v30 }
 0x3a4   : > { %2928 = vmatprep.subr.bf16.mxu1 %v3851_v10 }
 0x3a6   : > { %2913 = vmatmul.mubr.msk.bf16.vlgmr.msra.gmra.mrb[4].mxu1 %vm1147_vm1, %v1176_v27 }
 0x3a7   : > { %2930 = vmatprep.mubr.msk.bf16.mxu1 %vm3852_vm2, %v3851_v10 }
 0x469   : > { %v1253_v31 = vpop.f32.mrb[0].mxu1  ;;  %v1411_v32 = vpop.f32.mrb[0].mxu0 }
 0x46a   : > { %v2902_v33 = vpop.f32.mrb[1].mxu1  ;;  %v2926_v34 = vpop.f32.mrb[1].mxu0  ;;  %v1254_v46 = vadd.f32 %v2763_v40, %v1253_v31  ;;  %v1412_v49 = vadd.f32 %v2775_v44, %v1411_v32 }
 0x46b   : > { %v1256_v35 = vpop.f32.mrb[2].mxu1  ;;  %v1414_v36 = vpop.f32.mrb[2].mxu0 }
 0x46c   : > { %v2903_v37 = vpop.f32.mrb[3].mxu1  ;;  %v2927_v38 = vpop.f32.mrb[3].mxu0  ;;  %v1420_v51 = vpack.c.bf16 %v1254_v46, %v1254_v46  ;;  %v4760_v52 = vpack.c.bf16 %v1412_v49, %v1412_v49 }
 0x46e   : > { %v1491_v53 = vsel %vm1489_vm4, %v4760_v52, 0 }
 0x479   : > { %v1332_v41 = vpop.f32.mrb[4].mxu1 }
 0x47a   : > { %v1333_v42 = vadd.f32 %v2769_v39, %v1332_v41  ;;  %v2914_v43 = vpop.f32.mrb[5].mxu1 }
 0x47b   : > { %v1335_v45 = vpop.f32.mrb[6].mxu1 }
 0x47c   : > { %v1421_v47 = vpack.c.bf16 %v1333_v42, %v1333_v42  ;;  %v2915_v48 = vpop.f32.mrb[7].mxu1 }
 0x47e   : > { %1649 = vrot.lane.b32.xlu0 %v1421_v47, %s3853_s27  ;;  %1537 = vrot.lane.b32.xlu1 %v1421_v47, %s3854_s2  ;;  %v1428_v50 = vsel %vm1423_vm3, %v1421_v47, 0 }
 0x47f   : > { %2929 = vmatpush3.bf16.xpose.msra.mxu1 %v1428_v50 }
 0x480   : > { %2934 = vmatprep.subr.bf16.mxu1 %v3851_v10 }
 0x482   : > { %1534 = vrot.lane.b32.xlu1 %v1420_v51, %s3854_s2 }
 0x486   : > { %1647 = vrot.lane.b32.xlu1 %v1420_v51, %s3853_s27  ;;  %2931 = vmatmul.mubr.msk.bf16.vlgmr.msra.gmra.mrb[8].mxu1 %vm1423_vm3, %v1420_v51 }
 0x487   : > { %2935 = vmatpush3.bf16.msra.mxu1 %v1491_v53  ;;  %2936 = vmatprep.mubr.msk.bf16.mxu1 %vm3852_vm2, %v3851_v10 }
 0x488   : > { %2946 = vmatprep.subr.bf16.mxu1 %v3851_v10 }
 0x48a   : > { %1760 = vrot.lane.b32.xlu1 %v1421_v47, %s3855_s26 }
 0x48e   : > { %1758 = vrot.lane.b32.xlu1 %v1420_v51, %s3855_s26 }
 0x4f0   : > { %v1538_v54 = vpop.permute.xlu1 %1537  ;;  %v1650_v57 = vpop.permute.xlu0 %1649 }
 0x4f1   : > { %v1543_v55 = vsel %vm1423_vm3, %v1538_v54, 0  ;;  %v1655_v59 = vsel %vm1423_vm3, %v1650_v57, 0 }
 0x4f2   : > { %2941 = vmatpush3.bf16.xpose.msra.mxu0 %v1543_v55 }
 0x4f3   : > { %2952 = vmatprep.subr.bf16.mxu0 %v3851_v10 }
 0x4f4   : > { %v1535_v56 = vpop.permute.xlu1 %1534 }
 0x4f8   : > { %v1648_v58 = vpop.permute.xlu1 %1647 }
 0x4f9   : > { %2943 = vmatmul.mubr.msk.bf16.vlgmr.msra.gmra.mrb[4].mxu0 %vm1423_vm3, %v1535_v56 }
 0x4fa   : > { %2953 = vmatpush3.bf16.xpose.msra.mxu0 %v1655_v59  ;;  %2954 = vmatprep.mubr.msk.bf16.mxu0 %vm3852_vm2, %v3851_v10 }
 0x4fb   : > { %2964 = vmatprep.subr.bf16.mxu0 %v3851_v10 }
 0x4fc   : > { %v1761_v60 = vpop.permute.xlu1 %1760 }
 0x4fd   : > { %v1766_v61 = vsel %vm1423_vm3, %v1761_v60, 0 }
 0x500   : > { %v1759_v62 = vpop.permute.xlu1 %1758 }
 0x501   : > { %2955 = vmatmul.mubr.msk.bf16.vlgmr.msra.gmra.mrb[8].mxu0 %vm1423_vm3, %v1648_v58 }
 0x502   : > { %2965 = vmatpush3.bf16.xpose.msra.mxu0 %v1766_v61  ;;  %2966 = vmatprep.mubr.msk.bf16.mxu0 %vm3852_vm2, %v3851_v10 }
 0x503   : > { %2976 = vmatprep.subr.bf16.mxu0 %v3851_v10 }
 0x509   : > { %2967 = vmatmul.mubr.msk.bf16.vlgmr.msra.gmra.mrb[12].mxu0 %vm1423_vm3, %v1759_v62 }
 0x50a   : > { %2984 = vmatprep.mubr.msk.bf16.mxu0 %vm3852_vm2, %v3851_v10 }
 0x559   : > { %v1464_v2 = vpop.f32.mrb[8].mxu1 }
 0x55a   : > { %v1472_v3 = vsel %vm1419_vm5, %v1464_v2, -1e+30  ;;  %v2932_v4 = vpop.f32.mrb[9].mxu1 }
 0x55b   : > { %v1467_v5 = vpop.f32.mrb[10].mxu1  ;;  %v1474_v6 = vsel %vm1473_vm6, %v1472_v3, -inf }
 0x55c   : > { %1475 = vmax.xlane.f32.xlu1 %v1474_v6  ;;  %v2933_v7 = vpop.f32.mrb[11].mxu1 }
 0x5cc   : > { %v1579_v8 = vpop.f32.mrb[4].mxu0 }
 0x5cd   : > { %v1585_v9 = vsel %vm1419_vm5, %v1579_v8, -1e+30  ;;  %v2944_v11 = vpop.f32.mrb[5].mxu0 }
 0x5ce   : > { %v1582_v12 = vpop.f32.mrb[6].mxu0  ;;  %v1586_v13 = vsel %vm1473_vm6, %v1585_v9, -inf }
 0x5cf   : > { %1587 = vmax.xlane.f32.xlu0 %v1586_v13  ;;  %v2945_v14 = vpop.f32.mrb[7].mxu0  ;;  %v3142_v12 = vld [vmem:[%s4659_s0] sm:$0xff]   ;;  %v3143_v13 = vld [vmem:[%s4659_s0 + $0x8] sm:$0xff]  }
 0x5d0   : > { %2977 = vmatpush3.bf16.msra.mxu0 %v3142_v12  ;;  %v3166_v12 = vld [vmem:[%s4686_s9 + $0x60] sm:$0xff]  }
 0x5d1   : > { %2978 = vmatprep.subr.bf16.mxu0 %v3851_v10 }
 0x5d4   : > { %v1691_v15 = vpop.f32.mrb[8].mxu0  ;;  %2979 = vmatpush3.bf16.msra.mxu0 %v3143_v13  ;;  %v3167_v13 = vld [vmem:[%s4686_s9 + $0x20] sm:$0xff]  }
 0x5d5   : > { %v1697_v16 = vsel %vm1419_vm5, %v1691_v15, -1e+30  ;;  %v2956_v17 = vpop.f32.mrb[9].mxu0  ;;  %2980 = vmatprep.subr.bf16.mxu0 %v3851_v10 }
 0x5d6   : > { %v1694_v18 = vpop.f32.mrb[10].mxu0  ;;  %v1698_v19 = vsel %vm1473_vm6, %v1697_v16, -inf  ;;  %v3144_v17 = vld [vmem:[%s4659_s0 + $0x10] sm:$0xff]  }
 0x5d7   : > { %v2957_v20 = vpop.f32.mrb[11].mxu0  ;;  %1699 = vmax.xlane.f32.xlu1 %v1698_v19 }
 0x5d8   : > { %2981 = vmatpush3.bf16.msra.mxu0 %v3144_v17  ;;  %v3171_v17 = vld [vmem:[%s4686_s9 + $0x30] sm:$0xff]  }
 0x5d9   : > { %2982 = vmatprep.subr.bf16.mxu0 %v3851_v10 }
 0x5dc   : > { %v1802_v21 = vpop.f32.mrb[12].mxu0 }
 0x5dd   : > { %v1808_v22 = vsel %vm1419_vm5, %v1802_v21, -1e+30  ;;  %v2968_v23 = vpop.f32.mrb[13].mxu0 }
 0x5de   : > { %v1805_v24 = vpop.f32.mrb[14].mxu0  ;;  %v1809_v25 = vsel %vm1473_vm6, %v1808_v22, -inf  ;;  %v3145_v23 = vld [vmem:[%s4659_s0 + $0x18] sm:$0xff]   ;;  %s5086_s0 = scalar_lea.vmem [#allocation19], %s4624_s30  ;;  %s2303_s30 = scalar_lea.sflag [#allocation4], %s4608_s3 }
 0x5df   : > { %v2969_v26 = vpop.f32.mrb[15].mxu0  ;;  %1810 = vmax.xlane.f32.xlu1 %v1809_v25  ;;  %2983 = vmatpush3.bf16.msra.mxu0 %v3145_v23 }
 0x5e9   : > { %v1476_v27 = vpop.xlane.xlu1 %1475 }
 0x5ea   : > { %v1477_v28 = vsub.f32 %v1472_v3, %v1476_v27 }
 0x5ec   : > { %v1478_v29 = vmul.f32 1.442695, %v1477_v28 }
 0x5ee   : > { %3176 = vpow2.f32 %v1478_v29 }
 0x5f8   : > { %v3177_v30 = vpop.eup %3176 }
 0x5f9   : > { %v1480_v31 = vsel %vm1473_vm6, %v3177_v30, 0.0 }
 0x5fa   : > { %1481 = vadd.xlane.f32.xlu0 %v1480_v31 }
 0x65c   : > { %v1588_v32 = vpop.xlane.xlu0 %1587 }
 0x65d   : > { %v1589_v33 = vsub.f32 %v1585_v9, %v1588_v32 }
 0x65f   : > { %v1590_v34 = vmul.f32 1.442695, %v1589_v33 }
 0x661   : > { %3178 = vpow2.f32 %v1590_v34 }
 0x664   : > { %v1700_v35 = vpop.xlane.xlu1 %1699 }
 0x665   : > { %v1701_v36 = vsub.f32 %v1697_v16, %v1700_v35  ;;  %v2794_v35 = vld [vmem:[%s5086_s0] ss:$0 sm:$0xff] }
 0x667   : > { %v1702_v37 = vmul.f32 1.442695, %v1701_v36 }
 0x669   : > { %3180 = vpow2.f32 %v1702_v37 }
 0x66b   : > { %v3179_v38 = vpop.eup %3178 }
 0x66c   : > { %v1592_v39 = vsel %vm1473_vm6, %v3179_v38, 0.0  ;;  %v1811_v43 = vpop.xlane.xlu1 %1810 }
 0x66d   : > { %1593 = vadd.xlane.f32.xlu1 %v1592_v39  ;;  %v1812_v44 = vsub.f32 %v1808_v22, %v1811_v43 }
 0x66f   : > { %v1813_v45 = vmul.f32 1.442695, %v1812_v44 }
 0x673   : > { %v3181_v40 = vpop.eup %3180 }
 0x674   : > { %v1704_v41 = vsel %vm1473_vm6, %v3181_v40, 0.0 }
 0x675   : > { %1705 = vadd.xlane.f32.xlu0 %v1704_v41 }
 0x67e   : > { %1710 = vrot.lane.b32.xlu1 %v4760_v52, %s3853_s27  ;;  %s5091_s27 = sld [smem:[#allocation69_spill]] }
 0x687   : > { %v1482_v42 = vpop.xlane.xlu0 %1481 }
 0x688   : > { %3182 = vrcp.f32 %v1482_v42 }
 0x689   : > { %3184 = vpow2.f32 %v1813_v45 }
 0x68b   : > { %1599 = vrot.lane.b32.xlu0 %v4760_v52, %s3854_s2  ;;  %s5092_s2 = smov %s5091_s27 }
 0x692   : > { %v3183_v46 = vpop.eup %3182 }
 0x693   : > { %v1484_v47 = vmul.f32 %v3183_v46, %v3177_v30  ;;  %v3185_v49 = vpop.eup %3184  ;;  %v3148_v46 = vld [vmem:[%s4675_s28 + $0x4] ss:$8 sps:$4 sm:$0xff]  }
 0x694   : > { %v1815_v50 = vsel %vm1473_vm6, %v3185_v49, 0.0 }
 0x695   : > { %v1485_v48 = vpack.c.bf16 %v1484_v47, %v1484_v47  ;;  %v3146_v47 = vld [vmem:[%s4675_s28] ss:$8 sps:$4 sm:$0xff]  }
 0x697   : > { %2937 = vmatmul.mubr.msk.bf16.vlgmr.msra.gmra.mrb[12].mxu1 %vm1473_vm6, %v1485_v48  ;;  %v3151_v48 = vld [vmem:[%s4675_s28 + $0x14] ss:$8 sps:$4 sm:$0xff]  }
 0x698   : > { %2948 = vmatprep.mubr.msk.bf16.mxu1 %vm3852_vm2, %v3851_v10 }
 0x6a2   : > { %1816 = vadd.xlane.f32.xlu1 %v1815_v50  ;;  %v3154_v50 = vld [vmem:[%s4675_s28 + $0x24] ss:$8 sps:$4 sm:$0xff]  }
 0x6b3   : > { %1821 = vrot.lane.b32.xlu1 %v4760_v52, %s3855_s26 }
 0x6fa   : > { %v1594_v51 = vpop.xlane.xlu1 %1593 }
 0x6fb   : > { %3186 = vrcp.f32 %v1594_v51  ;;  %v3152_v51 = vld [vmem:[%s4675_s28 + $0x20] ss:$8 sps:$4 sm:$0xff]  }
 0x6fe   : > { %v1711_v58 = vpop.permute.xlu1 %1710 }
 0x6ff   : > { %v1716_v60 = vsel %vm1489_vm4, %v1711_v58, 0 }
 0x702   : > { %v1706_v53 = vpop.xlane.xlu0 %1705 }
 0x703   : > { %3188 = vrcp.f32 %v1706_v53  ;;  %v3155_v53 = vld [vmem:[%s4675_s28 + $0x30] ss:$8 sps:$4 sm:$0xff]  }
 0x705   : > { %v3187_v54 = vpop.eup %3186 }
 0x706   : > { %v1596_v55 = vmul.f32 %v3187_v54, %v3179_v38  ;;  %v1600_v56 = vpop.permute.xlu0 %1599  ;;  %v3157_v54 = vld [vmem:[%s4675_s28 + $0x34] ss:$8 sps:$4 sm:$0xff]  }
 0x707   : > { %v1605_v57 = vsel %vm1489_vm4, %v1600_v56, 0 }
 0x708   : > { %2947 = vmatpush3.bf16.msra.mxu1 %v1605_v57  ;;  %v1597_v59 = vpack.c.bf16 %v1596_v55, %v1596_v55  ;;  %v3859_v55 = vmov 0  }
 0x709   : > { %2958 = vmatprep.subr.bf16.mxu1 %v3851_v10 }
 0x70b   : > { %2949 = vmatmul.mubr.msk.bf16.vlgmr.msra.gmra.mrb[16].mxu1 %vm1473_vm6, %v1597_v59 }
 0x70c   : > { %2959 = vmatpush3.bf16.msra.mxu1 %v1716_v60  ;;  %2960 = vmatprep.mubr.msk.bf16.mxu1 %vm3852_vm2, %v3851_v10  ;;  %v2795_v60 = vld [vmem:[%s5087_s10] ss:$0 sm:$0xff] }
 0x70d   : > { %v3189_v52 = vpop.eup %3188  ;;  %2970 = vmatprep.subr.bf16.mxu1 %v3851_v10 }
 0x70e   : > { %v1708_v61 = vmul.f32 %v3189_v52, %v3181_v40 }
 0x710   : > { %v1709_v62 = vpack.c.bf16 %v1708_v61, %v1708_v61  ;;  %v2796_v61 = vld [vmem:[%s5088_s5] ss:$0 sm:$0xff] }
 0x713   : > { %2961 = vmatmul.mubr.msk.bf16.vlgmr.msra.gmra.mrb[20].mxu1 %vm1473_vm6, %v1709_v62 }
 0x714   : > { %2972 = vmatprep.mubr.msk.bf16.mxu1 %vm3852_vm2, %v3851_v10 }
 0x72f   : > { %v1817_v0 = vpop.xlane.xlu1 %1816 }
 0x730   : > { %3190 = vrcp.f32 %v1817_v0 }
 0x733   : > { %v1822_v2 = vpop.permute.xlu1 %1821 }
 0x734   : > { %v1827_v3 = vsel %vm1489_vm4, %v1822_v2, 0 }
 0x735   : > { %2971 = vmatpush3.bf16.msra.mxu1 %v1827_v3  ;;  %v3158_v3 = vld [vmem:[%s4686_s9 + $0x40] sm:$0xff]  }
 0x736   : > { %2064 = vmatprep.subr.bf16.mxu1 %v3148_v46  ;;  %2870 = vmatprep.subr.bf16.mxu0 %v3158_v3 }
 0x73a   : > { %v3191_v4 = vpop.eup %3190 }
 0x73b   : > { %v1819_v5 = vmul.f32 %v3191_v4, %v3185_v49  ;;  %v3149_v49 = vld [vmem:[%s4675_s28 + $0x10] ss:$8 sps:$4 sm:$0xff]   ;;  %v3159_v4 = vld [vmem:[%s4686_s9] sm:$0xff]  }
 0x73d   : > { %v1820_v6 = vpack.c.bf16 %v1819_v5, %v1819_v5  ;;  %v3160_v5 = vld [vmem:[%s4686_s9 + $0x48] sm:$0xff]  }
 0x73f   : > { %2973 = vmatmul.mubr.msk.bf16.vlgmr.msra.gmra.mrb[24].mxu1 %vm1473_vm6, %v1820_v6  ;;  %v3161_v6 = vld [vmem:[%s4686_s9 + $0x8] sm:$0xff]  }
 0x740   : > { %2065 = vmatpush1.bf16.msra.mxu1 %v3146_v47  ;;  %2096 = vmatprep.mubr.bf16.mxu1 %v3859_v55 }
 0x741   : > { %2066 = vmatprep.subr.bf16.mxu1 %v3151_v48 }
 0x744   : > { %2067 = vmatpush1.bf16.msra.mxu1 %v3149_v49 }
 0x745   : > { %2068 = vmatprep.subr.bf16.mxu1 %v3154_v50 }
 0x748   : > { %2069 = vmatpush1.bf16.msra.mxu1 %v3152_v51  ;;  %v2806_v51 = vld [vmem:[%s1014_s7] ss:$0 sm:$0xff]  ;;  %s3674_s7 = scalar_lea.vmem %s4880_s25, 128 }
 0x749   : > { %2070 = vmatprep.subr.bf16.mxu1 %v3157_v54  ;;  %p3675_p7 = scmp.ne.s32.totalorder %s4880_s25, %s3674_s7 }
 0x74c   : > { %2071 = vmatpush1.bf16.msra.mxu1 %v3155_v53 }
 0x76a   : > { %v1527_v7 = vpop.f32.mrb[12].mxu1 }
 0x76b   : > { %v2938_v8 = vpop.f32.mrb[13].mxu1 }
 0x76c   : > { %v1530_v9 = vpop.f32.mrb[14].mxu1  ;;  %v3163_v8 = vld [vmem:[%s4686_s9 + $0x10] sm:$0xff]  }
 0x76d   : > { %v2939_v11 = vpop.f32.mrb[15].mxu1  ;;  %v3164_v9 = vld [vmem:[%s4686_s9 + $0x58] sm:$0xff]  }
 0x76e   : > { %v3165_v11 = vld [vmem:[%s4686_s9 + $0x18] sm:$0xff]  }
 0x7de   : > { %v1641_v14 = vpop.f32.mrb[16].mxu1 }
 0x7df   : > { %1870 = vrot.lane.b32.xlu0 %v1641_v14, %s3856_s6  ;;  %v2950_v15 = vpop.f32.mrb[17].mxu1  ;;  %v3168_v14 = vld [vmem:[%s4686_s9 + $0x68] sm:$0xff]   ;;  %s3860_s6 = smov [#allocation29]  }
 0x7e0   : > { %v1644_v16 = vpop.f32.mrb[18].mxu1  ;;  %v3169_v15 = vld [vmem:[%s4686_s9 + $0x28] sm:$0xff]  }
 0x7e1   : > { %v2951_v18 = vpop.f32.mrb[19].mxu1  ;;  %v3170_v16 = vld [vmem:[%s4686_s9 + $0x70] sm:$0xff]  }
 0x7e2   : > { %v3172_v18 = vld [vmem:[%s4686_s9 + $0x78] sm:$0xff]  }
 0x7e6   : > { %v1752_v19 = vpop.f32.mrb[20].mxu1 }
 0x7e7   : > { %1874 = vrot.lane.b32.xlu1 %v1752_v19, %s3857_s20  ;;  %v2962_v20 = vpop.f32.mrb[21].mxu1  ;;  %v3173_v19 = vld [vmem:[%s4686_s9 + $0x38] sm:$0xff]   ;;  %s3678_s20 = sshll.u32 %s3860_s6, 4  ;;  %s3679_s20 = int_to_ptr.vmem [resolvable:$false] %s3678_s20 }
 0x7e8   : > { %v1755_v21 = vpop.f32.mrb[22].mxu1  ;;  %v2012_v20 = vshrl.u32 %v1417_v63, 7  ;;  %p3681_p2 = scmp.lt.s32.totalorder %s4880_s25, %s3679_s20 }
 0x7e9   : > { %v2963_v22 = vpop.f32.mrb[23].mxu1 }
 0x7ea   : > { %v2013_v21 = vsub.s32 0, %v2012_v20  ;;  %v2009_v22 = vld [vmem:[%s4683_s8] sm:$0x3]  ;;  %v2017_v23 = vsub.s32 1, %v2012_v20  ;;  %s5090_s8 = sld [smem:[#allocation53_spill]] }
 0x7f0   : > { %p5093_p10 = scmp.ne.s32.totalorder %s5090_s8, 0 }
 0x7f2   : > { %p3676_p8 = pnand %p3675_p7, %p5093_p10 }
 0x7f4   : > { %p3677_p13 = pneg %p3676_p8 }
 0x812   : > { %v1863_v24 = vpop.f32.mrb[24].mxu1 }
 0x813   : > { %1878 = vrot.lane.b32.xlu0 %v1863_v24, %s3858_s4  ;;  %v2974_v25 = vpop.f32.mrb[25].mxu1  ;;  %v2014_v24 = vrot.slane %v2009_v22, %v2013_v21  ;;  %s3680_s4 = scalar_lea.vmem %s3679_s20, 256 }
 0x814   : > { %v1866_v26 = vpop.f32.mrb[26].mxu1  ;;  %v2018_v25 = vrot.slane %v2009_v22, %v2017_v23  ;;  %p3682_p11 = scmp.lt.s32.totalorder %s3680_s4, %s3674_s7 }
 0x815   : > { %v2975_v27 = vpop.f32.mrb[27].mxu1 }
 0x816   : > { %p3683_p9 = por %p3682_p11, %p3681_p2 }
 0x818   : > { %p3684_p1 = pnand %p3683_p9, %p3677_p13 }
 0x851   : > { %v1871_v28 = vpop.permute.xlu0 %1870 }
 0x852   : > { %v1881_v10 = vsel %vm1423_vm3, %v1527_v7, %v1871_v28  ;;  %v3162_v7 = vld [vmem:[%s4686_s9 + $0x50] sm:$0xff]   ;;  %s5089_s9 = sld [smem:[#allocation45_spill]] }
 0x858   : > { %s2824_s28 = sshll.u32 %s5089_s9, 7 }
 0x859   : > { %v1875_v29 = vpop.permute.xlu1 %1874  ;;  %s4878_s26 = scalar_lea.hbm %s5091_s27, %s2824_s28 }
 0x85a   : > { %v1883_v30 = vsel %vm1882_vm7, %v1881_v10, %v1875_v29 }
 0x885   : > { %v1879_v31 = vpop.permute.xlu0 %1878 }
 0x886   : > { %v1885_v32 = vsel %vm1884_vm8, %v1883_v30, %v1879_v31 }
 0x887   : > { %v1886_v33 = vpack.c.bf16 %v1885_v32, %v1885_v32 }
 0x889   : > { %2985 = vmatmul.mubr.msk.bf16.vlgmr.msra.gmra.mrb[16].mxu0 %vm1147_vm1, %v1886_v33 }
 0x88a   : > { %2871 = vmatpush3.bf16.msra.mxu0 %v3159_v4 }
 0x88b   : > { %2872 = vmatprep.subr.bf16.mxu0 %v3160_v5 }
 0x88e   : > { %2873 = vmatpush3.bf16.msra.mxu0 %v3161_v6 }
 0x88f   : > { %2874 = vmatprep.subr.bf16.mxu0 %v3162_v7 }
 0x892   : > { %2875 = vmatpush3.bf16.msra.mxu0 %v3163_v8 }
 0x893   : > { %2876 = vmatprep.subr.bf16.mxu0 %v3164_v9 }
 0x896   : > { %2877 = vmatpush3.bf16.msra.mxu0 %v3165_v11 }
 0x897   : > { %2878 = vmatprep.subr.bf16.mxu0 %v3166_v12 }
 0x89a   : > { %2879 = vmatpush3.bf16.msra.mxu0 %v3167_v13 }
 0x89b   : > { %2880 = vmatprep.subr.bf16.mxu0 %v3168_v14 }
 0x89e   : > { %2881 = vmatpush3.bf16.msra.mxu0 %v3169_v15 }
 0x89f   : > { %2882 = vmatprep.subr.bf16.mxu0 %v3170_v16 }
 0x8a2   : > { %2883 = vmatpush3.bf16.msra.mxu0 %v3171_v17 }
 0x8a3   : > { %2884 = vmatprep.subr.bf16.mxu0 %v3172_v18 }
 0x8a6   : > { %2885 = vmatpush3.bf16.msra.mxu0 %v3173_v19 }
 0x95c   : > { %v1956_v34 = vpop.f32.mrb[16].mxu0 }
 0x95d   : > { %v1962_v36 = vadd.f32 %v1956_v34, %v4701_v1  ;;  %v2986_v37 = vpop.f32.mrb[17].mxu0 }
 0x95e   : > { %v1959_v38 = vpop.f32.mrb[18].mxu0 }
 0x95f   : > { %v4833_v39 = vadd.f32 %v2794_v35, %v1962_v36  ;;  %v2987_v40 = vpop.f32.mrb[19].mxu0 }
 0x961   : > { %v1973_v41 = vsel %vm1147_vm1, %v4833_v39, 0.0 }
 0x962   : > { %1974 = vadd.xlane.f32.xlu1 %v1973_v41 }
 0x9ef   : > { %v1975_v42 = vpop.xlane.xlu1 %1974 }
 0x9f0   : > { %v1976_v43 = vmul.f32 0.015625, %v1975_v42 }
 0x9f2   : > { %v1977_v44 = vsub.f32 %v4833_v39, %v1976_v43 }
 0x9f4   : > { %v1978_v45 = vmul.f32 %v1977_v44, %v1977_v44 }
 0x9f6   : > { %v1979_v1 = vsel %vm1147_vm1, %v1978_v45, 0.0 }
 0x9f7   : > { %1980 = vadd.xlane.f32.xlu0 %v1979_v1 }
 0xa84   : > { %v1981_v56 = vpop.xlane.xlu0 %1980 }
 0xa85   : > { %v1982_v57 = vmul.f32 0.015625, %v1981_v56 }
 0xa87   : > { %v1983_v58 = vadd.f32 1e-06, %v1982_v57 }
 0xa89   : > { %3192 = vrsqrt.f32 %v1983_v58 }
 0xa93   : > { %v3193_v59 = vpop.eup %3192 }
 0xa94   : > { %v1985_v52 = vmul.f32 %v3193_v59, %v1977_v44 }
 0xa96   : > { %v1992_v62 = vmul.f32 %v2795_v60, %v1985_v52 }
 0xa98   : > { %v1999_v0 = vadd.f32 %v2796_v61, %v1992_v62 }
 0xa9a   : > { %v2000_v2 = vpack.c.bf16 %v1999_v0, %v1999_v0 }
 0xa9c   : > { %2805 = vmatmul.mubr.msk.bf16.vlgmr.msra.gmra.mrb[28].mxu1 %vm1147_vm1, %v2000_v2 }
 0xb6f   : > { %v2098_v26 = vpop.f32.mrb[28].mxu1 }
 0xb70   : > { %v2099_v27 = vadd.f32 %v2098_v26, %v2014_v24  ;;  %v2100_v28 = vpop.f32.mrb[29].mxu1 }
 0xb71   : > { %v2101_v29 = vadd.f32 %v2100_v28, %v2018_v25  ;;  %v2102_v10 = vpop.f32.mrb[30].mxu1 }
 0xb72   : > { %v2107_v30 = vmul.f32 0.044715, %v2099_v27  ;;  %v2103_v31 = vpop.f32.mrb[31].mxu1  ;;  %v2105_v43 = vmul.f32 0.5, %v2099_v27 }
 0xb73   : > { %v2108_v32 = vmul.f32 0.044715, %v2101_v29  ;;  %v2106_v45 = vmul.f32 0.5, %v2101_v29 }
 0xb74   : > { %v2109_v33 = vmul.f32 %v2107_v30, %v2099_v27 }
 0xb75   : > { %v2110_v34 = vmul.f32 %v2108_v32, %v2101_v29 }
 0xb76   : > { %v2111_v35 = vmul.f32 %v2109_v33, %v2099_v27 }
 0xb77   : > { %v2112_v36 = vmul.f32 %v2110_v34, %v2101_v29 }
 0xb78   : > { %v2113_v37 = vadd.f32 %v2111_v35, %v2099_v27 }
 0xb79   : > { %v2114_v38 = vadd.f32 %v2112_v36, %v2101_v29 }
 0xb7a   : > { %v2115_v63 = vmul.f32 0.7978846, %v2113_v37 }
 0xb7b   : > { %v2116_v40 = vmul.f32 0.7978846, %v2114_v38 }
 0xb7c   : > { %3194 = vtanh.f32 %v2115_v63 }
 0xb7d   : > { %3196 = vtanh.f32 %v2116_v40 }
 0xb86   : > { %v3195_v41 = vpop.eup %3194 }
 0xb87   : > { %v3197_v42 = vpop.eup %3196  ;;  %v2119_v44 = vadd.f32 1.0, %v3195_v41 }
 0xb88   : > { %v2120_v1 = vadd.f32 1.0, %v3197_v42 }
 0xb89   : > { %v2121_v46 = vmul.f32 %v2119_v44, %v2105_v43 }
 0xb8a   : > { %v2122_v47 = vmul.f32 %v2120_v1, %v2106_v45 }
 0xb8b   : > { %v2123_v49 = vpack.c.bf16 %v2121_v46, %v2121_v46 }
 0xb8c   : > { %v2124_v48 = vpack.c.bf16 %v2122_v47, %v2122_v47 }
 0xb8e   : > { %2292 = vmatprep.mubr.bf16.mxu0 %v2124_v48 }
 0xb8f   : > { %2293 = vmatmul.mubr.bf16.vlgmr.msra.gmra.mrb[20].mxu0 %v2123_v49 }
 0xc62   : > { %v2886_v50 = vpop.f32.mrb[20].mxu0 }
 0xc63   : > { %v2887_v53 = vpop.f32.mrb[21].mxu0 }
 0xc64   : > { %v2888_v54 = vadd.f32 %v2887_v53, %v2886_v50  ;;  %v2889_v55 = vpop.f32.mrb[22].mxu0 }
 0xc65   : > { %v2890_v56 = vpop.f32.mrb[23].mxu0 }
 0xc66   : > { %v2295_v57 = vadd.f32 %v2888_v54, %v2806_v51 }
 0xc68   : > { %v2300_v58 = vadd.f32 %v2295_v57, %v4833_v39 }
 0xc6a   : > { %2301 = vst.msk [vmem:[%s4695_s24] sm:$0xff] %vm1147_vm1, %v2300_v58 }
 0xc6b   : > { %3687 = shalt.err (!%p3684_p1)
}
 0xc6c   : > { %s3688_s3 = scalar_lea.hbm %s4878_s26, 128  ;;  %s3692_s10 = scalar_lea.hbm %s5092_s2, 256 }
 0xc6d   : > { %p3689_p5 = scmp.ne.s32.totalorder %s4878_s26, %s3688_s3  ;;  %p3693_p0 = scmp.lt.u32.totalorder %s4878_s26, %s5092_s2 }
 0xc6e   : > { %p3694_p4 = scmp.lt.u32.totalorder %s3692_s10, %s3688_s3  ;;  %p3696_p7 = scmp.lt.u32.totalorder %s3688_s3, %s4878_s26 }
 0xc6f   : > { %p3690_p3 = pnand %p3689_p5, %p5093_p10 }
 0xc70   : > { %p3695_p6 = por %p3694_p4, %p3693_p0 }
 0xc71   : > { %p3691_p12 = pneg %p3690_p3 }
 0xc72   : > { %p3697_p8 = por %p3696_p7, %p3695_p6 }
 0xc74   : > { %p3698_p13 = pnand %p3697_p8, %p3691_p12 }
 0xc76   : > { %3701 = shalt.err (!%p3698_p13)
}
 0xc77   : > { %3022 = dma.vmem_to_hbm [thread:$0]  (%p5093_p10), %s4880_s25, 128, %s4878_s26, %s2303_s30  }
 0xc78 PF: > { %s5094_s28 = sld [smem:[#allocation42_spill]]  ;;  %s5095_s17 = sld [smem:[#allocation54_spill]] }
 0xc79   : > { %p3028_p2 = scmp.ge.s32.totalorder %s3828_s1, 2 }
 0xc7e   : > { %s2328_s21 = sand.u32 1, %s5094_s28   ;;  %p5096_p11 = scmp.ne.s32.totalorder %s5095_s17, 0 }
 0xc7f   : > { %s2329_s27 = scalar_lea.sflag [#allocation4], %s2328_s21 }
 0xc80   : > { %p3025_p9 = pnand %p3028_p2, %p5096_p11 }
 0xc82   : > { %3783 = dma.done.wait (!%p3025_p9), %s2329_s27, 128  }
 0xc83   : > { %3785 = vsyncadd (!%p3025_p9), %s2329_s27, 4294967168  ;;  %s57_s1 = sadd.s32 1, %s3828_s1   ;;  %s5097_s24 = sld [smem:[#allocation40_spill]] }
 0xc84   : > { %p54_p1 = scmp.ge.s32.totalorder %s57_s1, 6   ;;  %s5098_s25 = sld [smem:[#allocation41_spill]] }
 0xc85   : > { %s5099_s26 = sld [smem:[#allocation50_spill]]  ;;  %s5100_s27 = sld [smem:[#allocation43_spill]] }
 0xc86   : > { %s5101_s8 = sld [smem:[#allocation51_spill]]  ;;  %s5102_s7 = sld [smem:[#allocation47_spill]] }
 0xc87   : > { %s5103_s6 = sld [smem:[#allocation48_spill]]  ;;  %s5104_s28 = smov %s3808_s29 }
 0xc88   : > { %s5106_s0 = smov %s3820_s18  ;;  %s5107_s30 = smov %s3824_s19 }
 0xc89   :  { %56 = sbr.rel (!%p54_p1) target bundleno = 41 (0x29), region = 329 }
 0xc8c   : > { %s5105_s29 = smov %s5101_s8  ;;  %s5108_s18 = smov %s5102_s7 }
 0xc8d   : > { %s5109_s19 = smov %s5103_s6 }
 0xc90   :  { %2334 = vsyncpa [#allocation3], 1 }
 0xc91   :  { %2336 = vsyncpa [#allocation3 + $0x1], 1 }
 0xc92   :  { %2337 = vsyncpa [#allocation6], 1 }
 0xc93   :  { %2339 = vsyncpa [#allocation6 + $0x1], 1 }
 0xc94   :  { %2340 = vsyncpa [#allocation9], 1 }
 0xc95   :  { %2342 = vsyncpa [#allocation9 + $0x1], 1 }
 0xc96   :  { %2343 = vsyncpa [#allocation12], 1 }
 0xc97   :  { %2345 = vsyncpa [#allocation12 + $0x1], 1 }
 0xc98   :  { %2346 = vsyncpa [#allocation15], 1 }
 0xc99   :  { %2348 = vsyncpa [#allocation15 + $0x1], 1 }
 0xc9a   :  { %2349 = vsyncpa [#allocation18], 1 }
 0xc9b   :  { %2351 = vsyncpa [#allocation18 + $0x1], 1 }
 0xc9c   :  { %2352 = vsyncpa [#allocation21], 1 }
 0xc9d   :  { %2354 = vsyncpa [#allocation21 + $0x1], 1 }
 0xc9e   :  { %2355 = vsyncpa [#allocation24], 1 }
 0xc9f   :  { %2357 = vsyncpa [#allocation24 + $0x1], 1 }
 0xca0   :  { %2358 = vsyncpa [#allocation27], 1 }
 0xca1   :  { %2360 = vsyncpa [#allocation27 + $0x1], 1 }
 0xca2   :  { %2361 = vsyncpa [#allocation4], 1 }
 0xca3   :  { %2363 = vsyncpa [#allocation4 + $0x1], 1 }

</bundles_post_ra>
